<compile_context>
chip_gen: v5e
topology: v5e:2x2
jax: 0.10.0
libtpu: 0.0.40
codegen_flags: <defaults>
</compile_context>

<pallas_src>
import functools

import jax
import jax.numpy as jnp
from jax.experimental import pallas as pl
from jax.experimental.pallas import tpu as pltpu

ENC_HIDDEN_LAYER_SIZES = (1024, 512)
PREDICTOR_HIDDEN_LAYER_SIZES = (512,)
LEAKY_SLOPE = 0.01            # PyTorch nn.LeakyReLU default negative_slope
_NEG_BIG = -1e30              # finite "minus infinity" for padded class lanes


def _round_up(x, m):
    return ((x + m - 1) // m) * m


# ---------------------------------------------------------------------------
# Fused Pallas kernel: full DANN forward on one batch tile.
# Weight refs are bf16, biases f32; all matmuls accumulate in f32 on the MXU.
# ---------------------------------------------------------------------------
def _dann_fused_kernel(
    x_ref,
    w_e1, b_e1, w_e2, b_e2, w_e3, b_e3,      # encoder
    w_h1, b_h1,                              # merged [clf-1 | dis-1] layer
    w_c2, b_c2,                              # clf output layer (padded lanes)
    w_d2, b_d2, w_d3, b_d3,                  # dis layers 2, 3 (padded lanes)
    clf_ref, dis_ref,
    *, ncls, split,
):
    def lin(x_f32_or_bf16, w_ref, b_ref):
        return (
            jnp.dot(x_f32_or_bf16.astype(w_ref.dtype), w_ref[...],
                    preferred_element_type=jnp.float32)
            + b_ref[...]
        )

    def lrelu(y):
        return jnp.where(y > 0, y, LEAKY_SLOPE * y)

    x = x_ref[...]                            # bf16 tile

    # ---- encoder (padded emb lanes have zero weights/bias -> stay exactly 0)
    h = lrelu(lin(x, w_e1, b_e1))
    h = lrelu(lin(h, w_e2, b_e2))
    h = lrelu(lin(h, w_e3, b_e3))

    # ---- first layers of clf & dis heads merged into one wide matmul.
    #      grad_reverse is the identity in the forward pass.
    hh = lrelu(lin(h, w_h1, b_h1))
    c = hh[:, :split]          # 512-wide, lane-tile aligned slice
    d = hh[:, split:]

    # ---- classifier head: linear -> masked, numerically stable log-softmax
    logits = lin(c, w_c2, b_c2)
    lane = jax.lax.broadcasted_iota(jnp.int32, logits.shape, 1)
    logits = jnp.where(lane < ncls, logits, _NEG_BIG)
    m = jnp.max(logits, axis=1, keepdims=True)
    z = logits - m
    clf_ref[...] = (
        z - jnp.log(jnp.sum(jnp.exp(z), axis=1, keepdims=True))
    ).astype(clf_ref.dtype)

    # ---- discriminator head (no output activation)
    d = lrelu(lin(d, w_d2, b_d2))
    dis_ref[...] = lin(d, w_d3, b_d3).astype(dis_ref.dtype)


# ---------------------------------------------------------------------------
# Jitted wrapper: pads batch / feature / output lanes, builds the grid, and
# slices the real columns back off.
# ---------------------------------------------------------------------------
@functools.partial(jax.jit, static_argnames=("ncls", "clf", "dis"))
def dann_forward(packed, x, ncls, alpha_=1.0, dis=True, clf=True):
    del alpha_  # gradient reversal only affects the backward pass
    w_e1 = packed[0]
    w_c2 = packed[8]
    w_d3 = packed[12]

    B, inp = x.shape
    inp_pad = w_e1.shape[0]
    ncls_pad = w_c2.shape[1]
    dis_pad = w_d3.shape[1]
    split = w_c2.shape[0]      # width of the clf half of the merged head layer

    # batch padding / tiling: multiple of 8 sublanes; biggest tile that fits
    # the default scoped-VMEM budget (cap at 256 rows when inp is very wide).
    bp = _round_up(max(B, 8), 8)
    max_tile = 512 if inp_pad <= 1024 else 256
    tb = bp if bp <= max_tile else max_tile
    bp = _round_up(bp, tb)

    # pad + cast the input to bf16 once (halves input HBM traffic; matmuls
    # accumulate in f32 on the MXU so numerics are unchanged).
    xp = jnp.zeros((bp, inp_pad), jnp.bfloat16).at[:B, :inp].set(
        x.astype(jnp.bfloat16))

    weight_specs = [pl.BlockSpec(p.shape, lambda i: (0, 0)) for p in packed]

    clf_pad_out, dis_pad_out = pl.pallas_call(
        functools.partial(_dann_fused_kernel, ncls=ncls, split=split),
        out_shape=(
            jax.ShapeDtypeStruct((bp, ncls_pad), jnp.float32),
            jax.ShapeDtypeStruct((bp, dis_pad), jnp.float32),
        ),
        grid=(bp // tb,),
        in_specs=[pl.BlockSpec((tb, inp_pad), lambda i: (i, 0))] + weight_specs,
        out_specs=(
            pl.BlockSpec((tb, ncls_pad), lambda i: (i, 0)),
            pl.BlockSpec((tb, dis_pad), lambda i: (i, 0)),
        ),
        compiler_params=pltpu.CompilerParams(
            dimension_semantics=("parallel",),
            vmem_limit_bytes=32 * 1024 * 1024,
        ),
    )(xp, *packed)

    # NOTE: the fused kernel always computes both heads; flags only gate output.
    x_clf = clf_pad_out[:B, :ncls] if clf else None
    x_dis = dis_pad_out[:B, :1] if dis else None
    return x_clf, x_dis


# ---------------------------------------------------------------------------
# Parameter construction (deterministic, synthetic) and packing for the kernel
# ---------------------------------------------------------------------------
def _init_mlp(key, dims):
    """Returns list of (W, b) with W: (fan_in, fan_out), b: (1, fan_out)."""
    params = []
    for fan_in, fan_out in zip(dims[:-1], dims[1:]):
        key, kw, kb = jax.random.split(key, 3)
        scale = 1.0 / jnp.sqrt(jnp.float32(fan_in))
        w = jax.random.uniform(kw, (fan_in, fan_out), jnp.float32, -scale, scale)
        b = jax.random.uniform(kb, (1, fan_out), jnp.float32, -scale, scale)
        params.append((w, b))
    return params, key


def init_dann_params(key, inp_dim, emb_dim, ncls_source):
    enc_dims = [inp_dim, *ENC_HIDDEN_LAYER_SIZES, emb_dim]
    clf_dims = [emb_dim, *PREDICTOR_HIDDEN_LAYER_SIZES, ncls_source]
    dis_dims = [emb_dim, *reversed(ENC_HIDDEN_LAYER_SIZES), 1]
    enc, key = _init_mlp(key, enc_dims)
    clf, key = _init_mlp(key, clf_dims)
    dis, key = _init_mlp(key, dis_dims)
    return {"encoder": enc, "clf": clf, "dis": dis}


def pack_dann_params(params, inp_dim, emb_dim, ncls):
    """Pad to lane-dense (128-multiple) shapes, merge head-entry layers,
    cast weights to bf16 (biases stay f32)."""
    inp_pad = _round_up(inp_dim, 128)
    emb_pad = _round_up(emb_dim, 128)
    ncls_pad = _round_up(ncls, 128)
    dis_out_pad = 128

    def pad_w(w, rows, cols):
        return jnp.zeros((rows, cols), jnp.float32).at[
            : w.shape[0], : w.shape[1]].set(w)

    def pad_b(b, cols):
        return jnp.zeros((1, cols), jnp.float32).at[:, : b.shape[1]].set(b)

    (we1, be1), (we2, be2), (we3, be3) = params["encoder"]
    (wc1, bc1), (wc2, bc2) = params["clf"]
    (wd1, bd1), (wd2, bd2), (wd3, bd3) = params["dis"]

    h2 = ENC_HIDDEN_LAYER_SIZES[1]                 # 512
    clf_h = PREDICTOR_HIDDEN_LAYER_SIZES[0]        # 512
    dis_h1 = tuple(reversed(ENC_HIDDEN_LAYER_SIZES))[0]   # 512

    w_e1 = pad_w(we1, inp_pad, we1.shape[1]); b_e1 = be1
    w_e2 = we2;                               b_e2 = be2
    w_e3 = pad_w(we3, h2, emb_pad);           b_e3 = pad_b(be3, emb_pad)

    # merged [clf layer 1 | dis layer 1] — both consume the encoder output h
    w_h1 = jnp.concatenate(
        [pad_w(wc1, emb_pad, clf_h), pad_w(wd1, emb_pad, dis_h1)], axis=1)
    b_h1 = jnp.concatenate([bc1, bd1], axis=1)

    w_c2 = pad_w(wc2, clf_h, ncls_pad);       b_c2 = pad_b(bc2, ncls_pad)
    w_d2 = wd2;                               b_d2 = bd2
    w_d3 = pad_w(wd3, wd3.shape[0], dis_out_pad); b_d3 = pad_b(bd3, dis_out_pad)

    weights = [w_e1, w_e2, w_e3, w_h1, w_c2, w_d2, w_d3]
    biases = [b_e1, b_e2, b_e3, b_h1, b_c2, b_d2, b_d3]
    packed = []
    for w, b in zip(weights, biases):
        packed.append(w.astype(jnp.bfloat16))
        packed.append(b.astype(jnp.float32))
    return tuple(packed)


# ---------------------------------------------------------------------------
# Pure-JAX reference (same bf16-weight / f32-accumulation numerics)
# ---------------------------------------------------------------------------
def _ref_linear(x, w, b, act):
    y = jnp.dot(x.astype(jnp.bfloat16), w.astype(jnp.bfloat16),
                preferred_element_type=jnp.float32) + b
    if act == "leakyrelu":
        y = jnp.where(y > 0, y, LEAKY_SLOPE * y)
    elif act == "logsoftmax":
        y = jax.nn.log_softmax(y, axis=1)
    return y


def dann_forward_ref(params, x):
    h = x
    for w, b in params["encoder"]:
        h = _ref_linear(h, w, b, "leakyrelu")
    c = h
    for i, (w, b) in enumerate(params["clf"]):
        act = "logsoftmax" if i == len(params["clf"]) - 1 else "leakyrelu"
        c = _ref_linear(c, w, b, act)
    d = h
    for i, (w, b) in enumerate(params["dis"]):
        act = "none" if i == len(params["dis"]) - 1 else "leakyrelu"
        d = _ref_linear(d, w, b, act)
    return c, d


if __name__ == "__main__":
    # Small, deterministic example shapes consistent with the module:
    # batch=4 samples, inp_dim=64 gene-expression features, emb=32, 8 cell types.
    batch, inp_dim, emb_dim, ncls = 4, 64, 32, 8

    key = jax.random.PRNGKey(0)
    key, kx = jax.random.split(key)
    x = jax.random.normal(kx, (batch, inp_dim), jnp.float32)

    params = init_dann_params(key, inp_dim, emb_dim, ncls)
    packed = pack_dann_params(params, inp_dim, emb_dim, ncls)

    x_clf, x_dis = dann_forward(packed, x, ncls=ncls)
    jax.block_until_ready((x_clf, x_dis))

    assert x_clf.shape == (batch, ncls)
    assert x_dis.shape == (batch, 1)

    # Cross-check against a pure-JAX reference using the same bf16 weights.
    ref_clf, ref_dis = dann_forward_ref(params, x)
    assert jnp.allclose(x_clf, ref_clf, atol=1e-2, rtol=1e-2)
    assert jnp.allclose(x_dis, ref_dis, atol=1e-2, rtol=1e-2)
    # LogSoftmax rows should exponentiate-and-sum to ~1 over the real classes.
    assert jnp.allclose(jnp.sum(jnp.exp(x_clf), axis=1), 1.0, atol=1e-3)

    print("KERNEL_OK")
</pallas_src>

<mosaic_0001>
module attributes {stable_mosaic.version = 11 : i64} {
  func.func @_dann_fused_kernel(%arg0: i32, %arg1: memref<8x128xbf16, #tpu.memory_space<vmem>>, %arg2: memref<128x1024xbf16, #tpu.memory_space<vmem>>, %arg3: memref<1x1024xf32, #tpu.memory_space<vmem>>, %arg4: memref<1024x512xbf16, #tpu.memory_space<vmem>>, %arg5: memref<1x512xf32, #tpu.memory_space<vmem>>, %arg6: memref<512x128xbf16, #tpu.memory_space<vmem>>, %arg7: memref<1x128xf32, #tpu.memory_space<vmem>>, %arg8: memref<128x1024xbf16, #tpu.memory_space<vmem>>, %arg9: memref<1x1024xf32, #tpu.memory_space<vmem>>, %arg10: memref<512x128xbf16, #tpu.memory_space<vmem>>, %arg11: memref<1x128xf32, #tpu.memory_space<vmem>>, %arg12: memref<512x1024xbf16, #tpu.memory_space<vmem>>, %arg13: memref<1x1024xf32, #tpu.memory_space<vmem>>, %arg14: memref<1024x128xbf16, #tpu.memory_space<vmem>>, %arg15: memref<1x128xf32, #tpu.memory_space<vmem>>, %arg16: memref<8x128xf32, #tpu.memory_space<vmem>>, %arg17: memref<8x128xf32, #tpu.memory_space<vmem>>) attributes {dimension_semantics = [#tpu.dimension_semantics<parallel>], iteration_bounds = array<i64: 1>, scalar_prefetch = 0 : i64, scratch_operands = 0 : i64, tpu.core_type = #tpu.core_type<tc>, window_params = [{transform_indices = @transform_0, window_bounds = array<i64: 8, 128>}, {pipeline_mode = #tpu.pipeline_mode<synchronous>, transform_indices = @transform_1, window_bounds = array<i64: 128, 1024>}, {pipeline_mode = #tpu.pipeline_mode<synchronous>, transform_indices = @transform_2, window_bounds = array<i64: 1, 1024>}, {pipeline_mode = #tpu.pipeline_mode<synchronous>, transform_indices = @transform_3, window_bounds = array<i64: 1024, 512>}, {pipeline_mode = #tpu.pipeline_mode<synchronous>, transform_indices = @transform_4, window_bounds = array<i64: 1, 512>}, {pipeline_mode = #tpu.pipeline_mode<synchronous>, transform_indices = @transform_5, window_bounds = array<i64: 512, 128>}, {pipeline_mode = #tpu.pipeline_mode<synchronous>, transform_indices = @transform_6, window_bounds = array<i64: 1, 128>}, {pipeline_mode = #tpu.pipeline_mode<synchronous>, transform_indices = @transform_7, window_bounds = array<i64: 128, 1024>}, {pipeline_mode = #tpu.pipeline_mode<synchronous>, transform_indices = @transform_8, window_bounds = array<i64: 1, 1024>}, {pipeline_mode = #tpu.pipeline_mode<synchronous>, transform_indices = @transform_9, window_bounds = array<i64: 512, 128>}, {pipeline_mode = #tpu.pipeline_mode<synchronous>, transform_indices = @transform_10, window_bounds = array<i64: 1, 128>}, {pipeline_mode = #tpu.pipeline_mode<synchronous>, transform_indices = @transform_11, window_bounds = array<i64: 512, 1024>}, {pipeline_mode = #tpu.pipeline_mode<synchronous>, transform_indices = @transform_12, window_bounds = array<i64: 1, 1024>}, {pipeline_mode = #tpu.pipeline_mode<synchronous>, transform_indices = @transform_13, window_bounds = array<i64: 1024, 128>}, {pipeline_mode = #tpu.pipeline_mode<synchronous>, transform_indices = @transform_14, window_bounds = array<i64: 1, 128>}, {transform_indices = @transform_15, window_bounds = array<i64: 8, 128>}, {transform_indices = @transform_16, window_bounds = array<i64: 8, 128>}]} {
    %c0 = arith.constant 0 : index
    %c0_0 = arith.constant 0 : index
    %0 = vector.load %arg1[%c0, %c0_0] : memref<8x128xbf16, #tpu.memory_space<vmem>>, vector<8x128xbf16>
    %c0_1 = arith.constant 0 : index
    %c0_2 = arith.constant 0 : index
    %1 = vector.load %arg2[%c0_1, %c0_2] : memref<128x1024xbf16, #tpu.memory_space<vmem>>, vector<128x1024xbf16>
    %cst = arith.constant dense<0.000000e+00> : vector<8x1024xf32>
    %2 = tpu.matmul %0, %1, %cst {dimension_numbers = #tpu.dot_dimension_numbers<[1], [0], [0], [1], [0, 0, 1, 1], [], []>} : vector<8x128xbf16>, vector<128x1024xbf16>, vector<8x1024xf32> -> vector<8x1024xf32>
    %c0_3 = arith.constant 0 : index
    %c0_4 = arith.constant 0 : index
    %3 = vector.load %arg3[%c0_3, %c0_4] : memref<1x1024xf32, #tpu.memory_space<vmem>>, vector<1x1024xf32>
    %4 = vector.broadcast %3 : vector<1x1024xf32> to vector<8x1024xf32>
    %5 = arith.addf %2, %4 : vector<8x1024xf32>
    %cst_5 = arith.constant 0.000000e+00 : f32
    %6 = vector.broadcast %cst_5 : f32 to vector<8x1024xf32>
    %7 = arith.cmpf ogt, %5, %6 : vector<8x1024xf32>
    %cst_6 = arith.constant 0.00999999977 : f32
    %8 = vector.broadcast %cst_6 : f32 to vector<8x1024xf32>
    %9 = arith.mulf %8, %5 : vector<8x1024xf32>
    %10 = arith.select %7, %5, %9 : vector<8x1024xi1>, vector<8x1024xf32>
    %11 = arith.truncf %10 : vector<8x1024xf32> to vector<8x1024xbf16>
    %c0_7 = arith.constant 0 : index
    %c0_8 = arith.constant 0 : index
    %12 = vector.load %arg4[%c0_7, %c0_8] : memref<1024x512xbf16, #tpu.memory_space<vmem>>, vector<1024x512xbf16>
    %cst_9 = arith.constant dense<0.000000e+00> : vector<8x512xf32>
    %13 = tpu.matmul %11, %12, %cst_9 {dimension_numbers = #tpu.dot_dimension_numbers<[1], [0], [0], [1], [0, 0, 1, 1], [], []>} : vector<8x1024xbf16>, vector<1024x512xbf16>, vector<8x512xf32> -> vector<8x512xf32>
    %c0_10 = arith.constant 0 : index
    %c0_11 = arith.constant 0 : index
    %14 = vector.load %arg5[%c0_10, %c0_11] : memref<1x512xf32, #tpu.memory_space<vmem>>, vector<1x512xf32>
    %15 = vector.broadcast %14 : vector<1x512xf32> to vector<8x512xf32>
    %16 = arith.addf %13, %15 : vector<8x512xf32>
    %cst_12 = arith.constant 0.000000e+00 : f32
    %17 = vector.broadcast %cst_12 : f32 to vector<8x512xf32>
    %18 = arith.cmpf ogt, %16, %17 : vector<8x512xf32>
    %cst_13 = arith.constant 0.00999999977 : f32
    %19 = vector.broadcast %cst_13 : f32 to vector<8x512xf32>
    %20 = arith.mulf %19, %16 : vector<8x512xf32>
    %21 = arith.select %18, %16, %20 : vector<8x512xi1>, vector<8x512xf32>
    %22 = arith.truncf %21 : vector<8x512xf32> to vector<8x512xbf16>
    %c0_14 = arith.constant 0 : index
    %c0_15 = arith.constant 0 : index
    %23 = vector.load %arg6[%c0_14, %c0_15] : memref<512x128xbf16, #tpu.memory_space<vmem>>, vector<512x128xbf16>
    %cst_16 = arith.constant dense<0.000000e+00> : vector<8x128xf32>
    %24 = tpu.matmul %22, %23, %cst_16 {dimension_numbers = #tpu.dot_dimension_numbers<[1], [0], [0], [1], [0, 0, 1, 1], [], []>} : vector<8x512xbf16>, vector<512x128xbf16>, vector<8x128xf32> -> vector<8x128xf32>
    %c0_17 = arith.constant 0 : index
    %c0_18 = arith.constant 0 : index
    %25 = vector.load %arg7[%c0_17, %c0_18] : memref<1x128xf32, #tpu.memory_space<vmem>>, vector<1x128xf32>
    %26 = vector.broadcast %25 : vector<1x128xf32> to vector<8x128xf32>
    %27 = arith.addf %24, %26 : vector<8x128xf32>
    %cst_19 = arith.constant 0.000000e+00 : f32
    %28 = vector.broadcast %cst_19 : f32 to vector<8x128xf32>
    %29 = arith.cmpf ogt, %27, %28 : vector<8x128xf32>
    %cst_20 = arith.constant 0.00999999977 : f32
    %30 = vector.broadcast %cst_20 : f32 to vector<8x128xf32>
    %31 = arith.mulf %30, %27 : vector<8x128xf32>
    %32 = arith.select %29, %27, %31 : vector<8x128xi1>, vector<8x128xf32>
    %33 = arith.truncf %32 : vector<8x128xf32> to vector<8x128xbf16>
    %c0_21 = arith.constant 0 : index
    %c0_22 = arith.constant 0 : index
    %34 = vector.load %arg8[%c0_21, %c0_22] : memref<128x1024xbf16, #tpu.memory_space<vmem>>, vector<128x1024xbf16>
    %cst_23 = arith.constant dense<0.000000e+00> : vector<8x1024xf32>
    %35 = tpu.matmul %33, %34, %cst_23 {dimension_numbers = #tpu.dot_dimension_numbers<[1], [0], [0], [1], [0, 0, 1, 1], [], []>} : vector<8x128xbf16>, vector<128x1024xbf16>, vector<8x1024xf32> -> vector<8x1024xf32>
    %c0_24 = arith.constant 0 : index
    %c0_25 = arith.constant 0 : index
    %36 = vector.load %arg9[%c0_24, %c0_25] : memref<1x1024xf32, #tpu.memory_space<vmem>>, vector<1x1024xf32>
    %37 = vector.broadcast %36 : vector<1x1024xf32> to vector<8x1024xf32>
    %38 = arith.addf %35, %37 : vector<8x1024xf32>
    %cst_26 = arith.constant 0.000000e+00 : f32
    %39 = vector.broadcast %cst_26 : f32 to vector<8x1024xf32>
    %40 = arith.cmpf ogt, %38, %39 : vector<8x1024xf32>
    %cst_27 = arith.constant 0.00999999977 : f32
    %41 = vector.broadcast %cst_27 : f32 to vector<8x1024xf32>
    %42 = arith.mulf %41, %38 : vector<8x1024xf32>
    %43 = arith.select %40, %38, %42 : vector<8x1024xi1>, vector<8x1024xf32>
    %44 = vector.extract_strided_slice %43 {offsets = [0, 0], sizes = [8, 512], strides = [1, 1]} : vector<8x1024xf32> to vector<8x512xf32>
    %45 = vector.extract_strided_slice %43 {offsets = [0, 512], sizes = [8, 512], strides = [1, 1]} : vector<8x1024xf32> to vector<8x512xf32>
    %46 = arith.truncf %44 : vector<8x512xf32> to vector<8x512xbf16>
    %c0_28 = arith.constant 0 : index
    %c0_29 = arith.constant 0 : index
    %47 = vector.load %arg10[%c0_28, %c0_29] : memref<512x128xbf16, #tpu.memory_space<vmem>>, vector<512x128xbf16>
    %cst_30 = arith.constant dense<0.000000e+00> : vector<8x128xf32>
    %48 = tpu.matmul %46, %47, %cst_30 {dimension_numbers = #tpu.dot_dimension_numbers<[1], [0], [0], [1], [0, 0, 1, 1], [], []>} : vector<8x512xbf16>, vector<512x128xbf16>, vector<8x128xf32> -> vector<8x128xf32>
    %c0_31 = arith.constant 0 : index
    %c0_32 = arith.constant 0 : index
    %49 = vector.load %arg11[%c0_31, %c0_32] : memref<1x128xf32, #tpu.memory_space<vmem>>, vector<1x128xf32>
    %50 = vector.broadcast %49 : vector<1x128xf32> to vector<8x128xf32>
    %51 = arith.addf %48, %50 : vector<8x128xf32>
    %52 = tpu.iota {dimensions = array<i32: 1>} : vector<8x128xi32>
    %c8_i32 = arith.constant 8 : i32
    %53 = vector.broadcast %c8_i32 : i32 to vector<8x128xi32>
    %54 = arith.cmpi slt, %52, %53 : vector<8x128xi32>
    %cst_33 = arith.constant -1.000000e+30 : f32
    %55 = vector.broadcast %cst_33 : f32 to vector<8x128xf32>
    %56 = arith.select %54, %51, %55 : vector<8x128xi1>, vector<8x128xf32>
    %cst_34 = arith.constant dense<0xFF800000> : vector<8xf32>
    %57 = vector.multi_reduction <maximumf>, %56, %cst_34 [1] : vector<8x128xf32> to vector<8xf32>
    %58 = vector.shape_cast %57 : vector<8xf32> to vector<8x1xf32>
    %59 = vector.broadcast %58 : vector<8x1xf32> to vector<8x128xf32>
    %60 = arith.subf %56, %59 : vector<8x128xf32>
    %61 = math.exp %60 : vector<8x128xf32>
    %cst_35 = arith.constant dense<0.000000e+00> : vector<8xf32>
    %62 = vector.multi_reduction <add>, %61, %cst_35 [1] : vector<8x128xf32> to vector<8xf32>
    %63 = vector.shape_cast %62 : vector<8xf32> to vector<8x1xf32>
    %64 = math.log %63 : vector<8x1xf32>
    %65 = vector.broadcast %64 : vector<8x1xf32> to vector<8x128xf32>
    %66 = arith.subf %60, %65 : vector<8x128xf32>
    %c0_36 = arith.constant 0 : index
    %c0_37 = arith.constant 0 : index
    %67 = vector.load %arg16[%c0_36, %c0_37] : memref<8x128xf32, #tpu.memory_space<vmem>>, vector<8x128xf32>
    tpu.vector_store %arg16[%c0_36, %c0_37], %66 {strides = array<i32>} : memref<8x128xf32, #tpu.memory_space<vmem>>, vector<8x128xf32>,
    %68 = arith.truncf %45 : vector<8x512xf32> to vector<8x512xbf16>
    %c0_38 = arith.constant 0 : index
    %c0_39 = arith.constant 0 : index
    %69 = vector.load %arg12[%c0_38, %c0_39] : memref<512x1024xbf16, #tpu.memory_space<vmem>>, vector<512x1024xbf16>
    %cst_40 = arith.constant dense<0.000000e+00> : vector<8x1024xf32>
    %70 = tpu.matmul %68, %69, %cst_40 {dimension_numbers = #tpu.dot_dimension_numbers<[1], [0], [0], [1], [0, 0, 1, 1], [], []>} : vector<8x512xbf16>, vector<512x1024xbf16>, vector<8x1024xf32> -> vector<8x1024xf32>
    %c0_41 = arith.constant 0 : index
    %c0_42 = arith.constant 0 : index
    %71 = vector.load %arg13[%c0_41, %c0_42] : memref<1x1024xf32, #tpu.memory_space<vmem>>, vector<1x1024xf32>
    %72 = vector.broadcast %71 : vector<1x1024xf32> to vector<8x1024xf32>
    %73 = arith.addf %70, %72 : vector<8x1024xf32>
    %cst_43 = arith.constant 0.000000e+00 : f32
    %74 = vector.broadcast %cst_43 : f32 to vector<8x1024xf32>
    %75 = arith.cmpf ogt, %73, %74 : vector<8x1024xf32>
    %cst_44 = arith.constant 0.00999999977 : f32
    %76 = vector.broadcast %cst_44 : f32 to vector<8x1024xf32>
    %77 = arith.mulf %76, %73 : vector<8x1024xf32>
    %78 = arith.select %75, %73, %77 : vector<8x1024xi1>, vector<8x1024xf32>
    %79 = arith.truncf %78 : vector<8x1024xf32> to vector<8x1024xbf16>
    %c0_45 = arith.constant 0 : index
    %c0_46 = arith.constant 0 : index
    %80 = vector.load %arg14[%c0_45, %c0_46] : memref<1024x128xbf16, #tpu.memory_space<vmem>>, vector<1024x128xbf16>
    %cst_47 = arith.constant dense<0.000000e+00> : vector<8x128xf32>
    %81 = tpu.matmul %79, %80, %cst_47 {dimension_numbers = #tpu.dot_dimension_numbers<[1], [0], [0], [1], [0, 0, 1, 1], [], []>} : vector<8x1024xbf16>, vector<1024x128xbf16>, vector<8x128xf32> -> vector<8x128xf32>
    %c0_48 = arith.constant 0 : index
    %c0_49 = arith.constant 0 : index
    %82 = vector.load %arg15[%c0_48, %c0_49] : memref<1x128xf32, #tpu.memory_space<vmem>>, vector<1x128xf32>
    %83 = vector.broadcast %82 : vector<1x128xf32> to vector<8x128xf32>
    %84 = arith.addf %81, %83 : vector<8x128xf32>
    %c0_50 = arith.constant 0 : index
    %c0_51 = arith.constant 0 : index
    %85 = vector.load %arg17[%c0_50, %c0_51] : memref<8x128xf32, #tpu.memory_space<vmem>>, vector<8x128xf32>
    tpu.vector_store %arg17[%c0_50, %c0_51], %84 {strides = array<i32>} : memref<8x128xf32, #tpu.memory_space<vmem>>, vector<8x128xf32>,
    return
  }
  func.func @transform_0(%arg0: i32) -> (i32, i32) {
    %c0_i32 = arith.constant 0 : i32
    %c0_i32_0 = arith.constant 0 : i32
    return %arg0, %c0_i32 : i32, i32
  }
  func.func @transform_1(%arg0: i32) -> (i32, i32) {
    %c0_i32 = arith.constant 0 : i32
    %c0_i32_0 = arith.constant 0 : i32
    %c0_i32_1 = arith.constant 0 : i32
    return %c0_i32, %c0_i32_0 : i32, i32
  }
  func.func @transform_2(%arg0: i32) -> (i32, i32) {
    %c0_i32 = arith.constant 0 : i32
    %c0_i32_0 = arith.constant 0 : i32
    %c0_i32_1 = arith.constant 0 : i32
    return %c0_i32, %c0_i32_0 : i32, i32
  }
  func.func @transform_3(%arg0: i32) -> (i32, i32) {
    %c0_i32 = arith.constant 0 : i32
    %c0_i32_0 = arith.constant 0 : i32
    %c0_i32_1 = arith.constant 0 : i32
    return %c0_i32, %c0_i32_0 : i32, i32
  }
  func.func @transform_4(%arg0: i32) -> (i32, i32) {
    %c0_i32 = arith.constant 0 : i32
    %c0_i32_0 = arith.constant 0 : i32
    %c0_i32_1 = arith.constant 0 : i32
    return %c0_i32, %c0_i32_0 : i32, i32
  }
  func.func @transform_5(%arg0: i32) -> (i32, i32) {
    %c0_i32 = arith.constant 0 : i32
    %c0_i32_0 = arith.constant 0 : i32
    %c0_i32_1 = arith.constant 0 : i32
    return %c0_i32, %c0_i32_0 : i32, i32
  }
  func.func @transform_6(%arg0: i32) -> (i32, i32) {
    %c0_i32 = arith.constant 0 : i32
    %c0_i32_0 = arith.constant 0 : i32
    %c0_i32_1 = arith.constant 0 : i32
    return %c0_i32, %c0_i32_0 : i32, i32
  }
  func.func @transform_7(%arg0: i32) -> (i32, i32) {
    %c0_i32 = arith.constant 0 : i32
    %c0_i32_0 = arith.constant 0 : i32
    %c0_i32_1 = arith.constant 0 : i32
    return %c0_i32, %c0_i32_0 : i32, i32
  }
  func.func @transform_8(%arg0: i32) -> (i32, i32) {
    %c0_i32 = arith.constant 0 : i32
    %c0_i32_0 = arith.constant 0 : i32
    %c0_i32_1 = arith.constant 0 : i32
    return %c0_i32, %c0_i32_0 : i32, i32
  }
  func.func @transform_9(%arg0: i32) -> (i32, i32) {
    %c0_i32 = arith.constant 0 : i32
    %c0_i32_0 = arith.constant 0 : i32
    %c0_i32_1 = arith.constant 0 : i32
    return %c0_i32, %c0_i32_0 : i32, i32
  }
  func.func @transform_10(%arg0: i32) -> (i32, i32) {
    %c0_i32 = arith.constant 0 : i32
    %c0_i32_0 = arith.constant 0 : i32
    %c0_i32_1 = arith.constant 0 : i32
    return %c0_i32, %c0_i32_0 : i32, i32
  }
  func.func @transform_11(%arg0: i32) -> (i32, i32) {
    %c0_i32 = arith.constant 0 : i32
    %c0_i32_0 = arith.constant 0 : i32
    %c0_i32_1 = arith.constant 0 : i32
    return %c0_i32, %c0_i32_0 : i32, i32
  }
  func.func @transform_12(%arg0: i32) -> (i32, i32) {
    %c0_i32 = arith.constant 0 : i32
    %c0_i32_0 = arith.constant 0 : i32
    %c0_i32_1 = arith.constant 0 : i32
    return %c0_i32, %c0_i32_0 : i32, i32
  }
  func.func @transform_13(%arg0: i32) -> (i32, i32) {
    %c0_i32 = arith.constant 0 : i32
    %c0_i32_0 = arith.constant 0 : i32
    %c0_i32_1 = arith.constant 0 : i32
    return %c0_i32, %c0_i32_0 : i32, i32
  }
  func.func @transform_14(%arg0: i32) -> (i32, i32) {
    %c0_i32 = arith.constant 0 : i32
    %c0_i32_0 = arith.constant 0 : i32
    %c0_i32_1 = arith.constant 0 : i32
    return %c0_i32, %c0_i32_0 : i32, i32
  }
  func.func @transform_15(%arg0: i32) -> (i32, i32) {
    %c0_i32 = arith.constant 0 : i32
    %c0_i32_0 = arith.constant 0 : i32
    return %arg0, %c0_i32 : i32, i32
  }
  func.func @transform_16(%arg0: i32) -> (i32, i32) {
    %c0_i32 = arith.constant 0 : i32
    %c0_i32_0 = arith.constant 0 : i32
    return %arg0, %c0_i32 : i32, i32
  }
}

</mosaic_0001>

<bundles_post_ra>
// kernel: dann_forward.1
= control target key start
LH: loop header
LB: loop body
LE: loop exit
PB: predicated region body
PF: predicated region fallthrough
CT: control target
= control target key end

     0   :  { %s11015_s0 = inlined_call_operand.vmem [shape: bf16[8,128], index: 0, kind: input, shape index: {}]   ;;  %s11016_s1 = inlined_call_operand.hbm [shape: bf16[128,1024], index: 1, kind: input, shape index: {}]   ;;  %s11017_s2 = inlined_call_operand.vmem [shape: f32[1,1024], index: 2, kind: input, shape index: {}]   ;;  %s11018_s3 = inlined_call_operand.hbm [shape: bf16[1024,512], index: 3, kind: input, shape index: {}]   ;;  %s11019_s4 = inlined_call_operand.hbm [shape: f32[1,512], index: 4, kind: input, shape index: {}]   ;;  %s11020_s5 = inlined_call_operand.hbm [shape: bf16[512,128], index: 5, kind: input, shape index: {}]   ;;  %s11021_s6 = inlined_call_operand.hbm [shape: f32[1,128], index: 6, kind: input, shape index: {}]   ;;  %s11022_s7 = inlined_call_operand.hbm [shape: bf16[128,1024], index: 7, kind: input, shape index: {}]   ;;  %s11023_s8 = inlined_call_operand.vmem [shape: f32[1,1024], index: 8, kind: input, shape index: {}]   ;;  %s11024_s9 = inlined_call_operand.hbm [shape: bf16[512,128], index: 9, kind: input, shape index: {}]   ;;  %s11025_s10 = inlined_call_operand.vmem [shape: f32[1,128], index: 10, kind: input, shape index: {}]   ;;  %s11026_s11 = inlined_call_operand.hbm [shape: bf16[512,1024], index: 11, kind: input, shape index: {}]   ;;  %s11027_s12 = inlined_call_operand.hbm [shape: f32[1,1024], index: 12, kind: input, shape index: {}]   ;;  %s11028_s13 = inlined_call_operand.hbm [shape: bf16[1024,128], index: 13, kind: input, shape index: {}]   ;;  %s11029_s14 = inlined_call_operand.vmem [shape: f32[1,128], index: 14, kind: input, shape index: {}]   ;;  %s11030_s15 = inlined_call_operand.vmem [shape: f32[8,128], index: 15, kind: output, shape index: {0}]   ;;  %s11031_s16 = inlined_call_operand.vmem [shape: f32[8,128], index: 16, kind: output, shape index: {1}]  }
   0x1   :  { %11032 = sst [smem:[#allocation24_spill]] %s11015_s0 }
   0x2   :  { %22 = vsyncpa [#allocation3], 0 }
   0x3   :  { %23 = vsyncpa [#allocation5], 0 }
   0x4   :  { %24 = vsyncpa [#allocation8], 0 }
   0x5   :  { %25 = vsyncpa [#allocation11], 0 }
   0x6   :  { %26 = vsyncpa [#allocation14], 0  ;;  %s49_s23 = sshll.u32 %s11018_s3, 4  ;;  %s50_s23 = int_to_ptr.hbm [resolvable:$true] %s49_s23 }
   0x7   :  { %27 = vsyncpa [#allocation17], 0  ;;  %s10653_s24 = smov [#allocation4]   ;;  %s73_s28 = sshll.u32 %s11020_s5, 4  ;;  %s74_s28 = int_to_ptr.hbm [resolvable:$true] %s73_s28 }
   0x8   :  { %s51_s25 = sshll.u32 %s10653_s24, 4  ;;  %s10654_s29 = smov 256   ;;  %s52_s25 = int_to_ptr.vmem [resolvable:$true] %s51_s25 }
   0x9   :  { %s10655_s30 = smov 16   ;;  %s10656_s0 = smov [#allocation7]  }
   0xa   :  { %57 = dma.hbm_to_vmem [thread:$0]  %s50_s23, 32768, %s52_s25, [#allocation5], %s10654_s29, %s10654_s29, %s10655_s30  }
   0xb   :  { %s75_s17 = sshll.u32 %s10656_s0, 4  ;;  %s10657_s18 = smov 64   ;;  %s76_s17 = int_to_ptr.vmem [resolvable:$true] %s75_s17 }
   0xc   :  { %s10658_s19 = smov 4   ;;  %s97_s21 = sshll.u32 %s11022_s7, 4  ;;  %s98_s21 = int_to_ptr.hbm [resolvable:$true] %s97_s21 }
   0xd   :  { %81 = dma.hbm_to_vmem [thread:$0]  %s74_s28, 4096, %s76_s17, [#allocation8], %s10657_s18, %s10657_s18, %s10658_s19  }
   0xe   :  { %s10659_s22 = smov [#allocation10]   ;;  %s127_s25 = sshll.u32 %s11026_s11, 4  ;;  %s128_s25 = int_to_ptr.hbm [resolvable:$true] %s127_s25 }
   0xf   :  { %s99_s5 = sshll.u32 %s10659_s22, 4  ;;  %s10660_s26 = smov 512   ;;  %s100_s5 = int_to_ptr.vmem [resolvable:$true] %s99_s5 }
  0x10   :  { %s10661_s27 = smov 32   ;;  %s10662_s29 = smov [#allocation13]  }
  0x11   :  { %105 = dma.hbm_to_vmem [thread:$0]  %s98_s21, 8192, %s100_s5, [#allocation11], %s10660_s26, %s10660_s26, %s10661_s27  }
  0x12   :  { %s129_s30 = sshll.u32 %s10662_s29, 4  ;;  %s34_s17 = sshll.u32 %s11016_s1, 4  ;;  %s130_s30 = int_to_ptr.vmem [resolvable:$true] %s129_s30  ;;  %s35_s17 = int_to_ptr.hbm [resolvable:$true] %s34_s17 }
  0x13   :  { %135 = dma.hbm_to_vmem [thread:$0]  %s128_s25, 32768, %s130_s30, [#allocation14], %s10660_s26, %s10660_s26, %s10661_s27  }
  0x14   :  { %s63_s20 = sshll.u32 %s11019_s4, 4  ;;  %s10663_s22 = smov [#allocation2]   ;;  %s64_s20 = int_to_ptr.hbm [resolvable:$true] %s63_s20 }
  0x15   :  { %s36_s24 = sshll.u32 %s10663_s22, 4  ;;  %s10664_s11 = smov [#allocation6]   ;;  %s37_s24 = int_to_ptr.vmem [resolvable:$true] %s36_s24 }
  0x16   :  { %42 = dma.hbm_to_vmem [thread:$0]  %s35_s17, 8192, %s37_s24, [#allocation3], %s10660_s26, %s10660_s26, %s10661_s27  }
  0x17   :  { %s65_s21 = sshll.u32 %s10664_s11, 4  ;;  %s87_s29 = sshll.u32 %s11021_s6, 4  ;;  %s66_s21 = int_to_ptr.vmem [resolvable:$true] %s65_s21  ;;  %s88_s29 = int_to_ptr.hbm [resolvable:$true] %s87_s29 }
  0x18   :  { %68 = dma.hbm_to_vmem [thread:$0]  %s64_s20, 64, %s66_s21, [#allocation5]  }
  0x19   :  { %s112_s30 = sshll.u32 %s11024_s9, 4  ;;  %s10665_s0 = smov [#allocation9]   ;;  %s113_s30 = int_to_ptr.hbm [resolvable:$true] %s112_s30 }
  0x1a   :  { %s89_s4 = sshll.u32 %s10665_s0, 4  ;;  %s10666_s28 = smov [#allocation12]   ;;  %s90_s4 = int_to_ptr.vmem [resolvable:$true] %s89_s4 }
  0x1b   :  { %92 = dma.hbm_to_vmem [thread:$0]  %s88_s29, 16, %s90_s4, [#allocation8]  }
  0x1c   :  { %s114_s26 = sshll.u32 %s10666_s28, 4  ;;  %s141_s7 = sshll.u32 %s11027_s12, 4  ;;  %s115_s26 = int_to_ptr.vmem [resolvable:$true] %s114_s26  ;;  %s142_s7 = int_to_ptr.hbm [resolvable:$true] %s141_s7 }
  0x1d   :  { %120 = dma.hbm_to_vmem [thread:$0]  %s113_s30, 4096, %s115_s26, [#allocation11], %s10657_s18, %s10657_s18, %s10658_s19  }
  0x1e   :  { %s151_s9 = sshll.u32 %s11028_s13, 4  ;;  %s10667_s20 = smov [#allocation15]   ;;  %s152_s9 = int_to_ptr.hbm [resolvable:$true] %s151_s9 }
  0x1f   :  { %s143_s22 = sshll.u32 %s10667_s20, 4  ;;  %s10668_s24 = smov [#allocation16]   ;;  %s144_s22 = int_to_ptr.vmem [resolvable:$true] %s143_s22 }
  0x20   :  { %146 = dma.hbm_to_vmem [thread:$0]  %s142_s7, 128, %s144_s22, [#allocation14]  }
  0x21   :  { %s153_s11 = sshll.u32 %s10668_s24, 4  ;;  %s154_s11 = int_to_ptr.vmem [resolvable:$true] %s153_s11 }
  0x22   :  { %159 = dma.hbm_to_vmem [thread:$0]  %s152_s9, 8192, %s154_s11, [#allocation17], %s10657_s18, %s10657_s18, %s10658_s19  }
  0x23   :  { %10641 = dma.done.wait [#allocation3], 8192  }
  0x24   :  { %10642 = vsyncadd [#allocation3], 4294959104 }
  0x25   :  { %10643 = dma.done.wait [#allocation5], 32832  }
  0x26   :  { %10644 = vsyncadd [#allocation5], 4294934464 }
  0x27   :  { %10645 = dma.done.wait [#allocation8], 4112  }
  0x28   :  { %10646 = vsyncadd [#allocation8], 4294963184 }
  0x29   :  { %10647 = dma.done.wait [#allocation11], 12288  }
  0x2a   :  { %10648 = vsyncadd [#allocation11], 4294955008 }
  0x2b   :  { %10649 = dma.done.wait [#allocation14], 32896  }
  0x2c   :  { %10650 = vsyncadd [#allocation14], 4294934400 }
  0x2d   :  { %10651 = dma.done.wait [#allocation17], 8192  }
  0x2e   :  { %10652 = vsyncadd [#allocation17], 4294959104  ;;  %v6763_v0 = vld [vmem:[#allocation2 + $0x1c0] sm:$0xf]  ;;  %v9665_v2 = vld [vmem:[#allocation2 + $0x1c4] sm:$0xf] }
  0x2f   :  { %v9669_v1 = vld [vmem:[#allocation2 + $0x1dc] sm:$0xf0]  ;;  %v6765_v4 = vld [vmem:[#allocation2 + $0x1e0] sm:$0xf0]  ;;  %v6771_v5 = vld [vmem:[#allocation2 + $0x1c8] sm:$0xf] }
  0x30   :  { %v6764_v3 = vor.u32 %v9669_v1, %v6763_v0  ;;  %v9670_v6 = vld [vmem:[#allocation2 + $0x1e4] sm:$0xf0]  ;;  %v6768_v7 = vor.u32 %v9665_v2, %v6765_v4  ;;  %v9666_v9 = vld [vmem:[#allocation2 + $0x1cc] sm:$0xf]  ;;  %v6731_v11 = vld [vmem:[#allocation2 + $0x180] sm:$0xf] }
  0x31   :  { %v6772_v8 = vor.u32 %v9670_v6, %v6771_v5  ;;  %v6773_v10 = vld [vmem:[#allocation2 + $0x1e8] sm:$0xf0]  ;;  %v9661_v13 = vld [vmem:[#allocation2 + $0x19c] sm:$0xf0]  ;;  %v9657_v14 = vld [vmem:[#allocation2 + $0x184] sm:$0xf] }
  0x32   :  { %605 = vmatpush.bf16.msra.mxu0 %v6764_v3  ;;  %v6776_v12 = vor.u32 %v9666_v9, %v6773_v10  ;;  %v6733_v15 = vld [vmem:[#allocation2 + $0x1a0] sm:$0xf0]  ;;  %618 = vmatpush.bf16.msra.mxu1 %v6768_v7  ;;  %v6732_v16 = vor.u32 %v9661_v13, %v6731_v11  ;;  %v6739_v18 = vld [vmem:[#allocation2 + $0x188] sm:$0xf]  ;;  %v9658_v20 = vld [vmem:[#allocation2 + $0x18c] sm:$0xf] }
  0x33   :  { %631 = vmatpush.bf16.msra.mxu2 %v6772_v8  ;;  %v6736_v17 = vor.u32 %v9657_v14, %v6733_v15  ;;  %v9662_v19 = vld [vmem:[#allocation2 + $0x1a4] sm:$0xf0]  ;;  %v6741_v22 = vld [vmem:[#allocation2 + $0x1a8] sm:$0xf0]  ;;  %v6699_v23 = vld [vmem:[#allocation2 + $0x140] sm:$0xf] }
  0x34   :  { %644 = vmatpush.bf16.msra.mxu3 %v6776_v12  ;;  %v6740_v21 = vor.u32 %v9662_v19, %v6739_v18  ;;  %v9653_v24 = vld [vmem:[#allocation2 + $0x15c] sm:$0xf0]  ;;  %v6744_v25 = vor.u32 %v9658_v20, %v6741_v22  ;;  %v9649_v26 = vld [vmem:[#allocation2 + $0x144] sm:$0xf]  ;;  %v6707_v28 = vld [vmem:[#allocation2 + $0x148] sm:$0xf] }
  0x35   :  { %v6701_v27 = vld [vmem:[#allocation2 + $0x160] sm:$0xf0]  ;;  %v6700_v29 = vor.u32 %v9653_v24, %v6699_v23  ;;  %v9654_v30 = vld [vmem:[#allocation2 + $0x164] sm:$0xf0]  ;;  %v9650_v31 = vld [vmem:[#allocation2 + $0x14c] sm:$0xf] }
  0x36   :  { %606 = vmatpush.bf16.msra.mxu0 %v6732_v16  ;;  %v6709_v32 = vld [vmem:[#allocation2 + $0x168] sm:$0xf0]  ;;  %619 = vmatpush.bf16.msra.mxu1 %v6736_v17  ;;  %v6704_v33 = vor.u32 %v9649_v26, %v6701_v27  ;;  %v6708_v34 = vor.u32 %v9654_v30, %v6707_v28  ;;  %v6667_v35 = vld [vmem:[#allocation2 + $0x100] sm:$0xf]  ;;  %v9641_v37 = vld [vmem:[#allocation2 + $0x104] sm:$0xf] }
  0x37   :  { %632 = vmatpush.bf16.msra.mxu2 %v6740_v21  ;;  %v9645_v36 = vld [vmem:[#allocation2 + $0x11c] sm:$0xf0]  ;;  %v6712_v38 = vor.u32 %v9650_v31, %v6709_v32  ;;  %v6669_v39 = vld [vmem:[#allocation2 + $0x120] sm:$0xf0]  ;;  %v6675_v40 = vld [vmem:[#allocation2 + $0x108] sm:$0xf] }
  0x38   :  { %645 = vmatpush.bf16.msra.mxu3 %v6744_v25  ;;  %v9646_v41 = vld [vmem:[#allocation2 + $0x124] sm:$0xf0]  ;;  %v9642_v42 = vld [vmem:[#allocation2 + $0x10c] sm:$0xf]  ;;  %v6668_v44 = vor.u32 %v9645_v36, %v6667_v35  ;;  %v6672_v45 = vor.u32 %v9641_v37, %v6669_v39  ;;  %v6635_v47 = vld [vmem:[#allocation2 + $0xc0] sm:$0xf] }
  0x39   :  { %v6677_v43 = vld [vmem:[#allocation2 + $0x128] sm:$0xf0]  ;;  %v6676_v46 = vor.u32 %v9646_v41, %v6675_v40  ;;  %v9637_v48 = vld [vmem:[#allocation2 + $0xdc] sm:$0xf0]  ;;  %v9633_v49 = vld [vmem:[#allocation2 + $0xc4] sm:$0xf] }
  0x3a   :  { %607 = vmatpush.bf16.msra.mxu0 %v6700_v29  ;;  %620 = vmatpush.bf16.msra.mxu1 %v6704_v33  ;;  %v6680_v50 = vor.u32 %v9642_v42, %v6677_v43  ;;  %v6637_v51 = vld [vmem:[#allocation2 + $0xe0] sm:$0xf0]  ;;  %v6643_v52 = vld [vmem:[#allocation2 + $0xc8] sm:$0xf]  ;;  %v9634_v54 = vld [vmem:[#allocation2 + $0xcc] sm:$0xf]  ;;  %v6636_v56 = vor.u32 %v9637_v48, %v6635_v47 }
  0x3b   :  { %633 = vmatpush.bf16.msra.mxu2 %v6708_v34  ;;  %v9638_v53 = vld [vmem:[#allocation2 + $0xe4] sm:$0xf0]  ;;  %v6645_v55 = vld [vmem:[#allocation2 + $0xe8] sm:$0xf0]  ;;  %v6640_v57 = vor.u32 %v9633_v49, %v6637_v51  ;;  %v6603_v59 = vld [vmem:[#allocation2 + $0x80] sm:$0xf] }
  0x3c   :  { %646 = vmatpush.bf16.msra.mxu3 %v6712_v38  ;;  %v6644_v58 = vor.u32 %v9638_v53, %v6643_v52  ;;  %v9629_v60 = vld [vmem:[#allocation2 + $0x9c] sm:$0xf0]  ;;  %v9625_v61 = vld [vmem:[#allocation2 + $0x84] sm:$0xf]  ;;  %v6648_v62 = vor.u32 %v9634_v54, %v6645_v55  ;;  %v6611_v0 = vld [vmem:[#allocation2 + $0x88] sm:$0xf] }
  0x3d   :  { %v6605_v63 = vld [vmem:[#allocation2 + $0xa0] sm:$0xf0]  ;;  %v9630_v1 = vld [vmem:[#allocation2 + $0xa4] sm:$0xf0]  ;;  %v9626_v2 = vld [vmem:[#allocation2 + $0x8c] sm:$0xf]  ;;  %v6604_v4 = vor.u32 %v9629_v60, %v6603_v59 }
  0x3e   :  { %608 = vmatpush.bf16.msra.mxu0 %v6668_v44  ;;  %621 = vmatpush.bf16.msra.mxu1 %v6672_v45  ;;  %v6613_v3 = vld [vmem:[#allocation2 + $0xa8] sm:$0xf0]  ;;  %v6608_v5 = vor.u32 %v9625_v61, %v6605_v63  ;;  %v6612_v6 = vor.u32 %v9630_v1, %v6611_v0  ;;  %v6571_v7 = vld [vmem:[#allocation2 + $0x40] sm:$0xf]  ;;  %v9617_v9 = vld [vmem:[#allocation2 + $0x44] sm:$0xf] }
  0x3f   :  { %634 = vmatpush.bf16.msra.mxu2 %v6676_v46  ;;  %v9621_v8 = vld [vmem:[#allocation2 + $0x5c] sm:$0xf0]  ;;  %v6616_v10 = vor.u32 %v9626_v2, %v6613_v3  ;;  %v6573_v11 = vld [vmem:[#allocation2 + $0x60] sm:$0xf0]  ;;  %v6579_v12 = vld [vmem:[#allocation2 + $0x48] sm:$0xf] }
  0x40   :  { %647 = vmatpush.bf16.msra.mxu3 %v6680_v50  ;;  %v9622_v13 = vld [vmem:[#allocation2 + $0x64] sm:$0xf0]  ;;  %v9618_v14 = vld [vmem:[#allocation2 + $0x4c] sm:$0xf]  ;;  %v6572_v16 = vor.u32 %v9621_v8, %v6571_v7  ;;  %v6539_v17 = vld [vmem:[#allocation2] sm:$0xf]  ;;  %v6576_v19 = vor.u32 %v9617_v9, %v6573_v11 }
  0x41   :  { %v6581_v15 = vld [vmem:[#allocation2 + $0x68] sm:$0xf0]  ;;  %v9613_v18 = vld [vmem:[#allocation2 + $0x1c] sm:$0xf0]  ;;  %v6580_v20 = vor.u32 %v9622_v13, %v6579_v12  ;;  %v9609_v21 = vld [vmem:[#allocation2 + $0x4] sm:$0xf] }
  0x42   :  { %609 = vmatpush.bf16.msra.mxu0 %v6636_v56  ;;  %622 = vmatpush.bf16.msra.mxu1 %v6640_v57  ;;  %v6541_v22 = vld [vmem:[#allocation2 + $0x20] sm:$0xf0]  ;;  %v6547_v23 = vld [vmem:[#allocation2 + $0x8] sm:$0xf]  ;;  %v6584_v24 = vor.u32 %v9618_v14, %v6581_v15  ;;  %v9610_v26 = vld [vmem:[#allocation2 + $0xc] sm:$0xf]  ;;  %v6540_v31 = vor.u32 %v9613_v18, %v6539_v17 }
  0x43   :  { %635 = vmatpush.bf16.msra.mxu2 %v6644_v58  ;;  %v9614_v25 = vld [vmem:[#allocation2 + $0x24] sm:$0xf0]  ;;  %v6549_v27 = vld [vmem:[#allocation2 + $0x28] sm:$0xf0]  ;;  %v6779_v28 = vld [vmem:[#allocation2 + $0x1d0] sm:$0xf]  ;;  %v6544_v35 = vor.u32 %v9609_v21, %v6541_v22 }
  0x44   :  { %648 = vmatpush.bf16.msra.mxu3 %v6648_v62  ;;  %v9671_v29 = vld [vmem:[#allocation2 + $0x1ec] sm:$0xf0]  ;;  %v9667_v30 = vld [vmem:[#allocation2 + $0x1d4] sm:$0xf]  ;;  %v6787_v33 = vld [vmem:[#allocation2 + $0x1d8] sm:$0xf]  ;;  %v6548_v36 = vor.u32 %v9614_v25, %v6547_v23  ;;  %v6552_v39 = vor.u32 %v9610_v26, %v6549_v27 }
  0x45   :  { %v6781_v32 = vld [vmem:[#allocation2 + $0x1f0] sm:$0xf0]  ;;  %v9672_v34 = vld [vmem:[#allocation2 + $0x1f4] sm:$0xf0]  ;;  %v9668_v37 = vld [vmem:[#allocation2 + $0x1dc] sm:$0xf]  ;;  %v6780_v40 = vor.u32 %v9671_v29, %v6779_v28 }
  0x46   :  { %610 = vmatpush.bf16.msra.mxu0 %v6604_v4  ;;  %623 = vmatpush.bf16.msra.mxu1 %v6608_v5  ;;  %v6789_v38 = vld [vmem:[#allocation2 + $0x1f8] sm:$0xf0]  ;;  %v6784_v41 = vor.u32 %v9667_v30, %v6781_v32  ;;  %v6788_v42 = vor.u32 %v9672_v34, %v6787_v33  ;;  %v6747_v43 = vld [vmem:[#allocation2 + $0x190] sm:$0xf]  ;;  %v9659_v45 = vld [vmem:[#allocation2 + $0x194] sm:$0xf] }
  0x47   :  { %636 = vmatpush.bf16.msra.mxu2 %v6612_v6  ;;  %v9663_v44 = vld [vmem:[#allocation2 + $0x1ac] sm:$0xf0]  ;;  %v6792_v46 = vor.u32 %v9668_v37, %v6789_v38  ;;  %v6749_v47 = vld [vmem:[#allocation2 + $0x1b0] sm:$0xf0]  ;;  %v6755_v48 = vld [vmem:[#allocation2 + $0x198] sm:$0xf] }
  0x48   :  { %649 = vmatpush.bf16.msra.mxu3 %v6616_v10  ;;  %v9664_v49 = vld [vmem:[#allocation2 + $0x1b4] sm:$0xf0]  ;;  %s11033_s18 = sld [smem:[#allocation24_spill]]  ;;  %v9660_v51 = vld [vmem:[#allocation2 + $0x19c] sm:$0xf]  ;;  %v6748_v53 = vor.u32 %v9663_v44, %v6747_v43  ;;  %v6752_v54 = vor.u32 %v9659_v45, %v6749_v47 }
  0x49   :  { %v6757_v52 = vld [vmem:[#allocation2 + $0x1b8] sm:$0xf0]  ;;  %v6756_v55 = vor.u32 %v9664_v49, %v6755_v48  ;;  %v6715_v56 = vld [vmem:[#allocation2 + $0x150] sm:$0xf]  ;;  %v9651_v58 = vld [vmem:[#allocation2 + $0x154] sm:$0xf] }
  0x4a   :  { %611 = vmatpush.bf16.msra.mxu0 %v6572_v16  ;;  %624 = vmatpush.bf16.msra.mxu1 %v6576_v19  ;;  %v9655_v57 = vld [vmem:[#allocation2 + $0x16c] sm:$0xf0]  ;;  %v6760_v59 = vor.u32 %v9660_v51, %v6757_v52  ;;  %v6717_v60 = vld [vmem:[#allocation2 + $0x170] sm:$0xf0]  ;;  %v6723_v61 = vld [vmem:[#allocation2 + $0x158] sm:$0xf] }
  0x4b   :  { %637 = vmatpush.bf16.msra.mxu2 %v6580_v20  ;;  %v9656_v62 = vld [vmem:[#allocation2 + $0x174] sm:$0xf0]  ;;  %v9652_v63 = vld [vmem:[#allocation2 + $0x15c] sm:$0xf]  ;;  %v6716_v1 = vor.u32 %v9655_v57, %v6715_v56  ;;  %v6720_v2 = vor.u32 %v9651_v58, %v6717_v60  ;;  %v6683_v4 = vld [vmem:[#allocation2 + $0x110] sm:$0xf] }
  0x4c   :  { %650 = vmatpush.bf16.msra.mxu3 %v6584_v24  ;;  %v6725_v0 = vld [vmem:[#allocation2 + $0x178] sm:$0xf0]  ;;  %v6724_v3 = vor.u32 %v9656_v62, %v6723_v61  ;;  %v9647_v5 = vld [vmem:[#allocation2 + $0x12c] sm:$0xf0]  ;;  %v9643_v6 = vld [vmem:[#allocation2 + $0x114] sm:$0xf] }
  0x4d   :  { %v6728_v7 = vor.u32 %v9652_v63, %v6725_v0  ;;  %v6685_v8 = vld [vmem:[#allocation2 + $0x130] sm:$0xf0]  ;;  %v6691_v9 = vld [vmem:[#allocation2 + $0x118] sm:$0xf]  ;;  %v9644_v11 = vld [vmem:[#allocation2 + $0x11c] sm:$0xf]  ;;  %v6684_v13 = vor.u32 %v9647_v5, %v6683_v4 }
  0x4e   :  { %612 = vmatpush.bf16.msra.mxu0 %v6540_v31  ;;  %625 = vmatpush.bf16.msra.mxu1 %v6544_v35  ;;  %v10796_v50 = vld [vmem:[%s11033_s18] sm:$0xf]  ;;  %v9648_v10 = vld [vmem:[#allocation2 + $0x134] sm:$0xf0]  ;;  %v6693_v12 = vld [vmem:[#allocation2 + $0x138] sm:$0xf0]  ;;  %v6688_v14 = vor.u32 %v9643_v6, %v6685_v8 }
  0x4f   :  { %638 = vmatpush.bf16.msra.mxu2 %v6548_v36  ;;  %v6692_v15 = vor.u32 %v9648_v10, %v6691_v9  ;;  %v6651_v16 = vld [vmem:[#allocation2 + $0xd0] sm:$0xf]  ;;  %v9635_v18 = vld [vmem:[#allocation2 + $0xd4] sm:$0xf]  ;;  %v6696_v19 = vor.u32 %v9644_v11, %v6693_v12  ;;  %v6659_v21 = vld [vmem:[#allocation2 + $0xd8] sm:$0xf] }
  0x50   :  { %651 = vmatpush.bf16.msra.mxu3 %v6552_v39  ;;  %v9639_v17 = vld [vmem:[#allocation2 + $0xec] sm:$0xf0]  ;;  %v6653_v20 = vld [vmem:[#allocation2 + $0xf0] sm:$0xf0]  ;;  %v9640_v22 = vld [vmem:[#allocation2 + $0xf4] sm:$0xf0] }
  0x51   :  { %613 = vmatmul.bf16.vlgmr.msra.gmra.mxu0 %v10796_v50  ;;  %626 = vmatmul.bf16.vlgmr.msra.gmra.mxu1 %v10796_v50  ;;  %v9636_v23 = vld [vmem:[#allocation2 + $0xdc] sm:$0xf]  ;;  %v6652_v25 = vor.u32 %v9639_v17, %v6651_v16  ;;  %v6656_v26 = vor.u32 %v9635_v18, %v6653_v20  ;;  %v6660_v27 = vor.u32 %v9640_v22, %v6659_v21  ;;  %v6619_v28 = vld [vmem:[#allocation2 + $0x90] sm:$0xf]  ;;  %v9627_v30 = vld [vmem:[#allocation2 + $0x94] sm:$0xf] }
  0x52   :  { %657 = vmatpush.bf16.msrb.mxu0 %v6780_v40  ;;  %670 = vmatpush.bf16.msrb.mxu1 %v6784_v41  ;;  %v6661_v24 = vld [vmem:[#allocation2 + $0xf8] sm:$0xf0]  ;;  %v9631_v29 = vld [vmem:[#allocation2 + $0xac] sm:$0xf0]  ;;  %v6621_v32 = vld [vmem:[#allocation2 + $0xb0] sm:$0xf0] }
  0x53   :  { %683 = vmatpush.bf16.msrb.mxu2 %v6788_v42  ;;  %652 = vmatmul.bf16.vlgmr.msra.gmra.mxu3 %v10796_v50  ;;  %v6664_v31 = vor.u32 %v9636_v23, %v6661_v24  ;;  %v6627_v33 = vld [vmem:[#allocation2 + $0x98] sm:$0xf]  ;;  %v9628_v35 = vld [vmem:[#allocation2 + $0x9c] sm:$0xf]  ;;  %v6620_v37 = vor.u32 %v9631_v29, %v6619_v28  ;;  %v6624_v38 = vor.u32 %v9627_v30, %v6621_v32  ;;  %v6587_v40 = vld [vmem:[#allocation2 + $0x50] sm:$0xf] }
  0x54   :  { %696 = vmatpush.bf16.msrb.mxu3 %v6792_v46  ;;  %639 = vmatmul.bf16.vlgmr.msra.gmra.mxu2 %v10796_v50  ;;  %v9632_v34 = vld [vmem:[#allocation2 + $0xb4] sm:$0xf0]  ;;  %v6629_v36 = vld [vmem:[#allocation2 + $0xb8] sm:$0xf0]  ;;  %v9623_v41 = vld [vmem:[#allocation2 + $0x6c] sm:$0xf0] }
  0x55   :  { %v6628_v39 = vor.u32 %v9632_v34, %v6627_v33  ;;  %v9619_v42 = vld [vmem:[#allocation2 + $0x54] sm:$0xf]  ;;  %v6632_v43 = vor.u32 %v9628_v35, %v6629_v36  ;;  %v6595_v45 = vld [vmem:[#allocation2 + $0x58] sm:$0xf]  ;;  %v9620_v47 = vld [vmem:[#allocation2 + $0x5c] sm:$0xf]  ;;  %v6588_v49 = vor.u32 %v9623_v41, %v6587_v40 }
  0x56   :  { %658 = vmatpush.bf16.msrb.mxu0 %v6748_v53  ;;  %671 = vmatpush.bf16.msrb.mxu1 %v6752_v54  ;;  %v6589_v44 = vld [vmem:[#allocation2 + $0x70] sm:$0xf0]  ;;  %v9624_v46 = vld [vmem:[#allocation2 + $0x74] sm:$0xf0]  ;;  %v6597_v48 = vld [vmem:[#allocation2 + $0x78] sm:$0xf0] }
  0x57   :  { %684 = vmatpush.bf16.msrb.mxu2 %v6756_v55  ;;  %v6555_v51 = vld [vmem:[#allocation2 + $0x10] sm:$0xf]  ;;  %v6592_v52 = vor.u32 %v9619_v42, %v6589_v44  ;;  %v6596_v53 = vor.u32 %v9624_v46, %v6595_v45  ;;  %v9611_v55 = vld [vmem:[#allocation2 + $0x14] sm:$0xf]  ;;  %v6600_v57 = vor.u32 %v9620_v47, %v6597_v48  ;;  %v6563_v58 = vld [vmem:[#allocation2 + $0x18] sm:$0xf] }
  0x58   :  { %697 = vmatpush.bf16.msrb.mxu3 %v6760_v59  ;;  %v9615_v54 = vld [vmem:[#allocation2 + $0x2c] sm:$0xf0]  ;;  %v6557_v56 = vld [vmem:[#allocation2 + $0x30] sm:$0xf0]  ;;  %v9616_v59 = vld [vmem:[#allocation2 + $0x34] sm:$0xf0] }
  0x59   :  { %v9612_v60 = vld [vmem:[#allocation2 + $0x1c] sm:$0xf]  ;;  %v6907_v62 = vld [vmem:[#allocation4 + $0xe0] sm:$0xf]  ;;  %v9703_v63 = vld [vmem:[#allocation4 + $0xec] sm:$0xf0]  ;;  %v6556_v0 = vor.u32 %v9615_v54, %v6555_v51  ;;  %v6564_v4 = vor.u32 %v9616_v59, %v6563_v58 }
  0x5a   :  { %659 = vmatpush.bf16.msrb.mxu0 %v6716_v1  ;;  %672 = vmatpush.bf16.msrb.mxu1 %v6720_v2  ;;  %v6565_v61 = vld [vmem:[#allocation2 + $0x38] sm:$0xf0]  ;;  %v7035_v1 = vld [vmem:[#allocation4 + $0x1e0] sm:$0xf]  ;;  %v9735_v2 = vld [vmem:[#allocation4 + $0x1ec] sm:$0xf0]  ;;  %v6908_v6 = vor.u32 %v9703_v63, %v6907_v62 }
  0x5b   :  { %685 = vmatpush.bf16.msrb.mxu2 %v6724_v3  ;;  %v6560_v3 = vor.u32 %v9611_v55, %v6557_v56  ;;  %v6568_v5 = vor.u32 %v9612_v60, %v6565_v61  ;;  %v7163_v8 = vld [vmem:[#allocation4 + $0x2e0] sm:$0xf]  ;;  %v9767_v9 = vld [vmem:[#allocation4 + $0x2ec] sm:$0xf0]  ;;  %v7036_v10 = vor.u32 %v9735_v2, %v7035_v1 }
  0x5c   :  { %698 = vmatpush.bf16.msrb.mxu3 %v6728_v7  ;;  %v6891_v7 = vld [vmem:[#allocation4 + $0xc0] sm:$0xf]  ;;  %v9699_v11 = vld [vmem:[#allocation4 + $0xcc] sm:$0xf0]  ;;  %v7164_v16 = vor.u32 %v9767_v9, %v7163_v8 }
  0x5d   :  { %v7291_v12 = vld [vmem:[#allocation4 + $0x3e0] sm:$0xf]  ;;  %v6892_v17 = vor.u32 %v9699_v11, %v6891_v7  ;;  %v9763_v21 = vld [vmem:[#allocation4 + $0x2cc] sm:$0xf0] }
  0x5e   :  { %660 = vmatpush.bf16.msrb.mxu0 %v6684_v13  ;;  %673 = vmatpush.bf16.msrb.mxu1 %v6688_v14  ;;  %v9799_v13 = vld [vmem:[#allocation4 + $0x3ec] sm:$0xf0]  ;;  %v7019_v14 = vld [vmem:[#allocation4 + $0x1c0] sm:$0xf] }
  0x5f   :  { %686 = vmatpush.bf16.msrb.mxu2 %v6692_v15  ;;  %v9731_v15 = vld [vmem:[#allocation4 + $0x1cc] sm:$0xf0]  ;;  %v7292_v18 = vor.u32 %v9799_v13, %v7291_v12  ;;  %v7147_v20 = vld [vmem:[#allocation4 + $0x2c0] sm:$0xf] }
  0x60   :  { %699 = vmatpush.bf16.msrb.mxu3 %v6696_v19  ;;  %v6875_v19 = vld [vmem:[#allocation4 + $0xa0] sm:$0xf]  ;;  %v7020_v22 = vor.u32 %v9731_v15, %v7019_v14  ;;  %v9695_v23 = vld [vmem:[#allocation4 + $0xac] sm:$0xf0]  ;;  %v7148_v28 = vor.u32 %v9763_v21, %v7147_v20 }
  0x61   :  { %v7275_v24 = vld [vmem:[#allocation4 + $0x3c0] sm:$0xf]  ;;  %v6876_v29 = vor.u32 %v9695_v23, %v6875_v19  ;;  %v9759_v33 = vld [vmem:[#allocation4 + $0x2ac] sm:$0xf0] }
  0x62   :  { %661 = vmatpush.bf16.msrb.mxu0 %v6652_v25  ;;  %674 = vmatpush.bf16.msrb.mxu1 %v6656_v26  ;;  %v9795_v25 = vld [vmem:[#allocation4 + $0x3cc] sm:$0xf0]  ;;  %v7003_v26 = vld [vmem:[#allocation4 + $0x1a0] sm:$0xf] }
  0x63   :  { %687 = vmatpush.bf16.msrb.mxu2 %v6660_v27  ;;  %v9727_v27 = vld [vmem:[#allocation4 + $0x1ac] sm:$0xf0]  ;;  %v7276_v30 = vor.u32 %v9795_v25, %v7275_v24  ;;  %v7131_v32 = vld [vmem:[#allocation4 + $0x2a0] sm:$0xf] }
  0x64   :  { %700 = vmatpush.bf16.msrb.mxu3 %v6664_v31  ;;  %v6859_v31 = vld [vmem:[#allocation4 + $0x80] sm:$0xf]  ;;  %v7004_v34 = vor.u32 %v9727_v27, %v7003_v26  ;;  %v9691_v35 = vld [vmem:[#allocation4 + $0x8c] sm:$0xf0]  ;;  %v7132_v40 = vor.u32 %v9759_v33, %v7131_v32 }
  0x65   :  { %v7259_v36 = vld [vmem:[#allocation4 + $0x3a0] sm:$0xf]  ;;  %v6860_v42 = vor.u32 %v9691_v35, %v6859_v31  ;;  %v9755_v45 = vld [vmem:[#allocation4 + $0x28c] sm:$0xf0] }
  0x66   :  { %662 = vmatpush.bf16.msrb.mxu0 %v6620_v37  ;;  %675 = vmatpush.bf16.msrb.mxu1 %v6624_v38  ;;  %v9791_v37 = vld [vmem:[#allocation4 + $0x3ac] sm:$0xf0]  ;;  %v6987_v38 = vld [vmem:[#allocation4 + $0x180] sm:$0xf] }
  0x67   :  { %688 = vmatpush.bf16.msrb.mxu2 %v6628_v39  ;;  %v9723_v39 = vld [vmem:[#allocation4 + $0x18c] sm:$0xf0]  ;;  %v6843_v41 = vld [vmem:[#allocation4 + $0x60] sm:$0xf] }
  0x68   :  { %701 = vmatpush.bf16.msrb.mxu3 %v6632_v43  ;;  %v7260_v43 = vor.u32 %v9791_v37, %v7259_v36  ;;  %v7115_v44 = vld [vmem:[#allocation4 + $0x280] sm:$0xf]  ;;  %v6988_v46 = vor.u32 %v9723_v39, %v6987_v38  ;;  %v9787_v48 = vld [vmem:[#allocation4 + $0x38c] sm:$0xf0] }
  0x69   :  { %v7243_v47 = vld [vmem:[#allocation4 + $0x380] sm:$0xf]  ;;  %v9719_v51 = vld [vmem:[#allocation4 + $0x16c] sm:$0xf0] }
  0x6a   :  { %663 = vmatpush.bf16.msrb.mxu0 %v6588_v49  ;;  %676 = vmatpush.bf16.msrb.mxu1 %v6592_v52  ;;  %v6971_v49 = vld [vmem:[#allocation4 + $0x160] sm:$0xf]  ;;  %v7116_v52 = vor.u32 %v9755_v45, %v7115_v44  ;;  %v7244_v55 = vor.u32 %v9787_v48, %v7243_v47  ;;  %v9683_v59 = vld [vmem:[#allocation4 + $0x4c] sm:$0xf0] }
  0x6b   :  { %689 = vmatpush.bf16.msrb.mxu2 %v6596_v53  ;;  %v6827_v53 = vld [vmem:[#allocation4 + $0x40] sm:$0xf]  ;;  %v6972_v58 = vor.u32 %v9719_v51, %v6971_v49  ;;  %v9783_v61 = vld [vmem:[#allocation4 + $0x36c] sm:$0xf0] }
  0x6c   :  { %702 = vmatpush.bf16.msrb.mxu3 %v6600_v57  ;;  %v7099_v56 = vld [vmem:[#allocation4 + $0x260] sm:$0xf]  ;;  %v9751_v57 = vld [vmem:[#allocation4 + $0x26c] sm:$0xf0]  ;;  %v6828_v1 = vor.u32 %v9683_v59, %v6827_v53 }
  0x6d   :  { %v7227_v60 = vld [vmem:[#allocation4 + $0x360] sm:$0xf]  ;;  %v9715_v63 = vld [vmem:[#allocation4 + $0x14c] sm:$0xf0] }
  0x6e   :  { %664 = vmatpush.bf16.msrb.mxu0 %v6556_v0  ;;  %677 = vmatpush.bf16.msrb.mxu1 %v6560_v3  ;;  %v6955_v62 = vld [vmem:[#allocation4 + $0x140] sm:$0xf]  ;;  %v7100_v0 = vor.u32 %v9751_v57, %v7099_v56  ;;  %v7228_v2 = vor.u32 %v9783_v61, %v7227_v60  ;;  %v9679_v7 = vld [vmem:[#allocation4 + $0x2c] sm:$0xf0] }
  0x6f   :  { %690 = vmatpush.bf16.msrb.mxu2 %v6564_v4  ;;  %v6811_v3 = vld [vmem:[#allocation4 + $0x20] sm:$0xf]  ;;  %v9779_v9 = vld [vmem:[#allocation4 + $0x34c] sm:$0xf0] }
  0x70   :  { %703 = vmatpush.bf16.msrb.mxu3 %v6568_v5  ;;  %v7083_v4 = vld [vmem:[#allocation4 + $0x240] sm:$0xf]  ;;  %v9747_v5 = vld [vmem:[#allocation4 + $0x24c] sm:$0xf0]  ;;  %v6812_v14 = vor.u32 %v9679_v7, %v6811_v3 }
  0x71   :  { %665 = vmatmul.bf16.vlgmr.msrb.gmra.mxu0 %v10796_v50  ;;  %678 = vmatmul.bf16.vlgmr.msrb.gmra.mxu1 %v10796_v50  ;;  %v7211_v8 = vld [vmem:[#allocation4 + $0x340] sm:$0xf]  ;;  %v9711_v11 = vld [vmem:[#allocation4 + $0x12c] sm:$0xf0]  ;;  %v7084_v12 = vor.u32 %v9747_v5, %v7083_v4 }
  0x72   :  { %2287 = vmatpush.bf16.msra.mxu0 %v6908_v6  ;;  %2300 = vmatpush.bf16.msra.mxu1 %v7036_v10  ;;  %v6956_v6 = vor.u32 %v9715_v63, %v6955_v62  ;;  %v6939_v10 = vld [vmem:[#allocation4 + $0x120] sm:$0xf]  ;;  %v7212_v15 = vor.u32 %v9779_v9, %v7211_v8  ;;  %v9707_v23 = vld [vmem:[#allocation4 + $0x10c] sm:$0xf0] }
  0x73   :  { %691 = vmatmul.bf16.vlgmr.msrb.gmra.mxu2 %v10796_v50  ;;  %704 = vmatmul.bf16.vlgmr.msrb.gmra.mxu3 %v10796_v50  ;;  %v9687_v50 = vld [vmem:[#allocation4 + $0x6c] sm:$0xf0]  ;;  %v6795_v13 = vld [vmem:[#allocation4] sm:$0xf]  ;;  %v6940_v19 = vor.u32 %v9711_v11, %v6939_v10 }
  0x74   :  { %2313 = vmatpush.bf16.msra.mxu2 %v7164_v16  ;;  %2326 = vmatpush.bf16.msra.mxu3 %v7292_v18  ;;  %v6844_v54 = vor.u32 %v9687_v50, %v6843_v41  ;;  %v9675_v16 = vld [vmem:[#allocation4 + $0xc] sm:$0xf0]  ;;  %v6923_v20 = vld [vmem:[#allocation4 + $0x100] sm:$0xf] }
  0x75   :  { %v9743_v18 = vld [vmem:[#allocation4 + $0x22c] sm:$0xf0]  ;;  %v7195_v21 = vld [vmem:[#allocation4 + $0x320] sm:$0xf]  ;;  %v6924_v35 = vor.u32 %v9707_v23, %v6923_v20 }
  0x76   :  { %2288 = vmatpush.bf16.msra.mxu0 %v6892_v17  ;;  %2301 = vmatpush.bf16.msra.mxu1 %v7020_v22  ;;  %v7067_v17 = vld [vmem:[#allocation4 + $0x220] sm:$0xf]  ;;  %v9775_v22 = vld [vmem:[#allocation4 + $0x32c] sm:$0xf0] }
  0x77   :  { %v7419_v24 = vld [vmem:[#allocation4 + $0x4e0] sm:$0xf]  ;;  %v9831_v25 = vld [vmem:[#allocation4 + $0x4ec] sm:$0xf0] }
  0x78   :  { %2314 = vmatpush.bf16.msra.mxu2 %v7148_v28  ;;  %2327 = vmatpush.bf16.msra.mxu3 %v7276_v30  ;;  %v7547_v26 = vld [vmem:[#allocation4 + $0x5e0] sm:$0xf]  ;;  %v9863_v27 = vld [vmem:[#allocation4 + $0x5ec] sm:$0xf0]  ;;  %v7068_v28 = vor.u32 %v9743_v18, %v7067_v17  ;;  %v7196_v30 = vor.u32 %v9775_v22, %v7195_v21  ;;  %v7420_v36 = vor.u32 %v9831_v25, %v7419_v24 }
  0x79   :  { %v7403_v31 = vld [vmem:[#allocation4 + $0x4c0] sm:$0xf]  ;;  %v9739_v33 = vld [vmem:[#allocation4 + $0x20c] sm:$0xf0] }
  0x7a   :  { %2289 = vmatpush.bf16.msra.mxu0 %v6876_v29  ;;  %2302 = vmatpush.bf16.msra.mxu1 %v7004_v34  ;;  %v6796_v29 = vor.u32 %v9675_v16, %v6795_v13  ;;  %v7051_v32 = vld [vmem:[#allocation4 + $0x200] sm:$0xf]  ;;  %v9771_v37 = vld [vmem:[#allocation4 + $0x30c] sm:$0xf0] }
  0x7b   :  { %v7179_v34 = vld [vmem:[#allocation4 + $0x300] sm:$0xf]  ;;  %v9895_v39 = vld [vmem:[#allocation4 + $0x6ec] sm:$0xf0]  ;;  %v7052_v45 = vor.u32 %v9739_v33, %v7051_v32 }
  0x7c   :  { %2315 = vmatpush.bf16.msra.mxu2 %v7132_v40  ;;  %2328 = vmatpush.bf16.msra.mxu3 %v7260_v43  ;;  %v7675_v38 = vld [vmem:[#allocation4 + $0x6e0] sm:$0xf]  ;;  %v7548_v40 = vor.u32 %v9863_v27, %v7547_v26  ;;  %v9827_v41 = vld [vmem:[#allocation4 + $0x4cc] sm:$0xf0] }
  0x7d   :  { %v7803_v50 = vld [vmem:[#allocation4 + $0x7e0] sm:$0xf]  ;;  %v9859_v44 = vld [vmem:[#allocation4 + $0x5cc] sm:$0xf0]  ;;  %v7676_v47 = vor.u32 %v9895_v39, %v7675_v38  ;;  %v7404_v48 = vor.u32 %v9827_v41, %v7403_v31 }
  0x7e   :  { %2290 = vmatpush.bf16.msra.mxu0 %v6860_v42  ;;  %2303 = vmatpush.bf16.msra.mxu1 %v6988_v46  ;;  %v9927_v42 = vld [vmem:[#allocation4 + $0x7ec] sm:$0xf0]  ;;  %v7531_v43 = vld [vmem:[#allocation4 + $0x5c0] sm:$0xf]  ;;  %v7180_v46 = vor.u32 %v9771_v37, %v7179_v34 }
  0x7f   :  { %v7804_v49 = vor.u32 %v9927_v42, %v7803_v50  ;;  %v7387_v51 = vld [vmem:[#allocation4 + $0x4a0] sm:$0xf]  ;;  %v9891_v53 = vld [vmem:[#allocation4 + $0x6cc] sm:$0xf0] }
  0x80   :  { %2316 = vmatpush.bf16.msra.mxu2 %v7116_v52  ;;  %2329 = vmatpush.bf16.msra.mxu3 %v7244_v55  ;;  %v7659_v52 = vld [vmem:[#allocation4 + $0x6c0] sm:$0xf]  ;;  %v9823_v55 = vld [vmem:[#allocation4 + $0x4ac] sm:$0xf0] }
  0x81   :  { %v7787_v56 = vld [vmem:[#allocation4 + $0x7c0] sm:$0xf]  ;;  %v9923_v57 = vld [vmem:[#allocation4 + $0x7cc] sm:$0xf0]  ;;  %v7660_v60 = vor.u32 %v9891_v53, %v7659_v52  ;;  %v7388_v61 = vor.u32 %v9823_v55, %v7387_v51 }
  0x82   :  { %2291 = vmatpush.bf16.msra.mxu0 %v6844_v54  ;;  %2304 = vmatpush.bf16.msra.mxu1 %v6972_v58  ;;  %v7532_v54 = vor.u32 %v9859_v44, %v7531_v43  ;;  %v7515_v58 = vld [vmem:[#allocation4 + $0x5a0] sm:$0xf]  ;;  %v9855_v59 = vld [vmem:[#allocation4 + $0x5ac] sm:$0xf0]  ;;  %v7788_v62 = vor.u32 %v9923_v57, %v7787_v56 }
  0x83   :  { %v7371_v63 = vld [vmem:[#allocation4 + $0x480] sm:$0xf]  ;;  %v9819_v3 = vld [vmem:[#allocation4 + $0x48c] sm:$0xf0] }
  0x84   :  { %2317 = vmatpush.bf16.msra.mxu2 %v7100_v0  ;;  %2330 = vmatpush.bf16.msra.mxu3 %v7228_v2  ;;  %v7643_v0 = vld [vmem:[#allocation4 + $0x6a0] sm:$0xf]  ;;  %v7516_v2 = vor.u32 %v9855_v59, %v7515_v58  ;;  %v9919_v5 = vld [vmem:[#allocation4 + $0x7ac] sm:$0xf0]  ;;  %v7372_v9 = vor.u32 %v9819_v3, %v7371_v63 }
  0x85   :  { %v7771_v4 = vld [vmem:[#allocation4 + $0x7a0] sm:$0xf]  ;;  %v9851_v7 = vld [vmem:[#allocation4 + $0x58c] sm:$0xf0] }
  0x86   :  { %2292 = vmatpush.bf16.msra.mxu0 %v6828_v1  ;;  %2305 = vmatpush.bf16.msra.mxu1 %v6956_v6  ;;  %v9887_v1 = vld [vmem:[#allocation4 + $0x6ac] sm:$0xf0]  ;;  %v7499_v6 = vld [vmem:[#allocation4 + $0x580] sm:$0xf]  ;;  %v7772_v10 = vor.u32 %v9919_v5, %v7771_v4 }
  0x87   :  { %v7644_v8 = vor.u32 %v9887_v1, %v7643_v0  ;;  %v7355_v11 = vld [vmem:[#allocation4 + $0x460] sm:$0xf]  ;;  %v9883_v13 = vld [vmem:[#allocation4 + $0x68c] sm:$0xf0] }
  0x88   :  { %2318 = vmatpush.bf16.msra.mxu2 %v7084_v12  ;;  %2331 = vmatpush.bf16.msra.mxu3 %v7212_v15  ;;  %v7627_v12 = vld [vmem:[#allocation4 + $0x680] sm:$0xf]  ;;  %v9815_v15 = vld [vmem:[#allocation4 + $0x46c] sm:$0xf0] }
  0x89   :  { %v7755_v16 = vld [vmem:[#allocation4 + $0x780] sm:$0xf]  ;;  %v9915_v17 = vld [vmem:[#allocation4 + $0x78c] sm:$0xf0]  ;;  %v7628_v20 = vor.u32 %v9883_v13, %v7627_v12  ;;  %v7356_v21 = vor.u32 %v9815_v15, %v7355_v11  ;;  %v9733_v11 = vld [vmem:[#allocation4 + $0x1e4] sm:$0xf] }
  0x8a   :  { %2293 = vmatpush.bf16.msra.mxu0 %v6812_v14  ;;  %2306 = vmatpush.bf16.msra.mxu1 %v6940_v19  ;;  %v7500_v14 = vor.u32 %v9851_v7, %v7499_v6  ;;  %v7483_v18 = vld [vmem:[#allocation4 + $0x560] sm:$0xf]  ;;  %v9847_v19 = vld [vmem:[#allocation4 + $0x56c] sm:$0xf0]  ;;  %v7756_v22 = vor.u32 %v9915_v17, %v7755_v16  ;;  %v7037_v13 = vld [vmem:[#allocation4 + $0x1f0] sm:$0xf0] }
  0x8b   :  { %v7484_v23 = vor.u32 %v9847_v19, %v7483_v18  ;;  %v7339_v24 = vld [vmem:[#allocation4 + $0x440] sm:$0xf]  ;;  %v9811_v25 = vld [vmem:[#allocation4 + $0x44c] sm:$0xf0] }
  0x8c   :  { %2319 = vmatpush.bf16.msra.mxu2 %v7068_v28  ;;  %2332 = vmatpush.bf16.msra.mxu3 %v7196_v30  ;;  %v7467_v26 = vld [vmem:[#allocation4 + $0x540] sm:$0xf]  ;;  %v9843_v27 = vld [vmem:[#allocation4 + $0x54c] sm:$0xf0]  ;;  %v7340_v28 = vor.u32 %v9811_v25, %v7339_v24 }
  0x8d   :  { %v7611_v30 = vld [vmem:[#allocation4 + $0x660] sm:$0xf]  ;;  %v9879_v31 = vld [vmem:[#allocation4 + $0x66c] sm:$0xf0] }
  0x8e   :  { %2294 = vmatpush.bf16.msra.mxu0 %v6796_v29  ;;  %2307 = vmatpush.bf16.msra.mxu1 %v6924_v35  ;;  %v7468_v29 = vor.u32 %v9843_v27, %v7467_v26  ;;  %v7739_v32 = vld [vmem:[#allocation4 + $0x760] sm:$0xf]  ;;  %v7612_v33 = vor.u32 %v9879_v31, %v7611_v30  ;;  %v9911_v34 = vld [vmem:[#allocation4 + $0x76c] sm:$0xf0]  ;;  %v9729_v26 = vld [vmem:[#allocation4 + $0x1c4] sm:$0xf] }
  0x8f   :  { %v7740_v35 = vor.u32 %v9911_v34, %v7739_v32  ;;  %v9807_v37 = vld [vmem:[#allocation4 + $0x42c] sm:$0xf0]  ;;  %v7451_v38 = vld [vmem:[#allocation4 + $0x520] sm:$0xf]  ;;  %v7021_v27 = vld [vmem:[#allocation4 + $0x1d0] sm:$0xf0] }
  0x90   :  { %2320 = vmatpush.bf16.msra.mxu2 %v7052_v45  ;;  %2333 = vmatpush.bf16.msra.mxu3 %v7180_v46  ;;  %v7595_v50 = vld [vmem:[#allocation4 + $0x640] sm:$0xf]  ;;  %v9875_v42 = vld [vmem:[#allocation4 + $0x64c] sm:$0xf0]  ;;  %v9765_v31 = vld [vmem:[#allocation4 + $0x2e4] sm:$0xf] }
  0x91   :  { %v7723_v43 = vld [vmem:[#allocation4 + $0x740] sm:$0xf]  ;;  %v7596_v44 = vor.u32 %v9875_v42, %v7595_v50  ;;  %v9907_v45 = vld [vmem:[#allocation4 + $0x74c] sm:$0xf0]  ;;  %v7165_v32 = vld [vmem:[#allocation4 + $0x2f0] sm:$0xf0] }
  0x92   :  { %2339 = vmatpush.bf16.msrb.mxu0 %v7420_v36  ;;  %2352 = vmatpush.bf16.msrb.mxu1 %v7548_v40  ;;  %v7323_v36 = vld [vmem:[#allocation4 + $0x420] sm:$0xf]  ;;  %v9839_v40 = vld [vmem:[#allocation4 + $0x52c] sm:$0xf0]  ;;  %v7724_v46 = vor.u32 %v9907_v45, %v7723_v43  ;;  %v9725_v50 = vld [vmem:[#allocation4 + $0x1a4] sm:$0xf]  ;;  %v7168_v45 = vor.u32 %v9765_v31, %v7165_v32 }
  0x93   :  { %v7324_v39 = vor.u32 %v9807_v37, %v7323_v36  ;;  %v7452_v41 = vor.u32 %v9839_v40, %v7451_v38  ;;  %v9835_v52 = vld [vmem:[#allocation4 + $0x50c] sm:$0xf0]  ;;  %v7707_v56 = vld [vmem:[#allocation4 + $0x720] sm:$0xf]  ;;  %v7293_v37 = vld [vmem:[#allocation4 + $0x3f0] sm:$0xf0] }
  0x94   :  { %2365 = vmatpush.bf16.msrb.mxu2 %v7676_v47  ;;  %2378 = vmatpush.bf16.msrb.mxu3 %v7804_v49  ;;  %v7307_v47 = vld [vmem:[#allocation4 + $0x400] sm:$0xf]  ;;  %v9871_v55 = vld [vmem:[#allocation4 + $0x62c] sm:$0xf0]  ;;  %v9693_v38 = vld [vmem:[#allocation4 + $0xa4] sm:$0xf] }
  0x95   :  { %v7435_v49 = vld [vmem:[#allocation4 + $0x500] sm:$0xf]  ;;  %v9903_v58 = vld [vmem:[#allocation4 + $0x72c] sm:$0xf0]  ;;  %v7005_v43 = vld [vmem:[#allocation4 + $0x1b0] sm:$0xf0] }
  0x96   :  { %2340 = vmatpush.bf16.msrb.mxu0 %v7404_v48  ;;  %2353 = vmatpush.bf16.msrb.mxu1 %v7532_v54  ;;  %v9803_v48 = vld [vmem:[#allocation4 + $0x40c] sm:$0xf0]  ;;  %v7436_v53 = vor.u32 %v9835_v52, %v7435_v49  ;;  %v7579_v54 = vld [vmem:[#allocation4 + $0x620] sm:$0xf]  ;;  %v7708_v59 = vor.u32 %v9903_v58, %v7707_v56  ;;  %v7149_v52 = vld [vmem:[#allocation4 + $0x2d0] sm:$0xf0] }
  0x97   :  { %v7308_v51 = vor.u32 %v9803_v48, %v7307_v47  ;;  %v7580_v57 = vor.u32 %v9871_v55, %v7579_v54  ;;  %v7691_v63 = vld [vmem:[#allocation4 + $0x700] sm:$0xf]  ;;  %v9899_v0 = vld [vmem:[#allocation4 + $0x70c] sm:$0xf0]  ;;  %v7008_v55 = vor.u32 %v9725_v50, %v7005_v43  ;;  %v7277_v56 = vld [vmem:[#allocation4 + $0x3d0] sm:$0xf0] }
  0x98   :  { %2366 = vmatpush.bf16.msrb.mxu2 %v7660_v60  ;;  %2379 = vmatpush.bf16.msrb.mxu3 %v7788_v62  ;;  %v7563_v60 = vld [vmem:[#allocation4 + $0x600] sm:$0xf]  ;;  %v7692_v1 = vor.u32 %v9899_v0, %v7691_v63  ;;  %v6861_v58 = vld [vmem:[#allocation4 + $0x90] sm:$0xf0]  ;;  %v9781_v32 = vld [vmem:[#allocation4 + $0x364] sm:$0xf] }
  0x99   :  { %v7101_v31 = vld [vmem:[#allocation4 + $0x270] sm:$0xf0] }
  0x9a   :  { %2341 = vmatpush.bf16.msrb.mxu0 %v7388_v61  ;;  %2354 = vmatpush.bf16.msrb.mxu1 %v7516_v2  ;;  %v9867_v61 = vld [vmem:[#allocation4 + $0x60c] sm:$0xf0]  ;;  %v10809_v2 = vld [vmem:[%s11017_s2] sm:$0xff]  ;;  %v7085_v50 = vld [vmem:[#allocation4 + $0x250] sm:$0xf0] }
  0x9b   :  { %v7564_v62 = vor.u32 %v9867_v61, %v7563_v60  ;;  %v269_v3 = vperm.slane %v10809_v2, 0  ;;  %v270_v4 = vperm.slane %v10809_v2, 1  ;;  %v271_v15 = vperm.slane %v10809_v2, 2  ;;  %v9721_v60 = vld [vmem:[#allocation4 + $0x184] sm:$0xf] }
  0x9c   :  { %2367 = vmatpush.bf16.msrb.mxu2 %v7644_v8  ;;  %2380 = vmatpush.bf16.msrb.mxu3 %v7772_v10  ;;  %v6909_v10 = vld [vmem:[#allocation4 + $0xf0] sm:$0xf0]  ;;  %v272_v17 = vperm.slane %v10809_v2, 3 }
  0x9d   :  { %v6989_v61 = vld [vmem:[#allocation4 + $0x190] sm:$0xf0] }
  0x9e   :  { %2342 = vmatpush.bf16.msrb.mxu0 %v7372_v9  ;;  %2355 = vmatpush.bf16.msrb.mxu1 %v7500_v14  ;;  %v9701_v9 = vld [vmem:[#allocation4 + $0xe4] sm:$0xf] }
  0x9f   :  { %v6912_v18 = vor.u32 %v9701_v9, %v6909_v10  ;;  %v6845_v9 = vld [vmem:[#allocation4 + $0x70] sm:$0xf0]  ;;  %v9717_v10 = vld [vmem:[#allocation4 + $0x164] sm:$0xf] }
  0xa0   :  { %2368 = vmatpush.bf16.msrb.mxu2 %v7628_v20  ;;  %2381 = vmatpush.bf16.msrb.mxu3 %v7756_v22  ;;  %v9697_v22 = vld [vmem:[#allocation4 + $0xc4] sm:$0xf] }
  0xa2   :  { %2343 = vmatpush.bf16.msrb.mxu0 %v7356_v21  ;;  %2356 = vmatpush.bf16.msrb.mxu1 %v7484_v23  ;;  %v7040_v21 = vor.u32 %v9733_v11, %v7037_v13  ;;  %v6893_v23 = vld [vmem:[#allocation4 + $0xd0] sm:$0xf0] }
  0xa3   :  { %v6896_v36 = vor.u32 %v9697_v22, %v6893_v23  ;;  %v6973_v11 = vld [vmem:[#allocation4 + $0x170] sm:$0xf0]  ;;  %v9713_v23 = vld [vmem:[#allocation4 + $0x144] sm:$0xf] }
  0xa4   :  { %2369 = vmatpush.bf16.msrb.mxu2 %v7612_v33  ;;  %2382 = vmatpush.bf16.msrb.mxu3 %v7740_v35  ;;  %v9797_v33 = vld [vmem:[#allocation4 + $0x3e4] sm:$0xf]  ;;  %v6829_v22 = vld [vmem:[#allocation4 + $0x50] sm:$0xf0] }
  0xa5   :  { %v7296_v48 = vor.u32 %v9797_v33, %v7293_v37  ;;  %v274_v37 = vperm.slane %v10809_v2, 5 }
  0xa6   :  { %2344 = vmatpush.bf16.msrb.mxu0 %v7340_v28  ;;  %2357 = vmatpush.bf16.msrb.mxu1 %v7468_v29 }
  0xa8   :  { %2370 = vmatpush.bf16.msrb.mxu2 %v7596_v44  ;;  %2383 = vmatpush.bf16.msrb.mxu3 %v7724_v46 }
  0xaa   :  { %2345 = vmatpush.bf16.msrb.mxu0 %v7324_v39  ;;  %2358 = vmatpush.bf16.msrb.mxu1 %v7452_v41  ;;  %v6877_v39 = vld [vmem:[#allocation4 + $0xb0] sm:$0xf0]  ;;  %v7024_v41 = vor.u32 %v9729_v26, %v7021_v27  ;;  %v273_v27 = vperm.slane %v10809_v2, 4 }
  0xab   :  { %v6880_v49 = vor.u32 %v9693_v38, %v6877_v39  ;;  %v9709_v38 = vld [vmem:[#allocation4 + $0x124] sm:$0xf]  ;;  %v6941_v39 = vld [vmem:[#allocation4 + $0x130] sm:$0xf0] }
  0xac   :  { %2371 = vmatpush.bf16.msrb.mxu2 %v7580_v57  ;;  %2384 = vmatpush.bf16.msrb.mxu3 %v7708_v59  ;;  %v9689_v57 = vld [vmem:[#allocation4 + $0x84] sm:$0xf] }
  0xae   :  { %2346 = vmatpush.bf16.msrb.mxu0 %v7308_v51  ;;  %2359 = vmatpush.bf16.msrb.mxu1 %v7436_v53  ;;  %v9761_v51 = vld [vmem:[#allocation4 + $0x2c4] sm:$0xf] }
  0xaf   :  { %v9793_v53 = vld [vmem:[#allocation4 + $0x3c4] sm:$0xf]  ;;  %v7152_v63 = vor.u32 %v9761_v51, %v7149_v52 }
  0xb0   :  { %2372 = vmatpush.bf16.msrb.mxu2 %v7564_v62  ;;  %2385 = vmatpush.bf16.msrb.mxu3 %v7692_v1  ;;  %v7280_v0 = vor.u32 %v9793_v53, %v7277_v56  ;;  %v6864_v1 = vor.u32 %v9689_v57, %v6861_v58  ;;  %v6944_v53 = vor.u32 %v9709_v38, %v6941_v39  ;;  %v6925_v56 = vld [vmem:[#allocation4 + $0x110] sm:$0xf0]  ;;  %v9829_v57 = vld [vmem:[#allocation4 + $0x4e4] sm:$0xf] }
  0xce   :  { %v614_v5 = vpop.f32.mrf.mxu0  ;;  %v627_v7 = vpop.f32.mrf.mxu1 }
  0xcf   :  { %v615_v6 = vadd.f32 %v614_v5, %v269_v3  ;;  %v628_v8 = vadd.f32 %v627_v7, %v270_v4  ;;  %v9757_v3 = vld [vmem:[#allocation4 + $0x2a4] sm:$0xf]  ;;  %v7133_v4 = vld [vmem:[#allocation4 + $0x2b0] sm:$0xf0] }
  0xd0   :  { %v9789_v5 = vld [vmem:[#allocation4 + $0x3a4] sm:$0xf]  ;;  %v7261_v7 = vld [vmem:[#allocation4 + $0x3b0] sm:$0xf0] }
  0xd1   :  { %vm709_vm0 = vcmp.gt.f32.partialorder %v615_v6, 0.0  ;;  %v717_v12 = vmul.f32 0.01, %v615_v6  ;;  %vm710_vm1 = vcmp.gt.f32.partialorder %v628_v8, 0.0  ;;  %v718_v14 = vmul.f32 0.01, %v628_v8 }
  0xd2   :  { %v7264_v13 = vor.u32 %v9789_v5, %v7261_v7 }
  0xd3   :  { %v725_v16 = vsel %vm709_vm0, %v615_v6, %v717_v12  ;;  %v726_v20 = vsel %vm710_vm1, %v628_v8, %v718_v14  ;;  %v6992_v6 = vor.u32 %v9721_v60, %v6989_v61  ;;  %v9685_v8 = vld [vmem:[#allocation4 + $0x64] sm:$0xf]  ;;  %v7136_v12 = vor.u32 %v9757_v3, %v7133_v4  ;;  %v7549_v61 = vld [vmem:[#allocation4 + $0x5f0] sm:$0xf0] }
  0xd4   :  { %v10815_v19 = vpack.c.bf16 %v725_v16, %v725_v16  ;;  %v10817_v24 = vpack.c.bf16 %v726_v20, %v726_v20  ;;  %v6848_v14 = vor.u32 %v9685_v8, %v6845_v9  ;;  %v7117_v16 = vld [vmem:[#allocation4 + $0x290] sm:$0xf0]  ;;  %v9861_v60 = vld [vmem:[#allocation4 + $0x5e4] sm:$0xf]  ;;  %v275_v4 = vperm.slane %v10809_v2, 6 }
  0xd5   :  { %v7245_v20 = vld [vmem:[#allocation4 + $0x390] sm:$0xf0]  ;;  %v276_v8 = vperm.slane %v10809_v2, 7 }
  0xd6   :  { %v653_v29 = vpop.f32.mrf.mxu3  ;;  %v616_v30 = vpop.f32.mrf.mxu0  ;;  %2295 = vmatmul.bf16.vlgmr.msra.gmra.mxu0 %v10815_v19  ;;  %2308 = vmatmul.bf16.vlgmr.msra.gmra.mxu1 %v10817_v24 }
  0xd7   :  { %v640_v25 = vpop.f32.mrf.mxu2  ;;  %v654_v34 = vadd.f32 %v653_v29, %v272_v17  ;;  %2391 = vmatpush.bf16.msra.mxu0 %v6912_v18  ;;  %v629_v35 = vpop.f32.mrf.mxu1  ;;  %2404 = vmatpush.bf16.msra.mxu1 %v7040_v21  ;;  %v9785_v17 = vld [vmem:[#allocation4 + $0x384] sm:$0xf]  ;;  %v6976_v18 = vor.u32 %v9717_v10, %v6973_v11  ;;  %v7197_v11 = vld [vmem:[#allocation4 + $0x330] sm:$0xf0] }
  0xd8   :  { %v641_v28 = vadd.f32 %v640_v25, %v271_v15  ;;  %v9753_v15 = vld [vmem:[#allocation4 + $0x284] sm:$0xf]  ;;  %v6957_v25 = vld [vmem:[#allocation4 + $0x150] sm:$0xf0] }
  0xd9   :  { %vm712_vm3 = vcmp.gt.f32.partialorder %v654_v34, 0.0  ;;  %v720_v42 = vmul.f32 0.01, %v654_v34  ;;  %v9681_v21 = vld [vmem:[#allocation4 + $0x44] sm:$0xf]  ;;  %v7120_v26 = vor.u32 %v9753_v15, %v7117_v16  ;;  %v6960_v33 = vor.u32 %v9713_v23, %v6957_v25 }
  0xda   :  { %vm711_vm2 = vcmp.gt.f32.partialorder %v641_v28, 0.0  ;;  %v719_v40 = vmul.f32 0.01, %v641_v28  ;;  %v6832_v29 = vor.u32 %v9681_v21, %v6829_v22  ;;  %v9749_v30 = vld [vmem:[#allocation4 + $0x264] sm:$0xf]  ;;  %v7552_v21 = vor.u32 %v9861_v60, %v7549_v61 }
  0xdb   :  { %v728_v47 = vsel %vm712_vm3, %v654_v34, %v720_v42  ;;  %2392 = vmatpush.bf16.msra.mxu0 %v6896_v36  ;;  %2405 = vmatpush.bf16.msra.mxu1 %v7024_v41  ;;  %v7229_v34 = vld [vmem:[#allocation4 + $0x370] sm:$0xf0]  ;;  %v9677_v35 = vld [vmem:[#allocation4 + $0x24] sm:$0xf] }
  0xdc   :  { %v727_v44 = vsel %vm711_vm2, %v641_v28, %v719_v40  ;;  %v10823_v54 = vpack.c.bf16 %v728_v47, %v728_v47  ;;  %v7248_v28 = vor.u32 %v9785_v17, %v7245_v20  ;;  %v6813_v36 = vld [vmem:[#allocation4 + $0x30] sm:$0xf0]  ;;  %v7104_v40 = vor.u32 %v9749_v30, %v7101_v31  ;;  %v9745_v41 = vld [vmem:[#allocation4 + $0x244] sm:$0xf] }
  0xdd   :  { %v10821_v46 = vpack.c.bf16 %v727_v44, %v727_v44  ;;  %v9777_v42 = vld [vmem:[#allocation4 + $0x344] sm:$0xf]  ;;  %v7232_v44 = vor.u32 %v9781_v32, %v7229_v34  ;;  %v7213_v47 = vld [vmem:[#allocation4 + $0x350] sm:$0xf0] }
  0xde   :  { %v655_v62 = vpop.f32.mrf.mxu3  ;;  %2334 = vmatmul.bf16.vlgmr.msra.gmra.mxu3 %v10823_v54  ;;  %v9773_v10 = vld [vmem:[#allocation4 + $0x324] sm:$0xf]  ;;  %v7405_v16 = vld [vmem:[#allocation4 + $0x4d0] sm:$0xf0] }
  0xdf   :  { %v642_v59 = vpop.f32.mrf.mxu2  ;;  %2321 = vmatmul.bf16.vlgmr.msra.gmra.mxu2 %v10821_v46  ;;  %2430 = vmatpush.bf16.msra.mxu3 %v7296_v48  ;;  %v9673_v48 = vld [vmem:[#allocation4 + $0x4] sm:$0xf]  ;;  %v7533_v23 = vld [vmem:[#allocation4 + $0x5d0] sm:$0xf0] }
  0xe0   :  { %2417 = vmatpush.bf16.msra.mxu2 %v7168_v45  ;;  %2393 = vmatpush.bf16.msra.mxu0 %v6880_v49  ;;  %v6816_v45 = vor.u32 %v9677_v35, %v6813_v36  ;;  %v6797_v49 = vld [vmem:[#allocation4 + $0x10] sm:$0xf0]  ;;  %v9825_v15 = vld [vmem:[#allocation4 + $0x4c4] sm:$0xf] }
  0xe1   :  { %2406 = vmatpush.bf16.msra.mxu1 %v7008_v55  ;;  %v9705_v55 = vld [vmem:[#allocation4 + $0x104] sm:$0xf]  ;;  %v7421_v59 = vld [vmem:[#allocation4 + $0x4f0] sm:$0xf0]  ;;  %v6800_v5 = vor.u32 %v9673_v48, %v6797_v49  ;;  %v7408_v39 = vor.u32 %v9825_v15, %v7405_v16 }
  0xe2   :  { %v6928_v9 = vor.u32 %v9705_v55, %v6925_v56  ;;  %v9857_v17 = vld [vmem:[#allocation4 + $0x5c4] sm:$0xf]  ;;  %v7181_v31 = vld [vmem:[#allocation4 + $0x310] sm:$0xf0] }
  0xe3   :  { %2431 = vmatpush.bf16.msra.mxu3 %v7280_v0  ;;  %v7216_v0 = vor.u32 %v9777_v42, %v7213_v47  ;;  %v9737_v25 = vld [vmem:[#allocation4 + $0x204] sm:$0xf]  ;;  %v7677_v35 = vld [vmem:[#allocation4 + $0x6f0] sm:$0xf0] }
  0xe4   :  { %2418 = vmatpush.bf16.msra.mxu2 %v7152_v63  ;;  %2394 = vmatpush.bf16.msra.mxu0 %v6864_v1  ;;  %v7088_v63 = vor.u32 %v9745_v41, %v7085_v50  ;;  %v9741_v1 = vld [vmem:[#allocation4 + $0x224] sm:$0xf]  ;;  %v7536_v50 = vor.u32 %v9857_v17, %v7533_v23  ;;  %v7517_v48 = vld [vmem:[#allocation4 + $0x5b0] sm:$0xf0] }
  0xe5   :  { %2407 = vmatpush.bf16.msra.mxu1 %v6992_v6  ;;  %v7069_v6 = vld [vmem:[#allocation4 + $0x230] sm:$0xf0]  ;;  %v9769_v30 = vld [vmem:[#allocation4 + $0x304] sm:$0xf] }
  0xe6   :  { %v7072_v22 = vor.u32 %v9741_v1, %v7069_v6  ;;  %v9893_v32 = vld [vmem:[#allocation4 + $0x6e4] sm:$0xf]  ;;  %v7357_v15 = vld [vmem:[#allocation4 + $0x470] sm:$0xf0] }
  0xe7   :  { %2432 = vmatpush.bf16.msra.mxu3 %v7264_v13  ;;  %v9925_v36 = vld [vmem:[#allocation4 + $0x7e4] sm:$0xf]  ;;  %v7485_v17 = vld [vmem:[#allocation4 + $0x570] sm:$0xf0] }
  0xe8   :  { %2419 = vmatpush.bf16.msra.mxu2 %v7136_v12  ;;  %2395 = vmatpush.bf16.msra.mxu0 %v6848_v14  ;;  %v7424_v14 = vor.u32 %v9829_v57, %v7421_v59  ;;  %v9853_v47 = vld [vmem:[#allocation4 + $0x5a4] sm:$0xf]  ;;  %v7629_v23 = vld [vmem:[#allocation4 + $0x690] sm:$0xf0] }
  0xe9   :  { %2408 = vmatpush.bf16.msra.mxu1 %v6976_v18  ;;  %v9889_v57 = vld [vmem:[#allocation4 + $0x6c4] sm:$0xf]  ;;  %v7520_v61 = vor.u32 %v9853_v47, %v7517_v48  ;;  %v7597_v47 = vld [vmem:[#allocation4 + $0x650] sm:$0xf0] }
  0xea   :  { %v9921_v59 = vld [vmem:[#allocation4 + $0x7c4] sm:$0xf] }
  0xeb   :  { %2433 = vmatpush.bf16.msra.mxu3 %v7248_v28  ;;  %v9845_v16 = vld [vmem:[#allocation4 + $0x564] sm:$0xf] }
  0xec   :  { %2420 = vmatpush.bf16.msra.mxu2 %v7120_v26  ;;  %2396 = vmatpush.bf16.msra.mxu0 %v6832_v29  ;;  %v7053_v26 = vld [vmem:[#allocation4 + $0x210] sm:$0xf0]  ;;  %v7200_v29 = vor.u32 %v9773_v10, %v7197_v11  ;;  %v9917_v11 = vld [vmem:[#allocation4 + $0x7a4] sm:$0xf] }
  0xed   :  { %2409 = vmatpush.bf16.msra.mxu1 %v6960_v33  ;;  %v7056_v42 = vor.u32 %v9737_v25, %v7053_v26  ;;  %v7488_v26 = vor.u32 %v9845_v16, %v7485_v17  ;;  %v9905_v48 = vld [vmem:[#allocation4 + $0x744] sm:$0xf]  ;;  %v9732_v16 = vld [vmem:[#allocation4 + $0x1d4] sm:$0xf0] }
  0xee   :  { %v666_v43 = vpop.f32.mrf.mxu0  ;;  %v679_v52 = vpop.f32.mrf.mxu1 }
  0xef   :  { %v667_v51 = vadd.f32 %v666_v43, %v273_v27  ;;  %v680_v58 = vadd.f32 %v679_v52, %v274_v37  ;;  %2434 = vmatpush.bf16.msra.mxu3 %v7232_v44  ;;  %v7805_v37 = vld [vmem:[#allocation4 + $0x7f0] sm:$0xf0]  ;;  %v7680_v52 = vor.u32 %v9893_v32, %v7677_v35 }
  0xf0   :  { %2421 = vmatpush.bf16.msra.mxu2 %v7104_v40  ;;  %2397 = vmatpush.bf16.msra.mxu0 %v6816_v45  ;;  %v9821_v40 = vld [vmem:[#allocation4 + $0x4a4] sm:$0xf]  ;;  %v7389_v43 = vld [vmem:[#allocation4 + $0x4b0] sm:$0xf0]  ;;  %v7184_v45 = vor.u32 %v9769_v30, %v7181_v31  ;;  %v7808_v55 = vor.u32 %v9925_v36, %v7805_v37 }
  0xf1   :  { %vm713_vm4 = vcmp.gt.f32.partialorder %v667_v51, 0.0  ;;  %v721_v62 = vmul.f32 0.01, %v667_v51  ;;  %vm714_vm5 = vcmp.gt.f32.partialorder %v680_v58, 0.0  ;;  %v722_v3 = vmul.f32 0.01, %v680_v58  ;;  %2410 = vmatpush.bf16.msra.mxu1 %v6944_v53 }
  0xf2   :  { %v7392_v56 = vor.u32 %v9821_v40, %v7389_v43  ;;  %v9841_v30 = vld [vmem:[#allocation4 + $0x544] sm:$0xf]  ;;  %v7469_v31 = vld [vmem:[#allocation4 + $0x550] sm:$0xf0] }
  0xf3   :  { %v729_v7 = vsel %vm713_vm4, %v667_v51, %v721_v62  ;;  %v730_v13 = vsel %vm714_vm5, %v680_v58, %v722_v3  ;;  %2435 = vmatpush.bf16.msra.mxu3 %v7216_v0  ;;  %v7661_v58 = vld [vmem:[#allocation4 + $0x6d0] sm:$0xf0]  ;;  %v9849_v3 = vld [vmem:[#allocation4 + $0x584] sm:$0xf]  ;;  %v7472_v37 = vor.u32 %v9841_v30, %v7469_v31  ;;  %v6883_v30 = vld [vmem:[#allocation4 + $0xa8] sm:$0xf] }
  0xf4   :  { %v10831_v12 = vpack.c.bf16 %v729_v7, %v729_v7  ;;  %v10833_v18 = vpack.c.bf16 %v730_v13, %v730_v13  ;;  %2422 = vmatpush.bf16.msra.mxu2 %v7088_v63  ;;  %2398 = vmatpush.bf16.msra.mxu0 %v6800_v5  ;;  %v7789_v62 = vld [vmem:[#allocation4 + $0x7d0] sm:$0xf0]  ;;  %v9817_v63 = vld [vmem:[#allocation4 + $0x484] sm:$0xf]  ;;  %v7664_v5 = vor.u32 %v9889_v57, %v7661_v58 }
  0xf5   :  { %2411 = vmatpush.bf16.msra.mxu1 %v6928_v9  ;;  %v7373_v0 = vld [vmem:[#allocation4 + $0x490] sm:$0xf0]  ;;  %v7792_v6 = vor.u32 %v9921_v59, %v7789_v62  ;;  %v9805_v40 = vld [vmem:[#allocation4 + $0x424] sm:$0xf]  ;;  %v9704_v62 = vld [vmem:[#allocation4 + $0xf4] sm:$0xf0] }
  0xf6   :  { %v692_v20 = vpop.f32.mrf.mxu2  ;;  %v705_v27 = vpop.f32.mrf.mxu3  ;;  %2347 = vmatmul.bf16.vlgmr.msrb.gmra.mxu0 %v10831_v12  ;;  %2360 = vmatmul.bf16.vlgmr.msrb.gmra.mxu1 %v10833_v18  ;;  %v7376_v7 = vor.u32 %v9817_v63, %v7373_v0  ;;  %v7645_v9 = vld [vmem:[#allocation4 + $0x6b0] sm:$0xf0]  ;;  %v9833_v58 = vld [vmem:[#allocation4 + $0x504] sm:$0xf]  ;;  %v7043_v63 = vld [vmem:[#allocation4 + $0x1e8] sm:$0xf] }
  0xf7   :  { %v693_v2 = vadd.f32 %v692_v20, %v275_v4  ;;  %v668_v28 = vpop.f32.mrf.mxu0  ;;  %v706_v33 = vadd.f32 %v705_v27, %v276_v8  ;;  %v681_v34 = vpop.f32.mrf.mxu1  ;;  %2436 = vmatpush.bf16.msra.mxu3 %v7200_v29  ;;  %v7501_v4 = vld [vmem:[#allocation4 + $0x590] sm:$0xf0]  ;;  %v9885_v8 = vld [vmem:[#allocation4 + $0x6a4] sm:$0xf]  ;;  %v9736_v0 = vld [vmem:[#allocation4 + $0x1f4] sm:$0xf0] }
  0xf8   :  { %2443 = vmatpush.bf16.msrb.mxu0 %v7424_v14  ;;  %2423 = vmatpush.bf16.msra.mxu2 %v7072_v22  ;;  %v7504_v10 = vor.u32 %v9849_v3, %v7501_v4  ;;  %v7773_v13 = vld [vmem:[#allocation4 + $0x7b0] sm:$0xf0]  ;;  %v9813_v14 = vld [vmem:[#allocation4 + $0x464] sm:$0xf]  ;;  %v7648_v20 = vor.u32 %v9885_v8, %v7645_v9 }
  0xf9   :  { %vm715_vm6 = vcmp.gt.f32.partialorder %v693_v2, 0.0  ;;  %v723_v38 = vmul.f32 0.01, %v693_v2  ;;  %vm716_vm7 = vcmp.gt.f32.partialorder %v706_v33, 0.0  ;;  %v724_v41 = vmul.f32 0.01, %v706_v33  ;;  %2456 = vmatpush.bf16.msrb.mxu1 %v7552_v21 }
  0xfa   :  { %v7776_v21 = vor.u32 %v9917_v11, %v7773_v13  ;;  %v9881_v22 = vld [vmem:[#allocation4 + $0x684] sm:$0xf]  ;;  %v7360_v25 = vor.u32 %v9813_v14, %v7357_v15  ;;  %v7757_v27 = vld [vmem:[#allocation4 + $0x790] sm:$0xf0]  ;;  %v6899_v11 = vld [vmem:[#allocation4 + $0xc8] sm:$0xf] }
  0xfb   :  { %v731_v44 = vsel %vm715_vm6, %v693_v2, %v723_v38  ;;  %v732_v51 = vsel %vm716_vm7, %v706_v33, %v724_v41  ;;  %2437 = vmatpush.bf16.msra.mxu3 %v7184_v45  ;;  %v9913_v2 = vld [vmem:[#allocation4 + $0x784] sm:$0xf]  ;;  %v7341_v29 = vld [vmem:[#allocation4 + $0x450] sm:$0xf0]  ;;  %v7632_v32 = vor.u32 %v9881_v22, %v7629_v23  ;;  %v9700_v14 = vld [vmem:[#allocation4 + $0xd4] sm:$0xf0] }
  0xfc   :  { %v10837_v49 = vpack.c.bf16 %v731_v44, %v731_v44  ;;  %v10839_v53 = vpack.c.bf16 %v732_v51, %v732_v51  ;;  %2444 = vmatpush.bf16.msrb.mxu0 %v7408_v39  ;;  %2424 = vmatpush.bf16.msra.mxu2 %v7056_v42  ;;  %v9809_v28 = vld [vmem:[#allocation4 + $0x444] sm:$0xf]  ;;  %v7760_v33 = vor.u32 %v9913_v2, %v7757_v27  ;;  %v7613_v35 = vld [vmem:[#allocation4 + $0x670] sm:$0xf0]  ;;  %v7027_v15 = vld [vmem:[#allocation4 + $0x1c8] sm:$0xf] }
  0xfd   :  { %2457 = vmatpush.bf16.msrb.mxu1 %v7536_v50  ;;  %v9877_v34 = vld [vmem:[#allocation4 + $0x664] sm:$0xf]  ;;  %v7344_v36 = vor.u32 %v9809_v28, %v7341_v29  ;;  %v7741_v39 = vld [vmem:[#allocation4 + $0x770] sm:$0xf0]  ;;  %v6900_v2 = vor.u32 %v9700_v14, %v6899_v11  ;;  %v7028_v27 = vor.u32 %v9732_v16, %v7027_v15  ;;  %v7299_v28 = vld [vmem:[#allocation4 + $0x3e8] sm:$0xf] }
  0xfe   :  { %v694_v60 = vpop.f32.mrf.mxu2  ;;  %v707_v1 = vpop.f32.mrf.mxu3  ;;  %2373 = vmatmul.bf16.vlgmr.msrb.gmra.mxu2 %v10837_v49  ;;  %2386 = vmatmul.bf16.vlgmr.msrb.gmra.mxu3 %v10839_v53  ;;  %v9909_v38 = vld [vmem:[#allocation4 + $0x764] sm:$0xf]  ;;  %v7325_v41 = vld [vmem:[#allocation4 + $0x430] sm:$0xf0]  ;;  %v7616_v43 = vor.u32 %v9877_v34, %v7613_v35  ;;  %v9800_v29 = vld [vmem:[#allocation4 + $0x3f4] sm:$0xf0] }
  0xff   :  { %2482 = vmatpush.bf16.msrb.mxu3 %v7808_v55  ;;  %v9837_v50 = vld [vmem:[#allocation4 + $0x524] sm:$0xf]  ;;  %v7453_v42 = vld [vmem:[#allocation4 + $0x530] sm:$0xf0]  ;;  %v7744_v44 = vor.u32 %v9909_v38, %v7741_v39  ;;  %v7328_v51 = vor.u32 %v9805_v40, %v7325_v41  ;;  %v6915_v60 = vld [vmem:[#allocation4 + $0xe8] sm:$0xf] }
 0x100   :  { %2469 = vmatpush.bf16.msrb.mxu2 %v7680_v52  ;;  %2445 = vmatpush.bf16.msrb.mxu0 %v7392_v56  ;;  %v9873_v45 = vld [vmem:[#allocation4 + $0x644] sm:$0xf]  ;;  %v7456_v52 = vor.u32 %v9837_v50, %v7453_v42  ;;  %v7725_v55 = vld [vmem:[#allocation4 + $0x750] sm:$0xf0]  ;;  %v6916_v9 = vor.u32 %v9704_v62, %v6915_v60  ;;  %v9728_v34 = vld [vmem:[#allocation4 + $0x1b4] sm:$0xf0] }
 0x101   :  { %2458 = vmatpush.bf16.msrb.mxu1 %v7520_v61  ;;  %v9801_v56 = vld [vmem:[#allocation4 + $0x404] sm:$0xf]  ;;  %v7309_v57 = vld [vmem:[#allocation4 + $0x410] sm:$0xf0]  ;;  %v7600_v61 = vor.u32 %v9873_v45, %v7597_v47  ;;  %v7728_v1 = vor.u32 %v9905_v48, %v7725_v55  ;;  %v7155_v38 = vld [vmem:[#allocation4 + $0x2c8] sm:$0xf] }
 0x102   :  { %v7437_v59 = vld [vmem:[#allocation4 + $0x510] sm:$0xf0]  ;;  %v9869_v3 = vld [vmem:[#allocation4 + $0x624] sm:$0xf]  ;;  %v9764_v39 = vld [vmem:[#allocation4 + $0x2d4] sm:$0xf0] }
 0x103   :  { %2483 = vmatpush.bf16.msrb.mxu3 %v7792_v6  ;;  %v7581_v4 = vld [vmem:[#allocation4 + $0x630] sm:$0xf0]  ;;  %v7440_v6 = vor.u32 %v9833_v58, %v7437_v59  ;;  %v9897_v22 = vld [vmem:[#allocation4 + $0x704] sm:$0xf]  ;;  %v7283_v50 = vld [vmem:[#allocation4 + $0x3c8] sm:$0xf]  ;;  %v7156_v48 = vor.u32 %v9764_v39, %v7155_v38 }
 0x104   :  { %2470 = vmatpush.bf16.msrb.mxu2 %v7664_v5  ;;  %2446 = vmatpush.bf16.msrb.mxu0 %v7376_v7  ;;  %v7312_v5 = vor.u32 %v9801_v56, %v7309_v57  ;;  %v9901_v7 = vld [vmem:[#allocation4 + $0x724] sm:$0xf]  ;;  %v7709_v8 = vld [vmem:[#allocation4 + $0x730] sm:$0xf0]  ;;  %v7584_v13 = vor.u32 %v9869_v3, %v7581_v4  ;;  %v9796_v42 = vld [vmem:[#allocation4 + $0x3d4] sm:$0xf0] }
 0x105   :  { %2459 = vmatpush.bf16.msrb.mxu1 %v7504_v10  ;;  %v7044_v10 = vor.u32 %v9736_v0, %v7043_v63  ;;  %v7712_v17 = vor.u32 %v9901_v7, %v7709_v8  ;;  %v7693_v23 = vld [vmem:[#allocation4 + $0x710] sm:$0xf0]  ;;  %v6995_v45 = vld [vmem:[#allocation4 + $0x188] sm:$0xf]  ;;  %v9724_v47 = vld [vmem:[#allocation4 + $0x194] sm:$0xf0] }
 0x106   :  { %2399 = vmatmul.bf16.vlgmr.msra.gmra.mxu0 %v10815_v19  ;;  %2412 = vmatmul.bf16.vlgmr.msra.gmra.mxu1 %v10817_v24  ;;  %v7696_v35 = vor.u32 %v9897_v22, %v7693_v23  ;;  %v9760_v55 = vld [vmem:[#allocation4 + $0x2b4] sm:$0xf0]  ;;  %v6996_v57 = vor.u32 %v9724_v47, %v6995_v45  ;;  %v7267_v58 = vld [vmem:[#allocation4 + $0x3a8] sm:$0xf] }
 0x107   :  { %2484 = vmatpush.bf16.msrb.mxu3 %v7776_v21  ;;  %v7565_v21 = vld [vmem:[#allocation4 + $0x610] sm:$0xf0]  ;;  %v9792_v59 = vld [vmem:[#allocation4 + $0x3b4] sm:$0xf0]  ;;  %v6851_v60 = vld [vmem:[#allocation4 + $0x68] sm:$0xf] }
 0x108   :  { %2471 = vmatpush.bf16.msrb.mxu2 %v7648_v20  ;;  %2447 = vmatpush.bf16.msrb.mxu0 %v7360_v25  ;;  %v9865_v20 = vld [vmem:[#allocation4 + $0x604] sm:$0xf]  ;;  %v7171_v25 = vld [vmem:[#allocation4 + $0x2e8] sm:$0xf]  ;;  %v9720_v63 = vld [vmem:[#allocation4 + $0x174] sm:$0xf0] }
 0x109   :  { %2460 = vmatpush.bf16.msrb.mxu1 %v7488_v26  ;;  %v9768_v26 = vld [vmem:[#allocation4 + $0x2f4] sm:$0xf0]  ;;  %v7568_v31 = vor.u32 %v9865_v20, %v7565_v21  ;;  %v6979_v62 = vld [vmem:[#allocation4 + $0x168] sm:$0xf] }
 0x10a   :  { %v7123_v3 = vld [vmem:[#allocation4 + $0x288] sm:$0xf]  ;;  %v9756_v4 = vld [vmem:[#allocation4 + $0x294] sm:$0xf0] }
 0x10b   :  { %2485 = vmatpush.bf16.msrb.mxu3 %v7760_v33  ;;  %v7011_v33 = vld [vmem:[#allocation4 + $0x1a8] sm:$0xf]  ;;  %v9788_v8 = vld [vmem:[#allocation4 + $0x394] sm:$0xf0]  ;;  %v7124_v14 = vor.u32 %v9756_v4, %v7123_v3 }
 0x10c   :  { %2472 = vmatpush.bf16.msrb.mxu2 %v7632_v32  ;;  %2448 = vmatpush.bf16.msrb.mxu0 %v7344_v36  ;;  %v9696_v32 = vld [vmem:[#allocation4 + $0xb4] sm:$0xf0]  ;;  %v7172_v36 = vor.u32 %v9768_v26, %v7171_v25  ;;  %v7012_v41 = vor.u32 %v9728_v34, %v7011_v33  ;;  %v7251_v7 = vld [vmem:[#allocation4 + $0x388] sm:$0xf] }
 0x10d   :  { %2461 = vmatpush.bf16.msrb.mxu1 %v7472_v37  ;;  %v7300_v37 = vor.u32 %v9800_v29, %v7299_v28  ;;  %v6884_v40 = vor.u32 %v9696_v32, %v6883_v30  ;;  %v6963_v11 = vld [vmem:[#allocation4 + $0x148] sm:$0xf]  ;;  %v7252_v15 = vor.u32 %v9788_v8, %v7251_v7  ;;  %v9784_v23 = vld [vmem:[#allocation4 + $0x374] sm:$0xf0] }
 0x10e   :  { %2425 = vmatmul.bf16.vlgmr.msra.gmra.mxu2 %v10821_v46  ;;  %2438 = vmatmul.bf16.vlgmr.msra.gmra.mxu3 %v10823_v54  ;;  %v7107_v16 = vld [vmem:[#allocation4 + $0x268] sm:$0xf]  ;;  %v9680_v26 = vld [vmem:[#allocation4 + $0x34] sm:$0xf0] }
 0x10f   :  { %2486 = vmatpush.bf16.msrb.mxu3 %v7744_v44  ;;  %v9692_v44 = vld [vmem:[#allocation4 + $0x94] sm:$0xf0]  ;;  %v7235_v22 = vld [vmem:[#allocation4 + $0x368] sm:$0xf] }
 0x110   :  { %2473 = vmatpush.bf16.msrb.mxu2 %v7616_v43  ;;  %2449 = vmatpush.bf16.msrb.mxu0 %v7328_v51  ;;  %v6867_v43 = vld [vmem:[#allocation4 + $0x88] sm:$0xf]  ;;  %v7284_v51 = vor.u32 %v9796_v42, %v7283_v50  ;;  %v7236_v29 = vor.u32 %v9784_v23, %v7235_v22  ;;  %v9708_v39 = vld [vmem:[#allocation4 + $0x114] sm:$0xf0] }
 0x111   :  { %2462 = vmatpush.bf16.msrb.mxu1 %v7456_v52  ;;  %v7139_v52 = vld [vmem:[#allocation4 + $0x2a8] sm:$0xf]  ;;  %v6868_v56 = vor.u32 %v9692_v44, %v6867_v43  ;;  %v9832_v50 = vld [vmem:[#allocation4 + $0x4f4] sm:$0xf0] }
 0x112   :  { %v7140_v0 = vor.u32 %v9760_v55, %v7139_v52  ;;  %v6819_v25 = vld [vmem:[#allocation4 + $0x28] sm:$0xf]  ;;  %v9864_v43 = vld [vmem:[#allocation4 + $0x5f4] sm:$0xf0] }
 0x113   :  { %2487 = vmatpush.bf16.msrb.mxu3 %v7728_v1  ;;  %v7268_v1 = vor.u32 %v9792_v59, %v7267_v58  ;;  %v7091_v30 = vld [vmem:[#allocation4 + $0x248] sm:$0xf]  ;;  %v6820_v33 = vor.u32 %v9680_v26, %v6819_v25  ;;  %v9744_v47 = vld [vmem:[#allocation4 + $0x234] sm:$0xf0] }
 0x114   :  { %2474 = vmatpush.bf16.msrb.mxu2 %v7600_v61  ;;  %2450 = vmatpush.bf16.msrb.mxu0 %v7312_v5  ;;  %v9688_v61 = vld [vmem:[#allocation4 + $0x74] sm:$0xf0]  ;;  %v7219_v32 = vld [vmem:[#allocation4 + $0x348] sm:$0xf] }
 0x115   :  { %2463 = vmatpush.bf16.msrb.mxu1 %v7440_v6  ;;  %v6852_v5 = vor.u32 %v9688_v61, %v6851_v60  ;;  %v6980_v6 = vor.u32 %v9720_v63, %v6979_v62  ;;  %v6931_v38 = vld [vmem:[#allocation4 + $0x108] sm:$0xf]  ;;  %v9776_v55 = vld [vmem:[#allocation4 + $0x334] sm:$0xf0] }
 0x116   :  { %v7555_v42 = vld [vmem:[#allocation4 + $0x5e8] sm:$0xf]  ;;  %v9828_v60 = vld [vmem:[#allocation4 + $0x4d4] sm:$0xf0] }
 0x117   :  { %2488 = vmatpush.bf16.msrb.mxu3 %v7712_v17  ;;  %2451 = vmatmul.bf16.vlgmr.msrb.gmra.mxu0 %v10831_v12  ;;  %v9752_v17 = vld [vmem:[#allocation4 + $0x274] sm:$0xf0]  ;;  %v7075_v45 = vld [vmem:[#allocation4 + $0x228] sm:$0xf] }
 0x118   :  { %2495 = vmatpush.bf16.msra.mxu0 %v6916_v9  ;;  %2475 = vmatpush.bf16.msrb.mxu2 %v7584_v13  ;;  %v6835_v9 = vld [vmem:[#allocation4 + $0x48] sm:$0xf]  ;;  %v9716_v13 = vld [vmem:[#allocation4 + $0x154] sm:$0xf0]  ;;  %v7108_v28 = vor.u32 %v9752_v17, %v7107_v16  ;;  %v7076_v59 = vor.u32 %v9744_v47, %v7075_v45 }
 0x119   :  { %2508 = vmatpush.bf16.msra.mxu1 %v7044_v10  ;;  %v9684_v10 = vld [vmem:[#allocation4 + $0x54] sm:$0xf0]  ;;  %v6964_v21 = vor.u32 %v9716_v13, %v6963_v11  ;;  %v7203_v52 = vld [vmem:[#allocation4 + $0x328] sm:$0xf] }
 0x11a   :  { %2464 = vmatmul.bf16.vlgmr.msrb.gmra.mxu1 %v10833_v18  ;;  %v6836_v20 = vor.u32 %v9684_v10, %v6835_v9  ;;  %v7411_v58 = vld [vmem:[#allocation4 + $0x4c8] sm:$0xf]  ;;  %v9860_v62 = vld [vmem:[#allocation4 + $0x5d4] sm:$0xf0]  ;;  %v7204_v63 = vor.u32 %v9776_v55, %v7203_v52 }
 0x11b   :  { %2489 = vmatpush.bf16.msrb.mxu3 %v7696_v35  ;;  %v9780_v35 = vld [vmem:[#allocation4 + $0x354] sm:$0xf0]  ;;  %v7539_v61 = vld [vmem:[#allocation4 + $0x5c8] sm:$0xf]  ;;  %v7412_v7 = vor.u32 %v9828_v60, %v7411_v58 }
 0x11c   :  { %2496 = vmatpush.bf16.msra.mxu0 %v6900_v2  ;;  %2476 = vmatpush.bf16.msrb.mxu2 %v7568_v31  ;;  %v6947_v2 = vld [vmem:[#allocation4 + $0x128] sm:$0xf]  ;;  %v9748_v31 = vld [vmem:[#allocation4 + $0x254] sm:$0xf0]  ;;  %v7220_v44 = vor.u32 %v9780_v35, %v7219_v32  ;;  %v7540_v8 = vor.u32 %v9860_v62, %v7539_v61 }
 0x11d   :  { %2509 = vmatpush.bf16.msra.mxu1 %v7028_v27  ;;  %v9712_v27 = vld [vmem:[#allocation4 + $0x134] sm:$0xf0]  ;;  %v7187_v3 = vld [vmem:[#allocation4 + $0x308] sm:$0xf] }
 0x11e   :  { %2490 = vmatmul.bf16.vlgmr.msrb.gmra.mxu3 %v10839_v53  ;;  %v6948_v34 = vor.u32 %v9712_v27, %v6947_v2  ;;  %v9772_v4 = vld [vmem:[#allocation4 + $0x314] sm:$0xf0]  ;;  %v7811_v9 = vld [vmem:[#allocation4 + $0x7e8] sm:$0xf] }
 0x11f   :  { %2534 = vmatpush.bf16.msra.mxu3 %v7300_v37  ;;  %2477 = vmatmul.bf16.vlgmr.msrb.gmra.mxu2 %v10837_v49  ;;  %v9676_v37 = vld [vmem:[#allocation4 + $0x14] sm:$0xf0]  ;;  %v7395_v13 = vld [vmem:[#allocation4 + $0x4a8] sm:$0xf] }
 0x120   :  { %2521 = vmatpush.bf16.msra.mxu2 %v7172_v36  ;;  %2497 = vmatpush.bf16.msra.mxu0 %v6884_v40  ;;  %v6803_v36 = vld [vmem:[#allocation4 + $0x8] sm:$0xf]  ;;  %v9928_v10 = vld [vmem:[#allocation4 + $0x7f4] sm:$0xf0] }
 0x121   :  { %2510 = vmatpush.bf16.msra.mxu1 %v7012_v41  ;;  %v7427_v40 = vld [vmem:[#allocation4 + $0x4e8] sm:$0xf]  ;;  %v7092_v41 = vor.u32 %v9748_v31, %v7091_v30  ;;  %v9892_v23 = vld [vmem:[#allocation4 + $0x6d4] sm:$0xf0] }
 0x122   :  { %v7523_v17 = vld [vmem:[#allocation4 + $0x5a8] sm:$0xf]  ;;  %v9924_v2 = vld [vmem:[#allocation4 + $0x7d4] sm:$0xf0] }
 0x123   :  { %2535 = vmatpush.bf16.msra.mxu3 %v7284_v51  ;;  %v6932_v51 = vor.u32 %v9708_v39, %v6931_v38  ;;  %v7667_v22 = vld [vmem:[#allocation4 + $0x6c8] sm:$0xf]  ;;  %v9852_v32 = vld [vmem:[#allocation4 + $0x594] sm:$0xf0] }
 0x124   :  { %2522 = vmatpush.bf16.msra.mxu2 %v7156_v48  ;;  %2498 = vmatpush.bf16.msra.mxu0 %v6868_v56  ;;  %v6804_v48 = vor.u32 %v9676_v37, %v6803_v36  ;;  %v7428_v56 = vor.u32 %v9832_v50, %v7427_v40  ;;  %v7795_v26 = vld [vmem:[#allocation4 + $0x7c8] sm:$0xf]  ;;  %v7668_v30 = vor.u32 %v9892_v23, %v7667_v22  ;;  %v9888_v35 = vld [vmem:[#allocation4 + $0x6b4] sm:$0xf0] }
 0x125   :  { %2511 = vmatpush.bf16.msra.mxu1 %v6996_v57  ;;  %v7556_v57 = vor.u32 %v9864_v43, %v7555_v42  ;;  %v7507_v31 = vld [vmem:[#allocation4 + $0x588] sm:$0xf]  ;;  %v9920_v38 = vld [vmem:[#allocation4 + $0x7b4] sm:$0xf0] }
 0x126   :  { %v7779_v37 = vld [vmem:[#allocation4 + $0x7a8] sm:$0xf]  ;;  %v7508_v39 = vor.u32 %v9852_v32, %v7507_v31  ;;  %v9848_v43 = vld [vmem:[#allocation4 + $0x574] sm:$0xf0] }
 0x127   :  { %2536 = vmatpush.bf16.msra.mxu3 %v7268_v1  ;;  %v9740_v1 = vld [vmem:[#allocation4 + $0x214] sm:$0xf0]  ;;  %v7363_v40 = vld [vmem:[#allocation4 + $0x468] sm:$0xf] }
 0x128   :  { %2523 = vmatpush.bf16.msra.mxu2 %v7140_v0  ;;  %2499 = vmatpush.bf16.msra.mxu0 %v6852_v5  ;;  %v7059_v0 = vld [vmem:[#allocation4 + $0x208] sm:$0xf]  ;;  %v9884_v47 = vld [vmem:[#allocation4 + $0x694] sm:$0xf0] }
 0x129   :  { %2512 = vmatpush.bf16.msra.mxu1 %v6980_v6  ;;  %v7683_v5 = vld [vmem:[#allocation4 + $0x6e8] sm:$0xf]  ;;  %v9896_v6 = vld [vmem:[#allocation4 + $0x6f4] sm:$0xf0]  ;;  %v7060_v11 = vor.u32 %v9740_v1, %v7059_v0 }
 0x12a   :  { %v7684_v16 = vor.u32 %v9896_v6, %v7683_v5  ;;  %v7491_v42 = vld [vmem:[#allocation4 + $0x568] sm:$0xf]  ;;  %v9916_v52 = vld [vmem:[#allocation4 + $0x794] sm:$0xf0] }
 0x12b   :  { %2537 = vmatpush.bf16.msra.mxu3 %v7252_v15  ;;  %v7188_v15 = vor.u32 %v9772_v4, %v7187_v3  ;;  %v7635_v45 = vld [vmem:[#allocation4 + $0x688] sm:$0xf]  ;;  %v7492_v55 = vor.u32 %v9848_v43, %v7491_v42  ;;  %v9844_v60 = vld [vmem:[#allocation4 + $0x554] sm:$0xf0] }
 0x12c   :  { %2524 = vmatpush.bf16.msra.mxu2 %v7124_v14  ;;  %2500 = vmatpush.bf16.msra.mxu0 %v6836_v20  ;;  %v9824_v14 = vld [vmem:[#allocation4 + $0x4b4] sm:$0xf0]  ;;  %v7636_v58 = vor.u32 %v9884_v47, %v7635_v45  ;;  %v7619_v62 = vld [vmem:[#allocation4 + $0x668] sm:$0xf] }
 0x12d   :  { %2513 = vmatpush.bf16.msra.mxu1 %v6964_v21  ;;  %v9856_v20 = vld [vmem:[#allocation4 + $0x5b4] sm:$0xf0]  ;;  %v7812_v21 = vor.u32 %v9928_v10, %v7811_v9  ;;  %v7396_v25 = vor.u32 %v9824_v14, %v7395_v13  ;;  %v7747_v1 = vld [vmem:[#allocation4 + $0x768] sm:$0xf] }
 0x12e   :  { %v7524_v27 = vor.u32 %v9856_v20, %v7523_v17  ;;  %v9912_v3 = vld [vmem:[#allocation4 + $0x774] sm:$0xf0]  ;;  %v7331_v5 = vld [vmem:[#allocation4 + $0x428] sm:$0xf] }
 0x12f   :  { %2538 = vmatpush.bf16.msra.mxu3 %v7236_v29  ;;  %v9820_v29 = vld [vmem:[#allocation4 + $0x494] sm:$0xf0]  ;;  %v7748_v10 = vor.u32 %v9912_v3, %v7747_v1  ;;  %v7315_v17 = vld [vmem:[#allocation4 + $0x408] sm:$0xf]  ;;  %v9762_v3 = vld [vmem:[#allocation4 + $0x2cc] sm:$0xf] }
 0x130   :  { %2525 = vmatpush.bf16.msra.mxu2 %v7108_v28  ;;  %2501 = vmatpush.bf16.msra.mxu0 %v6820_v33  ;;  %v7379_v28 = vld [vmem:[#allocation4 + $0x488] sm:$0xf]  ;;  %v7796_v33 = vor.u32 %v9924_v2, %v7795_v26  ;;  %v9808_v6 = vld [vmem:[#allocation4 + $0x434] sm:$0xf0]  ;;  %v9702_v26 = vld [vmem:[#allocation4 + $0xec] sm:$0xf] }
 0x131   :  { %2514 = vmatpush.bf16.msra.mxu1 %v6948_v34  ;;  %v7651_v34 = vld [vmem:[#allocation4 + $0x6a8] sm:$0xf]  ;;  %v7380_v36 = vor.u32 %v9820_v29, %v7379_v28  ;;  %v9840_v9 = vld [vmem:[#allocation4 + $0x534] sm:$0xf0]  ;;  %v7332_v14 = vor.u32 %v9808_v6, %v7331_v5  ;;  %v6917_v2 = vld [vmem:[#allocation4 + $0xf8] sm:$0xf0] }
 0x132   :  { %v7652_v50 = vor.u32 %v9888_v35, %v7651_v34  ;;  %v9876_v13 = vld [vmem:[#allocation4 + $0x654] sm:$0xf0]  ;;  %v7443_v22 = vld [vmem:[#allocation4 + $0x508] sm:$0xf]  ;;  %v7045_v29 = vld [vmem:[#allocation4 + $0x1f8] sm:$0xf0] }
 0x133   :  { %2539 = vmatpush.bf16.msra.mxu3 %v7220_v44  ;;  %v7780_v44 = vor.u32 %v9920_v38, %v7779_v37  ;;  %v9836_v23 = vld [vmem:[#allocation4 + $0x514] sm:$0xf0]  ;;  %v9698_v37 = vld [vmem:[#allocation4 + $0xcc] sm:$0xf]  ;;  %v7571_v43 = vld [vmem:[#allocation4 + $0x608] sm:$0xf] }
 0x134   :  { %2526 = vmatpush.bf16.msra.mxu2 %v7092_v41  ;;  %2502 = vmatpush.bf16.msra.mxu0 %v6804_v48  ;;  %v9816_v41 = vld [vmem:[#allocation4 + $0x474] sm:$0xf0]  ;;  %v7444_v35 = vor.u32 %v9836_v23, %v7443_v22  ;;  %v7699_v45 = vld [vmem:[#allocation4 + $0x708] sm:$0xf]  ;;  %v9794_v6 = vld [vmem:[#allocation4 + $0x3cc] sm:$0xf] }
 0x135   :  { %2515 = vmatpush.bf16.msra.mxu1 %v6932_v51  ;;  %v7364_v48 = vor.u32 %v9816_v41, %v7363_v40  ;;  %v7763_v51 = vld [vmem:[#allocation4 + $0x788] sm:$0xf]  ;;  %v9872_v31 = vld [vmem:[#allocation4 + $0x634] sm:$0xf0]  ;;  %v6901_v40 = vld [vmem:[#allocation4 + $0xd8] sm:$0xf0] }
 0x136   :  { %v7764_v61 = vor.u32 %v9916_v52, %v7763_v51  ;;  %v9904_v34 = vld [vmem:[#allocation4 + $0x734] sm:$0xf0]  ;;  %v9730_v41 = vld [vmem:[#allocation4 + $0x1cc] sm:$0xf]  ;;  %v7173_v51 = vld [vmem:[#allocation4 + $0x2f8] sm:$0xf0]  ;;  %v6904_v52 = vor.u32 %v9698_v37, %v6901_v40 }
 0x137   :  { %2540 = vmatpush.bf16.msra.mxu3 %v7204_v63  ;;  %2503 = vmatmul.bf16.vlgmr.msra.gmra.mxu0 %v10815_v19  ;;  %v9880_v63 = vld [vmem:[#allocation4 + $0x674] sm:$0xf0]  ;;  %v9790_v23 = vld [vmem:[#allocation4 + $0x3ac] sm:$0xf] }
 0x138   :  { %2547 = vmatpush.bf16.msrb.mxu0 %v7428_v56  ;;  %2527 = vmatpush.bf16.msra.mxu2 %v7076_v59  ;;  %v7347_v56 = vld [vmem:[#allocation4 + $0x448] sm:$0xf]  ;;  %v9900_v47 = vld [vmem:[#allocation4 + $0x714] sm:$0xf0] }
 0x139   :  { %2560 = vmatpush.bf16.msrb.mxu1 %v7556_v57  ;;  %v9812_v57 = vld [vmem:[#allocation4 + $0x454] sm:$0xf0]  ;;  %v7475_v59 = vld [vmem:[#allocation4 + $0x548] sm:$0xf] }
 0x13a   :  { %2516 = vmatmul.bf16.vlgmr.msra.gmra.mxu1 %v10817_v24  ;;  %v7348_v0 = vor.u32 %v9812_v57, %v7347_v56  ;;  %v7476_v4 = vor.u32 %v9844_v60, %v7475_v59  ;;  %v7301_v56 = vld [vmem:[#allocation4 + $0x3f8] sm:$0xf0]  ;;  %v9694_v59 = vld [vmem:[#allocation4 + $0xac] sm:$0xf] }
 0x13b   :  { %2541 = vmatpush.bf16.msra.mxu3 %v7188_v15  ;;  %v7731_v15 = vld [vmem:[#allocation4 + $0x748] sm:$0xf]  ;;  %v6885_v60 = vld [vmem:[#allocation4 + $0xb8] sm:$0xf0] }
 0x13c   :  { %2548 = vmatpush.bf16.msrb.mxu0 %v7412_v7  ;;  %2528 = vmatpush.bf16.msra.mxu2 %v7060_v11  ;;  %v7620_v7 = vor.u32 %v9880_v63, %v7619_v62  ;;  %v7603_v11 = vld [vmem:[#allocation4 + $0x648] sm:$0xf]  ;;  %v9726_v63 = vld [vmem:[#allocation4 + $0x1ac] sm:$0xf]  ;;  %v6888_v5 = vor.u32 %v9694_v59, %v6885_v60  ;;  %v6949_v60 = vld [vmem:[#allocation4 + $0x138] sm:$0xf0] }
 0x13d   :  { %2561 = vmatpush.bf16.msrb.mxu1 %v7540_v8  ;;  %v7459_v8 = vld [vmem:[#allocation4 + $0x528] sm:$0xf]  ;;  %v9710_v59 = vld [vmem:[#allocation4 + $0x12c] sm:$0xf] }
 0x13e   :  { %2542 = vmatmul.bf16.vlgmr.msra.gmra.mxu3 %v10823_v54  ;;  %v7460_v20 = vor.u32 %v9840_v9, %v7459_v8  ;;  %v9690_v9 = vld [vmem:[#allocation4 + $0x8c] sm:$0xf] }
 0x13f   :  { %2586 = vmatpush.bf16.msrb.mxu3 %v7812_v21  ;;  %2529 = vmatmul.bf16.vlgmr.msra.gmra.mxu2 %v10821_v46  ;;  %v9804_v21 = vld [vmem:[#allocation4 + $0x414] sm:$0xf0] }
 0x140   :  { %2573 = vmatpush.bf16.msrb.mxu2 %v7684_v16  ;;  %2549 = vmatpush.bf16.msrb.mxu0 %v7396_v25  ;;  %v9908_v16 = vld [vmem:[#allocation4 + $0x754] sm:$0xf0]  ;;  %v7604_v25 = vor.u32 %v9876_v13, %v7603_v11  ;;  %v7316_v32 = vor.u32 %v9804_v21, %v7315_v17  ;;  %v7141_v21 = vld [vmem:[#allocation4 + $0x2b8] sm:$0xf0] }
 0x141   :  { %2562 = vmatpush.bf16.msrb.mxu1 %v7524_v27  ;;  %v9734_v27 = vld [vmem:[#allocation4 + $0x1ec] sm:$0xf]  ;;  %v7732_v28 = vor.u32 %v9908_v16, %v7731_v15  ;;  %v6997_v15 = vld [vmem:[#allocation4 + $0x198] sm:$0xf0] }
 0x142   :  { %v7048_v38 = vor.u32 %v9734_v27, %v7045_v29  ;;  %v6853_v27 = vld [vmem:[#allocation4 + $0x78] sm:$0xf0]  ;;  %v9718_v29 = vld [vmem:[#allocation4 + $0x16c] sm:$0xf] }
 0x143   :  { %2587 = vmatpush.bf16.msrb.mxu3 %v7796_v33  ;;  %v7715_v33 = vld [vmem:[#allocation4 + $0x728] sm:$0xf] }
 0x144   :  { %2574 = vmatpush.bf16.msrb.mxu2 %v7668_v30  ;;  %2550 = vmatpush.bf16.msrb.mxu0 %v7380_v36  ;;  %v7587_v30 = vld [vmem:[#allocation4 + $0x628] sm:$0xf]  ;;  %v6920_v36 = vor.u32 %v9702_v26, %v6917_v2  ;;  %v7716_v42 = vor.u32 %v9904_v34, %v7715_v33  ;;  %v9686_v2 = vld [vmem:[#allocation4 + $0x6c] sm:$0xf]  ;;  %v7125_v33 = vld [vmem:[#allocation4 + $0x298] sm:$0xf0] }
 0x145   :  { %2563 = vmatpush.bf16.msrb.mxu1 %v7508_v39  ;;  %v7588_v39 = vor.u32 %v9872_v31, %v7587_v30  ;;  %v6981_v30 = vld [vmem:[#allocation4 + $0x178] sm:$0xf0]  ;;  %v6856_v34 = vor.u32 %v9686_v2, %v6853_v27 }
 0x146   :  { %v6984_v37 = vor.u32 %v9718_v29, %v6981_v30  ;;  %v7205_v2 = vld [vmem:[#allocation4 + $0x338] sm:$0xf0]  ;;  %v9826_v29 = vld [vmem:[#allocation4 + $0x4cc] sm:$0xf] }
 0x147   :  { %2588 = vmatpush.bf16.msrb.mxu3 %v7780_v44  ;;  %v9868_v44 = vld [vmem:[#allocation4 + $0x614] sm:$0xf0] }
 0x148   :  { %2575 = vmatpush.bf16.msrb.mxu2 %v7652_v50  ;;  %2551 = vmatpush.bf16.msrb.mxu0 %v7364_v48  ;;  %v7029_v50 = vld [vmem:[#allocation4 + $0x1d8] sm:$0xf0]  ;;  %v9766_v48 = vld [vmem:[#allocation4 + $0x2ec] sm:$0xf] }
 0x149   :  { %2564 = vmatpush.bf16.msrb.mxu1 %v7492_v55  ;;  %v9798_v55 = vld [vmem:[#allocation4 + $0x3ec] sm:$0xf]  ;;  %v7032_v57 = vor.u32 %v9730_v41, %v7029_v50  ;;  %v7176_v62 = vor.u32 %v9766_v48, %v7173_v51 }
 0x14a   :  { %v7304_v1 = vor.u32 %v9798_v55, %v7301_v56  ;;  %v9714_v50 = vld [vmem:[#allocation4 + $0x14c] sm:$0xf] }
 0x14b   :  { %2589 = vmatpush.bf16.msrb.mxu3 %v7764_v61  ;;  %v7700_v61 = vor.u32 %v9900_v47, %v7699_v45  ;;  %v9750_v45 = vld [vmem:[#allocation4 + $0x26c] sm:$0xf]  ;;  %v7109_v47 = vld [vmem:[#allocation4 + $0x278] sm:$0xf0] }
 0x14c   :  { %2576 = vmatpush.bf16.msrb.mxu2 %v7636_v58  ;;  %2552 = vmatpush.bf16.msrb.mxu0 %v7348_v0  ;;  %v7572_v58 = vor.u32 %v9868_v44, %v7571_v43  ;;  %v7013_v0 = vld [vmem:[#allocation4 + $0x1b8] sm:$0xf0]  ;;  %v9782_v51 = vld [vmem:[#allocation4 + $0x36c] sm:$0xf] }
 0x14d   :  { %2565 = vmatpush.bf16.msrb.mxu1 %v7476_v4  ;;  %v7157_v4 = vld [vmem:[#allocation4 + $0x2d8] sm:$0xf0]  ;;  %v7016_v8 = vor.u32 %v9726_v63, %v7013_v0  ;;  %v9678_v56 = vld [vmem:[#allocation4 + $0x2c] sm:$0xf] }
 0x14e   :  { %v7160_v13 = vor.u32 %v9762_v3, %v7157_v4  ;;  %v9746_v63 = vld [vmem:[#allocation4 + $0x24c] sm:$0xf]  ;;  %v7093_v0 = vld [vmem:[#allocation4 + $0x258] sm:$0xf0] }
 0x14f   :  { %2590 = vmatpush.bf16.msrb.mxu3 %v7748_v10  ;;  %v6869_v10 = vld [vmem:[#allocation4 + $0x98] sm:$0xf0]  ;;  %v9778_v4 = vld [vmem:[#allocation4 + $0x34c] sm:$0xf] }
 0x150   :  { %2577 = vmatpush.bf16.msrb.mxu2 %v7620_v7  ;;  %2553 = vmatpush.bf16.msrb.mxu0 %v7332_v14  ;;  %v7285_v7 = vld [vmem:[#allocation4 + $0x3d8] sm:$0xf0]  ;;  %v9722_v14 = vld [vmem:[#allocation4 + $0x18c] sm:$0xf]  ;;  %v6872_v22 = vor.u32 %v9690_v9, %v6869_v10 }
 0x151   :  { %2566 = vmatpush.bf16.msrb.mxu1 %v7460_v20  ;;  %v7288_v17 = vor.u32 %v9794_v6, %v7285_v7  ;;  %v9758_v20 = vld [vmem:[#allocation4 + $0x2ac] sm:$0xf]  ;;  %v7000_v26 = vor.u32 %v9722_v14, %v6997_v15  ;;  %v6952_v7 = vor.u32 %v9710_v59, %v6949_v60  ;;  %v6933_v10 = vld [vmem:[#allocation4 + $0x118] sm:$0xf0] }
 0x152   :  { %v9674_v6 = vld [vmem:[#allocation4 + $0xc] sm:$0xf]  ;;  %v7429_v15 = vld [vmem:[#allocation4 + $0x4f8] sm:$0xf0] }
 0x153   :  { %2591 = vmatpush.bf16.msrb.mxu3 %v7732_v28  ;;  %v10857_v11 = vpop.f32.mrf.mxu0  ;;  %v10859_v16 = vpop.f32.mrf.mxu1  ;;  %v7144_v28 = vor.u32 %v9758_v20, %v7141_v21  ;;  %v9706_v9 = vld [vmem:[#allocation4 + $0x10c] sm:$0xf]  ;;  %v7557_v21 = vld [vmem:[#allocation4 + $0x5f8] sm:$0xf0] }
 0x154   :  { %2578 = vmatpush.bf16.msrb.mxu2 %v7604_v25  ;;  %2554 = vmatpush.bf16.msrb.mxu0 %v7316_v32  ;;  %v7269_v25 = vld [vmem:[#allocation4 + $0x3b8] sm:$0xf0]  ;;  %v9754_v32 = vld [vmem:[#allocation4 + $0x28c] sm:$0xf]  ;;  %v6936_v27 = vor.u32 %v9706_v9, %v6933_v10 }
 0x155   :  { %2567 = vmatpush.bf16.msrb.mxu1 %v7444_v35  ;;  %v7272_v31 = vor.u32 %v9790_v23, %v7269_v25  ;;  %v9786_v35 = vld [vmem:[#allocation4 + $0x38c] sm:$0xf]  ;;  %v7128_v41 = vor.u32 %v9754_v32, %v7125_v33  ;;  %v7077_v23 = vld [vmem:[#allocation4 + $0x238] sm:$0xf0] }
 0x156   :  { %v9830_v14 = vld [vmem:[#allocation4 + $0x4ec] sm:$0xf]  ;;  %v7413_v32 = vld [vmem:[#allocation4 + $0x4d8] sm:$0xf0] }
 0x157   :  { %2592 = vmatpush.bf16.msrb.mxu3 %v7716_v42  ;;  %2555 = vmatmul.bf16.vlgmr.msrb.gmra.mxu0 %v10831_v12  ;;  %v6965_v42 = vld [vmem:[#allocation4 + $0x158] sm:$0xf0]  ;;  %v9858_v33 = vld [vmem:[#allocation4 + $0x5cc] sm:$0xf] }
 0x158   :  { %2599 = vmatpush.bf16.msra.mxu0 %v6920_v36  ;;  %2579 = vmatpush.bf16.msrb.mxu2 %v7588_v39  ;;  %v7253_v36 = vld [vmem:[#allocation4 + $0x398] sm:$0xf0]  ;;  %v6968_v55 = vor.u32 %v9714_v50, %v6965_v42  ;;  %v9894_v50 = vld [vmem:[#allocation4 + $0x6ec] sm:$0xf] }
 0x159   :  { %2612 = vmatpush.bf16.msra.mxu1 %v7048_v38  ;;  %v9682_v38 = vld [vmem:[#allocation4 + $0x4c] sm:$0xf]  ;;  %v6837_v39 = vld [vmem:[#allocation4 + $0x58] sm:$0xf0]  ;;  %v7256_v44 = vor.u32 %v9786_v35, %v7253_v36 }
 0x15a   :  { %2568 = vmatmul.bf16.vlgmr.msrb.gmra.mxu1 %v10833_v18  ;;  %v6840_v48 = vor.u32 %v9682_v38, %v6837_v39  ;;  %v7061_v38 = vld [vmem:[#allocation4 + $0x218] sm:$0xf0]  ;;  %v9770_v39 = vld [vmem:[#allocation4 + $0x30c] sm:$0xf] }
 0x15b   :  { %2593 = vmatpush.bf16.msrb.mxu3 %v7700_v61  ;;  %v2298_v40 = vpop.f32.mrf.mxu0  ;;  %v2311_v43 = vpop.f32.mrf.mxu1  ;;  %v7685_v42 = vld [vmem:[#allocation4 + $0x6f8] sm:$0xf0]  ;;  %v9890_v60 = vld [vmem:[#allocation4 + $0x6cc] sm:$0xf] }
 0x15c   :  { %2600 = vmatpush.bf16.msra.mxu0 %v6904_v52  ;;  %2580 = vmatpush.bf16.msrb.mxu2 %v7572_v58  ;;  %v7237_v52 = vld [vmem:[#allocation4 + $0x378] sm:$0xf0]  ;;  %v7112_v58 = vor.u32 %v9750_v45, %v7109_v47  ;;  %v7416_v43 = vor.u32 %v9826_v29, %v7413_v32  ;;  %v9886_v10 = vld [vmem:[#allocation4 + $0x6ac] sm:$0xf] }
 0x15d   :  { %2613 = vmatpush.bf16.msra.mxu1 %v7032_v57  ;;  %v6821_v57 = vld [vmem:[#allocation4 + $0x38] sm:$0xf0] }
 0x15e   :  { %2594 = vmatmul.bf16.vlgmr.msrb.gmra.mxu3 %v10839_v53  ;;  %v6824_v3 = vor.u32 %v9678_v56, %v6821_v57  ;;  %v7813_v45 = vld [vmem:[#allocation4 + $0x7f8] sm:$0xf0]  ;;  %v7688_v56 = vor.u32 %v9894_v50, %v7685_v42  ;;  %v9854_v57 = vld [vmem:[#allocation4 + $0x5ac] sm:$0xf] }
 0x15f   :  { %2638 = vmatpush.bf16.msra.mxu3 %v7304_v1  ;;  %2581 = vmatmul.bf16.vlgmr.msrb.gmra.mxu2 %v10837_v49  ;;  %v9910_v42 = vld [vmem:[#allocation4 + $0x76c] sm:$0xf] }
 0x160   :  { %2625 = vmatpush.bf16.msra.mxu2 %v7176_v62  ;;  %2601 = vmatpush.bf16.msra.mxu0 %v6888_v5  ;;  %v7240_v62 = vor.u32 %v9782_v51, %v7237_v52  ;;  %v7221_v5 = vld [vmem:[#allocation4 + $0x358] sm:$0xf0]  ;;  %v9822_v51 = vld [vmem:[#allocation4 + $0x4ac] sm:$0xf] }
 0x161   :  { %2614 = vmatpush.bf16.msra.mxu1 %v7016_v8  ;;  %v10865_v1 = vpop.f32.mrf.mxu3  ;;  %v6805_v8 = vld [vmem:[#allocation4 + $0x18] sm:$0xf0]  ;;  %v7224_v20 = vor.u32 %v9778_v4, %v7221_v5  ;;  %v9818_v5 = vld [vmem:[#allocation4 + $0x48c] sm:$0xf] }
 0x162   :  { %v10863_v61 = vpop.f32.mrf.mxu2  ;;  %v6808_v25 = vor.u32 %v9674_v6, %v6805_v8  ;;  %v7397_v52 = vld [vmem:[#allocation4 + $0x4b8] sm:$0xf0] }
 0x163   :  { %2639 = vmatpush.bf16.msra.mxu3 %v7288_v17  ;;  %v9862_v17 = vld [vmem:[#allocation4 + $0x5ec] sm:$0xf]  ;;  %v7381_v6 = vld [vmem:[#allocation4 + $0x498] sm:$0xf0] }
 0x164   :  { %2626 = vmatpush.bf16.msra.mxu2 %v7160_v13  ;;  %2602 = vmatpush.bf16.msra.mxu0 %v6872_v22  ;;  %v7096_v13 = vor.u32 %v9746_v63, %v7093_v0  ;;  %v9742_v22 = vld [vmem:[#allocation4 + $0x22c] sm:$0xf]  ;;  %v7560_v30 = vor.u32 %v9862_v17, %v7557_v21  ;;  %v7400_v63 = vor.u32 %v9822_v51, %v7397_v52  ;;  %v7509_v8 = vld [vmem:[#allocation4 + $0x598] sm:$0xf0] }
 0x165   :  { %2615 = vmatpush.bf16.msra.mxu1 %v7000_v26  ;;  %v9774_v26 = vld [vmem:[#allocation4 + $0x32c] sm:$0xf] }
 0x166   :  { %v7208_v36 = vor.u32 %v9774_v26, %v7205_v2  ;;  %v9922_v0 = vld [vmem:[#allocation4 + $0x7cc] sm:$0xf]  ;;  %v7493_v2 = vld [vmem:[#allocation4 + $0x578] sm:$0xf0] }
 0x167   :  { %2640 = vmatpush.bf16.msra.mxu3 %v7272_v31  ;;  %v7080_v31 = vor.u32 %v9742_v22, %v7077_v23  ;;  %v9918_v17 = vld [vmem:[#allocation4 + $0x7ac] sm:$0xf]  ;;  %v7365_v23 = vld [vmem:[#allocation4 + $0x478] sm:$0xf0] }
 0x168   :  { %2627 = vmatpush.bf16.msra.mxu2 %v7144_v28  ;;  %2603 = vmatpush.bf16.msra.mxu0 %v6856_v34  ;;  %v7432_v28 = vor.u32 %v9830_v14, %v7429_v15  ;;  %v7541_v34 = vld [vmem:[#allocation4 + $0x5d8] sm:$0xf0]  ;;  %v7384_v15 = vor.u32 %v9818_v5, %v7381_v6  ;;  %v9814_v22 = vld [vmem:[#allocation4 + $0x46c] sm:$0xf] }
 0x169   :  { %2616 = vmatpush.bf16.msra.mxu1 %v6984_v37  ;;  %v9738_v37 = vld [vmem:[#allocation4 + $0x20c] sm:$0xf]  ;;  %v2337_v40 = vpop.f32.mrf.mxu3  ;;  %v7544_v47 = vor.u32 %v9858_v33, %v7541_v34  ;;  %v7368_v29 = vor.u32 %v9814_v22, %v7365_v23  ;;  %v7317_v6 = vld [vmem:[#allocation4 + $0x418] sm:$0xf0] }
 0x16a   :  { %v2324_v35 = vpop.f32.mrf.mxu2  ;;  %v9846_v26 = vld [vmem:[#allocation4 + $0x56c] sm:$0xf]  ;;  %v7621_v40 = vld [vmem:[#allocation4 + $0x678] sm:$0xf0] }
 0x16b   :  { %2641 = vmatpush.bf16.msra.mxu3 %v7256_v44  ;;  %v9926_v44 = vld [vmem:[#allocation4 + $0x7ec] sm:$0xf]  ;;  %v7496_v32 = vor.u32 %v9846_v26, %v7493_v2  ;;  %v7717_v22 = vld [vmem:[#allocation4 + $0x738] sm:$0xf0] }
 0x16c   :  { %2628 = vmatpush.bf16.msra.mxu2 %v7128_v41  ;;  %2604 = vmatpush.bf16.msra.mxu0 %v6840_v48  ;;  %v7189_v41 = vld [vmem:[#allocation4 + $0x318] sm:$0xf0]  ;;  %v7064_v48 = vor.u32 %v9738_v37, %v7061_v38  ;;  %v7816_v59 = vor.u32 %v9926_v44, %v7813_v45  ;;  %v9810_v33 = vld [vmem:[#allocation4 + $0x44c] sm:$0xf] }
 0x16d   :  { %2617 = vmatpush.bf16.msra.mxu1 %v6968_v55  ;;  %v7192_v55 = vor.u32 %v9770_v39, %v7189_v41  ;;  %v9842_v35 = vld [vmem:[#allocation4 + $0x54c] sm:$0xf]  ;;  %v9936_v26 = vld [vmem:[#allocation7 + $0x38] sm:$0xff] }
 0x16e   :  { %v9878_v39 = vld [vmem:[#allocation4 + $0x66c] sm:$0xf] }
 0x16f   :  { %2642 = vmatpush.bf16.msra.mxu3 %v7240_v62  ;;  %v7669_v62 = vld [vmem:[#allocation4 + $0x6d8] sm:$0xf0]  ;;  %v9806_v45 = vld [vmem:[#allocation4 + $0x42c] sm:$0xf]  ;;  %v7624_v51 = vor.u32 %v9878_v39, %v7621_v40 }
 0x170   :  { %2629 = vmatpush.bf16.msra.mxu2 %v7112_v58  ;;  %2605 = vmatpush.bf16.msra.mxu0 %v6824_v3  ;;  %v7525_v58 = vld [vmem:[#allocation4 + $0x5b8] sm:$0xf0]  ;;  %v9838_v52 = vld [vmem:[#allocation4 + $0x52c] sm:$0xf] }
 0x171   :  { %2618 = vmatpush.bf16.msra.mxu1 %v6952_v7  ;;  %v7797_v3 = vld [vmem:[#allocation4 + $0x7d8] sm:$0xf0]  ;;  %v7528_v4 = vor.u32 %v9854_v57, %v7525_v58  ;;  %v9850_v7 = vld [vmem:[#allocation4 + $0x58c] sm:$0xf] }
 0x172   :  { %v7512_v21 = vor.u32 %v9850_v7, %v7509_v8  ;;  %v9874_v57 = vld [vmem:[#allocation4 + $0x64c] sm:$0xf]  ;;  %v7605_v58 = vld [vmem:[#allocation4 + $0x658] sm:$0xf0] }
 0x173   :  { %2643 = vmatpush.bf16.msra.mxu3 %v7224_v20  ;;  %v10869_v9 = vpop.f32.mrf.mxu0  ;;  %v10872_v14 = vpop.f32.mrf.mxu1  ;;  %v7781_v20 = vld [vmem:[#allocation4 + $0x7b8] sm:$0xf0]  ;;  %v9802_v5 = vld [vmem:[#allocation4 + $0x40c] sm:$0xf] }
 0x174   :  { %2630 = vmatpush.bf16.msra.mxu2 %v7096_v13  ;;  %2606 = vmatpush.bf16.msra.mxu0 %v6808_v25  ;;  %v7653_v13 = vld [vmem:[#allocation4 + $0x6b8] sm:$0xf0]  ;;  %v9834_v7 = vld [vmem:[#allocation4 + $0x50c] sm:$0xf] }
 0x175   :  { %2619 = vmatpush.bf16.msra.mxu1 %v6936_v27  ;;  %v7656_v25 = vor.u32 %v9886_v10, %v7653_v13  ;;  %v7784_v27 = vor.u32 %v9918_v17, %v7781_v20  ;;  %v7445_v8 = vld [vmem:[#allocation4 + $0x518] sm:$0xf0]  ;;  %v9870_v13 = vld [vmem:[#allocation4 + $0x62c] sm:$0xf]  ;;  %v7320_v20 = vor.u32 %v9802_v5, %v7317_v6 }
 0x176   :  { %v9934_v40 = vld [vmem:[#allocation7 + $0x28] sm:$0xff] }
 0x177   :  { %2644 = vmatpush.bf16.msra.mxu3 %v7208_v36  ;;  %2607 = vmatmul.bf16.vlgmr.msra.gmra.mxu0 %v10815_v19  ;;  %v7672_v19 = vor.u32 %v9890_v60, %v7669_v62  ;;  %v7477_v36 = vld [vmem:[#allocation4 + $0x558] sm:$0xf0]  ;;  %v9906_v62 = vld [vmem:[#allocation4 + $0x74c] sm:$0xf] }
 0x178   :  { %2651 = vmatpush.bf16.msrb.mxu0 %v7432_v28  ;;  %2631 = vmatpush.bf16.msra.mxu2 %v7080_v31  ;;  %v9882_v28 = vld [vmem:[#allocation4 + $0x68c] sm:$0xf]  ;;  %v7765_v31 = vld [vmem:[#allocation4 + $0x798] sm:$0xf0]  ;;  %v7480_v44 = vor.u32 %v9842_v35, %v7477_v36  ;;  %v9943_v36 = vld [vmem:[#allocation7 + $0x70] sm:$0xff] }
 0x179   :  { %2664 = vmatpush.bf16.msrb.mxu1 %v7560_v30  ;;  %v9914_v30 = vld [vmem:[#allocation4 + $0x78c] sm:$0xf] }
 0x17a   :  { %2620 = vmatmul.bf16.vlgmr.msra.gmra.mxu1 %v10817_v24  ;;  %v7800_v24 = vor.u32 %v9922_v0, %v7797_v3  ;;  %v7768_v38 = vor.u32 %v9914_v30, %v7765_v31  ;;  %v9898_v31 = vld [vmem:[#allocation4 + $0x70c] sm:$0xf] }
 0x17b   :  { %2645 = vmatpush.bf16.msra.mxu3 %v7192_v55  ;;  %v2350_v37 = vpop.f32.mrf.mxu0  ;;  %v2363_v41 = vpop.f32.mrf.mxu1  ;;  %v7461_v55 = vld [vmem:[#allocation4 + $0x538] sm:$0xf0]  ;;  %v9938_v5 = vld [vmem:[#allocation7 + $0x48] sm:$0xff] }
 0x17c   :  { %2652 = vmatpush.bf16.msrb.mxu0 %v7416_v43  ;;  %2632 = vmatpush.bf16.msra.mxu2 %v7064_v48  ;;  %v7749_v43 = vld [vmem:[#allocation4 + $0x778] sm:$0xf0]  ;;  %v10875_v48 = vld [vmem:[#allocation6] sm:$0xf] }
 0x17d   :  { %2665 = vmatpush.bf16.msrb.mxu1 %v7544_v47  ;;  %v7333_v47 = vld [vmem:[#allocation4 + $0x438] sm:$0xf0]  ;;  %v999_v0 = vperm.slane %v10875_v48, 0 }
 0x17e   :  { %2646 = vmatmul.bf16.vlgmr.msra.gmra.mxu3 %v10823_v54  ;;  %v7349_v54 = vld [vmem:[#allocation4 + $0x458] sm:$0xf0]  ;;  %v7336_v60 = vor.u32 %v9806_v45, %v7333_v47 }
 0x17f   :  { %2690 = vmatpush.bf16.msrb.mxu3 %v7816_v59  ;;  %2633 = vmatmul.bf16.vlgmr.msra.gmra.mxu2 %v10821_v46  ;;  %v7637_v46 = vld [vmem:[#allocation4 + $0x698] sm:$0xf0]  ;;  %v7352_v50 = vor.u32 %v9810_v33, %v7349_v54  ;;  %v2297_v23 = vadd.f32 %v10857_v11, %v999_v0  ;;  %v9935_v11 = vld [vmem:[#allocation7 + $0x30] sm:$0xff] }
 0x180   :  { %2677 = vmatpush.bf16.msrb.mxu2 %v7688_v56  ;;  %2653 = vmatpush.bf16.msrb.mxu0 %v7400_v63  ;;  %v7640_v34 = vor.u32 %v9882_v28, %v7637_v46  ;;  %v7752_v56 = vor.u32 %v9910_v42, %v7749_v43  ;;  %v7733_v63 = vld [vmem:[#allocation4 + $0x758] sm:$0xf0]  ;;  %v9866_v46 = vld [vmem:[#allocation4 + $0x60c] sm:$0xf] }
 0x181   :  { %2666 = vmatpush.bf16.msrb.mxu1 %v7528_v4  ;;  %v10877_v59 = vpop.f32.mrf.mxu2  ;;  %v10880_v3 = vpop.f32.mrf.mxu3  ;;  %v7464_v4 = vor.u32 %v9838_v52, %v7461_v55  ;;  %v7736_v10 = vor.u32 %v9906_v62, %v7733_v63  ;;  %v2310_v33 = vadd.f32 %v10859_v16, %v2297_v23 }
 0x183   :  { %2691 = vmatpush.bf16.msrb.mxu3 %v7800_v24  ;;  %v2400_v24 = vpop.f32.mrf.mxu0  ;;  %v2413_v17 = vpop.f32.mrf.mxu1  ;;  %v2323_v37 = vadd.f32 %v10863_v61, %v2310_v33  ;;  %v9946_v33 = vld [vmem:[#allocation7 + $0x88] sm:$0xff] }
 0x184   :  { %2678 = vmatpush.bf16.msrb.mxu2 %v7672_v19  ;;  %2654 = vmatpush.bf16.msrb.mxu0 %v7384_v15  ;;  %v7608_v19 = vor.u32 %v9874_v57, %v7605_v58  ;;  %v7589_v15 = vld [vmem:[#allocation4 + $0x638] sm:$0xf0] }
 0x185   :  { %2667 = vmatpush.bf16.msrb.mxu1 %v7512_v21  ;;  %v9902_v21 = vld [vmem:[#allocation4 + $0x72c] sm:$0xf]  ;;  %v7592_v2 = vor.u32 %v9870_v13, %v7589_v15  ;;  %v2336_v42 = vadd.f32 %v10865_v1, %v2323_v37  ;;  %v9932_v1 = vld [vmem:[#allocation7 + $0x18] sm:$0xff] }
 0x186   :  { %v7720_v28 = vor.u32 %v9902_v21, %v7717_v22  ;;  %v9951_v21 = vld [vmem:[#allocation7 + $0xb0] sm:$0xff] }
 0x187   :  { %2692 = vmatpush.bf16.msrb.mxu3 %v7784_v27  ;;  %v9944_v27 = vld [vmem:[#allocation7 + $0x78] sm:$0xff]  ;;  %v2349_v61 = vadd.f32 %v10869_v9, %v2336_v42 }
 0x188   :  { %2679 = vmatpush.bf16.msrb.mxu2 %v7656_v25  ;;  %2655 = vmatpush.bf16.msrb.mxu0 %v7368_v29  ;;  %v7448_v25 = vor.u32 %v9834_v7, %v7445_v8  ;;  %v7573_v29 = vld [vmem:[#allocation4 + $0x618] sm:$0xf0]  ;;  %v9929_v8 = vld [vmem:[#allocation7] sm:$0xff] }
 0x189   :  { %2668 = vmatpush.bf16.msrb.mxu1 %v7496_v32  ;;  %v2376_v30 = vpop.f32.mrf.mxu2  ;;  %v7701_v32 = vld [vmem:[#allocation4 + $0x718] sm:$0xf0]  ;;  %v2389_v54 = vpop.f32.mrf.mxu3  ;;  %v7576_v35 = vor.u32 %v9866_v46, %v7573_v29  ;;  %v2362_v52 = vadd.f32 %v10872_v14, %v2349_v61  ;;  %v9930_v14 = vld [vmem:[#allocation7 + $0x8] sm:$0xff] }
 0x18a   :  { %v7704_v39 = vor.u32 %v9898_v31, %v7701_v32  ;;  %v9948_v29 = vld [vmem:[#allocation7 + $0x98] sm:$0xff]  ;;  %v9947_v30 = vld [vmem:[#allocation7 + $0x90] sm:$0xff] }
 0x18b   :  { %2693 = vmatpush.bf16.msrb.mxu3 %v7768_v38  ;;  %v2402_v38 = vpop.f32.mrf.mxu0  ;;  %v2415_v16 = vpop.f32.mrf.mxu1  ;;  %v2375_v9 = vadd.f32 %v10877_v59, %v2362_v52 }
 0x18c   :  { %2680 = vmatpush.bf16.msrb.mxu2 %v7640_v34  ;;  %2656 = vmatpush.bf16.msrb.mxu0 %v7352_v50  ;;  %v1000_v34 = vperm.slane %v10875_v48, 1  ;;  %v9942_v50 = vld [vmem:[#allocation7 + $0x68] sm:$0xff] }
 0x18d   :  { %2669 = vmatpush.bf16.msrb.mxu1 %v7480_v44  ;;  %v2388_v62 = vadd.f32 %v10880_v3, %v2375_v9  ;;  %v9952_v3 = vld [vmem:[#allocation7 + $0xb8] sm:$0xff] }
 0x18e   :  { %v2401_v41 = vadd.f32 %v2400_v24, %v1000_v34  ;;  %v9945_v34 = vld [vmem:[#allocation7 + $0x80] sm:$0xff] }
 0x18f   :  { %2694 = vmatpush.bf16.msrb.mxu3 %v7752_v56  ;;  %v9940_v56 = vld [vmem:[#allocation7 + $0x58] sm:$0xff]  ;;  %v2707_v6 = vmul.f32 0.01, %v2388_v62  ;;  %vm2703_vm8 = vcmp.gt.f32.partialorder %v2388_v62, 0.0 }
 0x190   :  { %2681 = vmatpush.bf16.msrb.mxu2 %v7624_v51  ;;  %2657 = vmatpush.bf16.msrb.mxu0 %v7336_v60  ;;  %v2414_v45 = vadd.f32 %v2413_v17, %v2401_v41  ;;  %v9931_v60 = vld [vmem:[#allocation7 + $0x10] sm:$0xff] }
 0x191   :  { %2670 = vmatpush.bf16.msrb.mxu1 %v7464_v4  ;;  %v2426_v43 = vpop.f32.mrf.mxu2  ;;  %v2439_v44 = vpop.f32.mrf.mxu3  ;;  %v2711_v13 = vsel %vm2703_vm8, %v2388_v62, %v2707_v6  ;;  %v9956_v62 = vld [vmem:[#allocation7 + $0xd8] sm:$0xff] }
 0x192   :  { %v2427_v47 = vadd.f32 %v2426_v43, %v2414_v45  ;;  %v2715_v17 = vpack.c.bf16 %v2711_v13, %v2711_v13 }
 0x193   :  { %2695 = vmatpush.bf16.msrb.mxu3 %v7736_v10  ;;  %v9937_v10 = vld [vmem:[#allocation7 + $0x40] sm:$0xff] }
 0x194   :  { %2682 = vmatpush.bf16.msrb.mxu2 %v7608_v19  ;;  %2658 = vmatpush.bf16.msrb.mxu0 %v7320_v20  ;;  %v2452_v51 = vpop.f32.mrf.mxu0  ;;  %v2440_v57 = vadd.f32 %v2439_v44, %v2427_v47 }
 0x195   :  { %2671 = vmatpush.bf16.msrb.mxu1 %v7448_v25 }
 0x196   :  { %v2453_v63 = vadd.f32 %v2452_v51, %v2440_v57  ;;  %v9960_v51 = vld [vmem:[#allocation7 + $0xf8] sm:$0xff] }
 0x197   :  { %2696 = vmatpush.bf16.msrb.mxu3 %v7720_v28  ;;  %2659 = vmatmul.bf16.vlgmr.msrb.gmra.mxu0 %v10831_v12  ;;  %v9933_v12 = vld [vmem:[#allocation7 + $0x20] sm:$0xff]  ;;  %v2465_v55 = vpop.f32.mrf.mxu1 }
 0x198   :  { %2979 = vmatpush.bf16.msra.mxu0 %v9936_v26  ;;  %2683 = vmatpush.bf16.msrb.mxu2 %v7592_v2  ;;  %v2466_v19 = vadd.f32 %v2465_v55, %v2453_v63  ;;  %v9950_v2 = vld [vmem:[#allocation7 + $0xa8] sm:$0xff]  ;;  %v9959_v55 = vld [vmem:[#allocation7 + $0xf0] sm:$0xff] }
 0x199   :  { %2992 = vmatpush.bf16.msra.mxu1 %v9944_v27  ;;  %v2441_v58 = vpop.f32.mrf.mxu3  ;;  %v9949_v27 = vld [vmem:[#allocation7 + $0xa0] sm:$0xff]  ;;  %v9955_v63 = vld [vmem:[#allocation7 + $0xd0] sm:$0xff] }
 0x19a   :  { %2672 = vmatmul.bf16.vlgmr.msrb.gmra.mxu1 %v10833_v18  ;;  %v9941_v18 = vld [vmem:[#allocation7 + $0x60] sm:$0xff] }
 0x19b   :  { %2697 = vmatpush.bf16.msrb.mxu3 %v7704_v39  ;;  %v9957_v58 = vld [vmem:[#allocation7 + $0xe0] sm:$0xff] }
 0x19c   :  { %2980 = vmatpush.bf16.msra.mxu0 %v9935_v11  ;;  %2684 = vmatpush.bf16.msrb.mxu2 %v7576_v35  ;;  %v2454_v0 = vpop.f32.mrf.mxu0  ;;  %v1001_v35 = vperm.slane %v10875_v48, 2 }
 0x19d   :  { %2993 = vmatpush.bf16.msra.mxu1 %v9943_v36 }
 0x19e   :  { %2698 = vmatmul.bf16.vlgmr.msrb.gmra.mxu3 %v10839_v53  ;;  %v9939_v53 = vld [vmem:[#allocation7 + $0x50] sm:$0xff] }
 0x19f   :  { %2685 = vmatmul.bf16.vlgmr.msrb.gmra.mxu2 %v10837_v49  ;;  %v2428_v49 = vpop.f32.mrf.mxu2  ;;  %v2467_v4 = vpop.f32.mrf.mxu1  ;;  %3018 = vmatpush.bf16.msra.mxu3 %v9960_v51 }
 0x1a0   :  { %2981 = vmatpush.bf16.msra.mxu0 %v9934_v40  ;;  %3005 = vmatpush.bf16.msra.mxu2 %v9952_v3  ;;  %v9958_v49 = vld [vmem:[#allocation7 + $0xe8] sm:$0xff] }
 0x1a1   :  { %2994 = vmatpush.bf16.msra.mxu1 %v9942_v50  ;;  %v2491_v7 = vpop.f32.mrf.mxu3 }
 0x1a3   :  { %3019 = vmatpush.bf16.msra.mxu3 %v9959_v55  ;;  %v8147_v55 = vld [vmem:[#allocation10 + $0x188] sm:$0xf] }
 0x1a4   :  { %2982 = vmatpush.bf16.msra.mxu0 %v9933_v12  ;;  %3006 = vmatpush.bf16.msra.mxu2 %v9951_v21 }
 0x1a5   :  { %2995 = vmatpush.bf16.msra.mxu1 %v9941_v18 }
 0x1a7   :  { %v2478_v59 = vpop.f32.mrf.mxu2  ;;  %3020 = vmatpush.bf16.msra.mxu3 %v9958_v49  ;;  %v8107_v49 = vld [vmem:[#allocation10 + $0x140] sm:$0xf] }
 0x1a8   :  { %2983 = vmatpush.bf16.msra.mxu0 %v9932_v1  ;;  %v2479_v24 = vadd.f32 %v2478_v59, %v2466_v19  ;;  %3007 = vmatpush.bf16.msra.mxu2 %v9950_v2  ;;  %v9953_v19 = vld [vmem:[#allocation7 + $0xc0] sm:$0xff]  ;;  %v1002_v59 = vperm.slane %v10875_v48, 3 }
 0x1a9   :  { %2996 = vmatpush.bf16.msra.mxu1 %v9940_v56  ;;  %v2493_v26 = vpop.f32.mrf.mxu3 }
 0x1aa   :  { %v2492_v15 = vadd.f32 %v2491_v7, %v2479_v24 }
 0x1ab   :  { %3021 = vmatpush.bf16.msra.mxu3 %v9957_v58  ;;  %v10005_v58 = vld [vmem:[#allocation10 + $0x15c] sm:$0xf0] }
 0x1ac   :  { %2984 = vmatpush.bf16.msra.mxu0 %v9931_v60  ;;  %vm2704_vm9 = vcmp.gt.f32.partialorder %v2492_v15, 0.0  ;;  %v2708_v20 = vmul.f32 0.01, %v2492_v15  ;;  %3008 = vmatpush.bf16.msra.mxu2 %v9949_v27 }
 0x1ad   :  { %2997 = vmatpush.bf16.msra.mxu1 %v9939_v53 }
 0x1ae   :  { %v2712_v22 = vsel %vm2704_vm9, %v2492_v15, %v2708_v20 }
 0x1af   :  { %v2716_v23 = vpack.c.bf16 %v2712_v22, %v2712_v22  ;;  %v2480_v25 = vpop.f32.mrf.mxu2  ;;  %3022 = vmatpush.bf16.msra.mxu3 %v9956_v62  ;;  %v8109_v62 = vld [vmem:[#allocation10 + $0x160] sm:$0xf0] }
 0x1b0   :  { %2985 = vmatpush.bf16.msra.mxu0 %v9930_v14  ;;  %3009 = vmatpush.bf16.msra.mxu2 %v9948_v29  ;;  %v9954_v14 = vld [vmem:[#allocation7 + $0xc8] sm:$0xff] }
 0x1b1   :  { %2998 = vmatpush.bf16.msra.mxu1 %v9938_v5 }
 0x1b3   :  { %3023 = vmatpush.bf16.msra.mxu3 %v9955_v63  ;;  %v8115_v63 = vld [vmem:[#allocation10 + $0x148] sm:$0xf] }
 0x1b4   :  { %2986 = vmatpush.bf16.msra.mxu0 %v9929_v8  ;;  %v2504_v28 = vpop.f32.mrf.mxu0  ;;  %3010 = vmatpush.bf16.msra.mxu2 %v9947_v30 }
 0x1b5   :  { %2999 = vmatpush.bf16.msra.mxu1 %v9937_v10  ;;  %v2505_v38 = vadd.f32 %v2504_v28, %v1001_v35 }
 0x1b7   :  { %2987 = vmatmul.bf16.vlgmr.msra.gmra.mxu0 %v2715_v17  ;;  %v2517_v46 = vpop.f32.mrf.mxu1  ;;  %3024 = vmatpush.bf16.msra.mxu3 %v9954_v14  ;;  %v10002_v14 = vld [vmem:[#allocation10 + $0x14c] sm:$0xf] }
 0x1b8   :  { %3000 = vmatmul.bf16.vlgmr.msra.gmra.mxu1 %v2716_v23  ;;  %3011 = vmatpush.bf16.msra.mxu2 %v9946_v33  ;;  %v2518_v39 = vadd.f32 %v2517_v46, %v2505_v38  ;;  %v10017_v38 = vld [vmem:[#allocation10 + $0x1c4] sm:$0xf] }
 0x1bb   :  { %3025 = vmatpush.bf16.msra.mxu3 %v9953_v19 }
 0x1bc   :  { %v2506_v31 = vpop.f32.mrf.mxu0  ;;  %3012 = vmatpush.bf16.msra.mxu2 %v9945_v34 }
 0x1bd   :  { %v10393_v31 = vld [vmem:[#allocation9] ss:$0 sm:$0xff] }
 0x1bf   :  { %v2519_v32 = vpop.f32.mrf.mxu1 }
 0x1c1   :  { %v2543_v11 = vpop.f32.mrf.mxu3 }
 0x1c2   :  { %v2530_v54 = vpop.f32.mrf.mxu2 }
 0x1c3   :  { %v2531_v40 = vadd.f32 %v2530_v54, %v2518_v39 }
 0x1c5   :  { %v2544_v50 = vadd.f32 %v2543_v11, %v2531_v40  ;;  %v8179_v40 = vld [vmem:[#allocation10 + $0x1c8] sm:$0xf] }
 0x1c9   :  { %v2545_v37 = vpop.f32.mrf.mxu3 }
 0x1ca   :  { %v2532_v36 = vpop.f32.mrf.mxu2  ;;  %v10021_v37 = vld [vmem:[#allocation10 + $0x1dc] sm:$0xf0] }
 0x1cb   :  { %v8171_v36 = vld [vmem:[#allocation10 + $0x1c0] sm:$0xf] }
 0x1cc   :  { %v8172_v39 = vor.u32 %v10021_v37, %v8171_v36  ;;  %v8013_v36 = vld [vmem:[#allocation10 + $0xa0] sm:$0xf0]  ;;  %v8019_v37 = vld [vmem:[#allocation10 + $0x88] sm:$0xf] }
 0x1ce   :  { %3437 = vmatpush.bf16.msrb.mxu0 %v8172_v39  ;;  %v9978_v39 = vld [vmem:[#allocation10 + $0x8c] sm:$0xf] }
 0x1d4   :  { %v2556_v16 = vpop.f32.mrf.mxu0 }
 0x1d5   :  { %v2557_v42 = vadd.f32 %v2556_v16, %v2544_v50  ;;  %v8173_v16 = vld [vmem:[#allocation10 + $0x1e0] sm:$0xf0] }
 0x1d6   :  { %v8176_v50 = vor.u32 %v10017_v38, %v8173_v16  ;;  %v9982_v38 = vld [vmem:[#allocation10 + $0xa4] sm:$0xf0]  ;;  %v8021_v16 = vld [vmem:[#allocation10 + $0xa8] sm:$0xf0] }
 0x1d7   :  { %v2569_v41 = vpop.f32.mrf.mxu1 }
 0x1d8   :  { %v2570_v44 = vadd.f32 %v2569_v41, %v2557_v42  ;;  %v10022_v41 = vld [vmem:[#allocation10 + $0x1e4] sm:$0xf0]  ;;  %3450 = vmatpush.bf16.msrb.mxu1 %v8176_v50  ;;  %v8020_v50 = vor.u32 %v9982_v38, %v8019_v37  ;;  %v8131_v37 = vld [vmem:[#allocation10 + $0x158] sm:$0xf] }
 0x1d9   :  { %v8180_v42 = vor.u32 %v10022_v41, %v8179_v40  ;;  %v10008_v38 = vld [vmem:[#allocation10 + $0x174] sm:$0xf0] }
 0x1db   :  { %3463 = vmatpush.bf16.msrb.mxu2 %v8180_v42  ;;  %v7979_v42 = vld [vmem:[#allocation10 + $0x40] sm:$0xf] }
 0x1dc   :  { %v2558_v43 = vpop.f32.mrf.mxu0 }
 0x1dd   :  { %v10018_v43 = vld [vmem:[#allocation10 + $0x1cc] sm:$0xf] }
 0x1df   :  { %v2571_v61 = vpop.f32.mrf.mxu1 }
 0x1e0   :  { %v8181_v61 = vld [vmem:[#allocation10 + $0x1e8] sm:$0xf0] }
 0x1e1   :  { %v2595_v18 = vpop.f32.mrf.mxu3 }
 0x1e2   :  { %v2582_v12 = vpop.f32.mrf.mxu2 }
 0x1e3   :  { %v2583_v45 = vadd.f32 %v2582_v12, %v2570_v44  ;;  %v8139_v44 = vld [vmem:[#allocation10 + $0x180] sm:$0xf]  ;;  %v8184_v12 = vor.u32 %v10018_v43, %v8181_v61  ;;  %v9969_v61 = vld [vmem:[#allocation10 + $0x44] sm:$0xf] }
 0x1e4   :  { %v9973_v43 = vld [vmem:[#allocation10 + $0x5c] sm:$0xf0] }
 0x1e5   :  { %v2596_v47 = vadd.f32 %v2595_v18, %v2583_v45  ;;  %v10013_v45 = vld [vmem:[#allocation10 + $0x19c] sm:$0xf0]  ;;  %v10009_v18 = vld [vmem:[#allocation10 + $0x184] sm:$0xf]  ;;  %3476 = vmatpush.bf16.msrb.mxu3 %v8184_v12 }
 0x1e6   :  { %v8140_v51 = vor.u32 %v10013_v45, %v8139_v44  ;;  %v8024_v44 = vor.u32 %v9978_v39, %v8021_v16  ;;  %v7981_v12 = vld [vmem:[#allocation10 + $0x60] sm:$0xf0]  ;;  %v7987_v45 = vld [vmem:[#allocation10 + $0x48] sm:$0xf]  ;;  %v8132_v16 = vor.u32 %v10008_v38, %v8131_v37  ;;  %v7973_v37 = vld [vmem:[#allocation10 + $0x38] sm:$0xf0] }
 0x1e7   :  { %vm2705_vm10 = vcmp.gt.f32.partialorder %v2596_v47, 0.0  ;;  %v2709_v52 = vmul.f32 0.01, %v2596_v47 }
 0x1e8   :  { %3438 = vmatpush.bf16.msrb.mxu0 %v8140_v51  ;;  %v7989_v51 = vld [vmem:[#allocation10 + $0x68] sm:$0xf0] }
 0x1e9   :  { %v2713_v1 = vsel %vm2705_vm10, %v2596_v47, %v2709_v52  ;;  %v2597_v57 = vpop.f32.mrf.mxu3  ;;  %v8141_v47 = vld [vmem:[#allocation10 + $0x1a0] sm:$0xf0] }
 0x1ea   :  { %v2717_v56 = vpack.c.bf16 %v2713_v1, %v2713_v1  ;;  %v2584_v9 = vpop.f32.mrf.mxu2  ;;  %v8144_v52 = vor.u32 %v10009_v18, %v8141_v47  ;;  %v10014_v1 = vld [vmem:[#allocation10 + $0x1a4] sm:$0xf0]  ;;  %v8149_v57 = vld [vmem:[#allocation10 + $0x1a8] sm:$0xf0] }
 0x1eb   :  { %v8148_v9 = vor.u32 %v10014_v1, %v8147_v55  ;;  %v9974_v18 = vld [vmem:[#allocation10 + $0x64] sm:$0xf0]  ;;  %v9970_v47 = vld [vmem:[#allocation10 + $0x4c] sm:$0xf]  ;;  %v7947_v55 = vld [vmem:[#allocation10] sm:$0xf] }
 0x1ec   :  { %3013 = vmatmul.bf16.vlgmr.msra.gmra.mxu2 %v2717_v56  ;;  %v10010_v56 = vld [vmem:[#allocation10 + $0x18c] sm:$0xf]  ;;  %3451 = vmatpush.bf16.msrb.mxu1 %v8144_v52  ;;  %v7980_v52 = vor.u32 %v9973_v43, %v7979_v42  ;;  %v9965_v1 = vld [vmem:[#allocation10 + $0x1c] sm:$0xf0]  ;;  %v8091_v42 = vld [vmem:[#allocation10 + $0x110] sm:$0xf] }
 0x1ed   :  { %3464 = vmatpush.bf16.msrb.mxu2 %v8148_v9  ;;  %v7984_v9 = vor.u32 %v9969_v61, %v7981_v12  ;;  %v9999_v43 = vld [vmem:[#allocation10 + $0x12c] sm:$0xf0]  ;;  %v9995_v61 = vld [vmem:[#allocation10 + $0x114] sm:$0xf] }
 0x1ee   :  { %v8093_v12 = vld [vmem:[#allocation10 + $0x130] sm:$0xf0] }
 0x1f4   :  { %v2608_v60 = vpop.f32.mrf.mxu0 }
 0x1f5   :  { %v2609_v24 = vadd.f32 %v2608_v60, %v1002_v59  ;;  %v8152_v60 = vor.u32 %v10010_v56, %v8149_v57  ;;  %v8075_v59 = vld [vmem:[#allocation10 + $0x100] sm:$0xf]  ;;  %v7988_v57 = vor.u32 %v9974_v18, %v7987_v45  ;;  %v8099_v45 = vld [vmem:[#allocation10 + $0x118] sm:$0xf] }
 0x1f6   :  { %v10000_v18 = vld [vmem:[#allocation10 + $0x134] sm:$0xf0] }
 0x1f7   :  { %v2621_v53 = vpop.f32.mrf.mxu1  ;;  %3477 = vmatpush.bf16.msrb.mxu3 %v8152_v60  ;;  %v7955_v60 = vld [vmem:[#allocation10 + $0x8] sm:$0xf] }
 0x1f8   :  { %v2622_v10 = vadd.f32 %v2621_v53, %v2609_v24  ;;  %v10001_v53 = vld [vmem:[#allocation10 + $0x144] sm:$0xf] }
 0x1fc   :  { %v2610_v0 = vpop.f32.mrf.mxu0 }
 0x1fd   :  { %v8108_v0 = vor.u32 %v10005_v58, %v8107_v49  ;;  %v9961_v49 = vld [vmem:[#allocation10 + $0x4] sm:$0xf] }
 0x1fe   :  { %v7949_v58 = vld [vmem:[#allocation10 + $0x20] sm:$0xf0] }
 0x1ff   :  { %v2623_v4 = vpop.f32.mrf.mxu1  ;;  %3439 = vmatpush.bf16.msrb.mxu0 %v8108_v0  ;;  %v7957_v0 = vld [vmem:[#allocation10 + $0x28] sm:$0xf0] }
 0x200   :  { %v10006_v4 = vld [vmem:[#allocation10 + $0x164] sm:$0xf0] }
 0x201   :  { %v2647_v6 = vpop.f32.mrf.mxu3  ;;  %v8116_v19 = vor.u32 %v10006_v4, %v8115_v63  ;;  %v9962_v63 = vld [vmem:[#allocation10 + $0xc] sm:$0xf]  ;;  %v8187_v4 = vld [vmem:[#allocation10 + $0x1d0] sm:$0xf] }
 0x202   :  { %v2634_v5 = vpop.f32.mrf.mxu2 }
 0x203   :  { %v2635_v15 = vadd.f32 %v2634_v5, %v2622_v10  ;;  %v8117_v5 = vld [vmem:[#allocation10 + $0x168] sm:$0xf0]  ;;  %v8077_v10 = vld [vmem:[#allocation10 + $0x120] sm:$0xf0]  ;;  %3465 = vmatpush.bf16.msrb.mxu2 %v8116_v19  ;;  %v8189_v19 = vld [vmem:[#allocation10 + $0x1f0] sm:$0xf0] }
 0x204   :  { %v8120_v24 = vor.u32 %v10002_v14, %v8117_v5  ;;  %v10023_v14 = vld [vmem:[#allocation10 + $0x1ec] sm:$0xf0]  ;;  %v10019_v5 = vld [vmem:[#allocation10 + $0x1d4] sm:$0xf] }
 0x205   :  { %v2648_v17 = vadd.f32 %v2647_v6, %v2635_v15  ;;  %v8112_v6 = vor.u32 %v10001_v53, %v8109_v62  ;;  %v9998_v15 = vld [vmem:[#allocation10 + $0x124] sm:$0xf0]  ;;  %v7992_v53 = vor.u32 %v9970_v47, %v7989_v51  ;;  %v8096_v47 = vor.u32 %v9995_v61, %v8093_v12  ;;  %v10032_v12 = vld [vmem:[#allocation12 + $0x38] sm:$0xff] }
 0x206   :  { %3478 = vmatpush.bf16.msrb.mxu3 %v8120_v24  ;;  %v9966_v62 = vld [vmem:[#allocation10 + $0x24] sm:$0xf0]  ;;  %v8100_v51 = vor.u32 %v10000_v18, %v8099_v45  ;;  %v10040_v45 = vld [vmem:[#allocation12 + $0x78] sm:$0xff] }
 0x207   :  { %3452 = vmatpush.bf16.msrb.mxu1 %v8112_v6  ;;  %v7948_v6 = vor.u32 %v9965_v1, %v7947_v55  ;;  %v7956_v24 = vor.u32 %v9966_v62, %v7955_v60  ;;  %v8101_v55 = vld [vmem:[#allocation10 + $0x138] sm:$0xf0]  ;;  %v8061_v60 = vld [vmem:[#allocation10 + $0xf0] sm:$0xf0]  ;;  %v9992_v62 = vld [vmem:[#allocation10 + $0xf4] sm:$0xf0] }
 0x208   :  { %v10048_v18 = vld [vmem:[#allocation12 + $0xb8] sm:$0xff] }
 0x209   :  { %v2649_v8 = vpop.f32.mrf.mxu3 }
 0x20a   :  { %v2636_v7 = vpop.f32.mrf.mxu2  ;;  %v9993_v8 = vld [vmem:[#allocation10 + $0x104] sm:$0xf] }
 0x20b   :  { %v9997_v7 = vld [vmem:[#allocation10 + $0x11c] sm:$0xf0] }
 0x214   :  { %v2660_v13 = vpop.f32.mrf.mxu0 }
 0x215   :  { %v2661_v20 = vadd.f32 %v2660_v13, %v2648_v17  ;;  %v8083_v13 = vld [vmem:[#allocation10 + $0x108] sm:$0xf]  ;;  %v8085_v17 = vld [vmem:[#allocation10 + $0x128] sm:$0xf0] }
 0x217   :  { %v2673_v3 = vpop.f32.mrf.mxu1 }
 0x218   :  { %v2674_v23 = vadd.f32 %v2673_v3, %v2661_v20  ;;  %v9994_v3 = vld [vmem:[#allocation10 + $0x10c] sm:$0xf]  ;;  %v8076_v20 = vor.u32 %v9997_v7, %v8075_v59  ;;  %v8195_v59 = vld [vmem:[#allocation10 + $0x1d8] sm:$0xf] }
 0x219   :  { %v10024_v7 = vld [vmem:[#allocation10 + $0x1f4] sm:$0xf0] }
 0x21a   :  { %3440 = vmatpush.bf16.msrb.mxu0 %v8076_v20  ;;  %v8196_v20 = vor.u32 %v10024_v7, %v8195_v59  ;;  %v9979_v59 = vld [vmem:[#allocation10 + $0x94] sm:$0xf] }
 0x21b   :  { %v8029_v7 = vld [vmem:[#allocation10 + $0xb0] sm:$0xf0] }
 0x21c   :  { %v2662_v21 = vpop.f32.mrf.mxu0 }
 0x21d   :  { %v8080_v21 = vor.u32 %v9993_v8, %v8077_v10  ;;  %v7952_v8 = vor.u32 %v9961_v49, %v7949_v58  ;;  %v10020_v10 = vld [vmem:[#allocation10 + $0x1dc] sm:$0xf]  ;;  %v9987_v49 = vld [vmem:[#allocation10 + $0xd4] sm:$0xf] }
 0x21f   :  { %v2675_v22 = vpop.f32.mrf.mxu1  ;;  %3453 = vmatpush.bf16.msrb.mxu1 %v8080_v21  ;;  %v8155_v21 = vld [vmem:[#allocation10 + $0x190] sm:$0xf] }
 0x220   :  { %v8084_v22 = vor.u32 %v9998_v15, %v8083_v13  ;;  %v8197_v13 = vld [vmem:[#allocation10 + $0x1f8] sm:$0xf0]  ;;  %v7960_v15 = vor.u32 %v9962_v63, %v7957_v0  ;;  %v8064_v63 = vor.u32 %v9987_v49, %v8061_v60  ;;  %v10054_v49 = vld [vmem:[#allocation12 + $0xe8] sm:$0xff]  ;;  %v10037_v60 = vld [vmem:[#allocation12 + $0x60] sm:$0xff] }
 0x221   :  { %v2699_v2 = vpop.f32.mrf.mxu3 }
 0x222   :  { %v2686_v25 = vpop.f32.mrf.mxu2  ;;  %3466 = vmatpush.bf16.msrb.mxu2 %v8084_v22  ;;  %v10015_v22 = vld [vmem:[#allocation10 + $0x1ac] sm:$0xf0] }
 0x223   :  { %v2687_v26 = vadd.f32 %v2686_v25, %v2674_v23  ;;  %v8043_v23 = vld [vmem:[#allocation10 + $0xc0] sm:$0xf] }
 0x224   :  { %v9989_v25 = vld [vmem:[#allocation10 + $0xdc] sm:$0xf0] }
 0x225   :  { %v2700_v27 = vadd.f32 %v2699_v2, %v2687_v26  ;;  %v9985_v26 = vld [vmem:[#allocation10 + $0xc4] sm:$0xf]  ;;  %v8088_v2 = vor.u32 %v9994_v3, %v8085_v17  ;;  %v8188_v3 = vor.u32 %v10023_v14, %v8187_v4  ;;  %v8192_v17 = vor.u32 %v10019_v5, %v8189_v19  ;;  %v9988_v4 = vld [vmem:[#allocation10 + $0xdc] sm:$0xf]  ;;  %v8027_v5 = vld [vmem:[#allocation10 + $0x90] sm:$0xf] }
 0x226   :  { %v8069_v14 = vld [vmem:[#allocation10 + $0xf8] sm:$0xf0]  ;;  %v9983_v19 = vld [vmem:[#allocation10 + $0xac] sm:$0xf0] }
 0x227   :  { %vm2706_vm11 = vcmp.gt.f32.partialorder %v2700_v27, 0.0  ;;  %v2710_v28 = vmul.f32 0.01, %v2700_v27  ;;  %3479 = vmatpush.bf16.msrb.mxu3 %v8088_v2  ;;  %v8163_v2 = vld [vmem:[#allocation10 + $0x198] sm:$0xf] }
 0x229   :  { %v2714_v46 = vsel %vm2706_vm11, %v2700_v27, %v2710_v28  ;;  %v2701_v30 = vpop.f32.mrf.mxu3  ;;  %v8045_v27 = vld [vmem:[#allocation10 + $0xe0] sm:$0xf0]  ;;  %v8051_v28 = vld [vmem:[#allocation10 + $0xc8] sm:$0xf] }
 0x22a   :  { %v2718_v48 = vpack.c.bf16 %v2714_v46, %v2714_v46  ;;  %v2688_v29 = vpop.f32.mrf.mxu2  ;;  %v9990_v46 = vld [vmem:[#allocation10 + $0xe4] sm:$0xf0]  ;;  %v8044_v30 = vor.u32 %v9989_v25, %v8043_v23  ;;  %v10011_v23 = vld [vmem:[#allocation10 + $0x194] sm:$0xf]  ;;  %v8200_v25 = vor.u32 %v10020_v10, %v8197_v13  ;;  %v8035_v10 = vld [vmem:[#allocation10 + $0x98] sm:$0xf] }
 0x22b   :  { %v8053_v29 = vld [vmem:[#allocation10 + $0xe8] sm:$0xf0]  ;;  %v9984_v13 = vld [vmem:[#allocation10 + $0xb4] sm:$0xf0] }
 0x22c   :  { %3026 = vmatmul.bf16.vlgmr.msra.gmra.mxu3 %v2718_v48  ;;  %v9986_v48 = vld [vmem:[#allocation10 + $0xcc] sm:$0xf]  ;;  %3441 = vmatpush.bf16.msrb.mxu0 %v8044_v30 }
 0x234   :  { %v2988_v32 = vpop.f32.mrf.mxu0 }
 0x235   :  { %v2989_v33 = vadd.f32 %v10393_v31, %v2988_v32  ;;  %v3001_v54 = vpop.f32.mrf.mxu1  ;;  %v8048_v31 = vor.u32 %v9985_v26, %v8045_v27  ;;  %v8052_v32 = vor.u32 %v9990_v46, %v8051_v28  ;;  %v8157_v26 = vld [vmem:[#allocation10 + $0x1b0] sm:$0xf0]  ;;  %v10016_v27 = vld [vmem:[#allocation10 + $0x1b4] sm:$0xf0]  ;;  %v10012_v46 = vld [vmem:[#allocation10 + $0x19c] sm:$0xf] }
 0x236   :  { %v8160_v30 = vor.u32 %v10011_v23, %v8157_v26  ;;  %v9971_v23 = vld [vmem:[#allocation10 + $0x54] sm:$0xf]  ;;  %v8003_v26 = vld [vmem:[#allocation10 + $0x58] sm:$0xf] }
 0x237   :  { %v10897_v11 = vadd.f32 %v3001_v54, %v2989_v33  ;;  %v8011_v33 = vld [vmem:[#allocation10 + $0x80] sm:$0xf]  ;;  %3454 = vmatpush.bf16.msrb.mxu1 %v8048_v31  ;;  %3467 = vmatpush.bf16.msrb.mxu2 %v8052_v32  ;;  %v8164_v31 = vor.u32 %v10016_v27, %v8163_v2  ;;  %v9976_v27 = vld [vmem:[#allocation10 + $0x74] sm:$0xf0] }
 0x238   :  { %v9981_v54 = vld [vmem:[#allocation10 + $0x9c] sm:$0xf0] }
 0x239   :  { %v8012_v40 = vor.u32 %v9981_v54, %v8011_v33  ;;  %v8123_v33 = vld [vmem:[#allocation10 + $0x150] sm:$0xf] }
 0x23a   :  { %v10007_v54 = vld [vmem:[#allocation10 + $0x16c] sm:$0xf0] }
 0x23b   :  { %3442 = vmatpush.bf16.msrb.mxu0 %v8012_v40  ;;  %3468 = vmatpush.bf16.msrb.mxu2 %v8020_v50  ;;  %v10004_v40 = vld [vmem:[#allocation10 + $0x15c] sm:$0xf] }
 0x23c   :  { %v2990_v34 = vpop.f32.mrf.mxu0 }
 0x23d   :  { %v3003_v35 = vpop.f32.mrf.mxu1  ;;  %v9977_v34 = vld [vmem:[#allocation10 + $0x84] sm:$0xf] }
 0x23e   :  { %v8056_v35 = vor.u32 %v9986_v48, %v8053_v29  ;;  %v8016_v41 = vor.u32 %v9977_v34, %v8013_v36  ;;  %v8165_v48 = vld [vmem:[#allocation10 + $0x1b8] sm:$0xf0]  ;;  %v8156_v29 = vor.u32 %v10015_v22, %v8155_v21  ;;  %v10003_v34 = vld [vmem:[#allocation10 + $0x154] sm:$0xf]  ;;  %v9975_v21 = vld [vmem:[#allocation10 + $0x6c] sm:$0xf0] }
 0x23f   :  { %3443 = vmatpush.bf16.msrb.mxu0 %v7980_v52  ;;  %3469 = vmatpush.bf16.msrb.mxu2 %v7988_v57  ;;  %v8168_v32 = vor.u32 %v10012_v46, %v8165_v48  ;;  %v8125_v36 = vld [vmem:[#allocation10 + $0x170] sm:$0xf0]  ;;  %v9996_v52 = vld [vmem:[#allocation10 + $0x11c] sm:$0xf]  ;;  %v9991_v57 = vld [vmem:[#allocation10 + $0xec] sm:$0xf0] }
 0x240   :  { %3480 = vmatpush.bf16.msrb.mxu3 %v8056_v35  ;;  %3455 = vmatpush.bf16.msrb.mxu1 %v8016_v41  ;;  %v8124_v35 = vor.u32 %v10007_v54, %v8123_v33  ;;  %v8128_v39 = vor.u32 %v10003_v34, %v8125_v36  ;;  %v8133_v41 = vld [vmem:[#allocation10 + $0x178] sm:$0xf0]  ;;  %v8104_v1 = vor.u32 %v9996_v52, %v8101_v55  ;;  %v7965_v54 = vld [vmem:[#allocation10 + $0x30] sm:$0xf0]  ;;  %v7971_v34 = vld [vmem:[#allocation10 + $0x18] sm:$0xf] }
 0x241   :  { %v8136_v50 = vor.u32 %v10004_v40, %v8133_v41  ;;  %v8005_v46 = vld [vmem:[#allocation10 + $0x78] sm:$0xf0]  ;;  %v10031_v52 = vld [vmem:[#allocation12 + $0x30] sm:$0xff] }
 0x242   :  { %v9964_v36 = vld [vmem:[#allocation10 + $0x1c] sm:$0xf]  ;;  %v10039_v55 = vld [vmem:[#allocation12 + $0x70] sm:$0xff] }
 0x243   :  { %3444 = vmatpush.bf16.msrb.mxu0 %v7948_v6  ;;  %3470 = vmatpush.bf16.msrb.mxu2 %v7956_v24  ;;  %v8072_v6 = vor.u32 %v9988_v4, %v8069_v14  ;;  %v8032_v24 = vor.u32 %v9979_v59, %v8029_v7  ;;  %v7976_v40 = vor.u32 %v9964_v36, %v7973_v37  ;;  %v10044_v4 = vld [vmem:[#allocation12 + $0x98] sm:$0xff]  ;;  %v10051_v59 = vld [vmem:[#allocation12 + $0xd0] sm:$0xff]  ;;  %v10026_v7 = vld [vmem:[#allocation12 + $0x8] sm:$0xff] }
 0x244   :  { %3481 = vmatpush.bf16.msrb.mxu3 %v8024_v44  ;;  %3456 = vmatpush.bf16.msrb.mxu1 %v7984_v9  ;;  %v8092_v44 = vor.u32 %v9999_v43, %v8091_v42  ;;  %v8059_v9 = vld [vmem:[#allocation10 + $0xd0] sm:$0xf]  ;;  %v10052_v14 = vld [vmem:[#allocation12 + $0xd8] sm:$0xff]  ;;  %v10301_v36 = vld [vmem:[#allocation13 + $0x79c] sm:$0xf0] }
 0x245   :  { %v8060_v58 = vor.u32 %v9991_v57, %v8059_v9  ;;  %v10038_v9 = vld [vmem:[#allocation12 + $0x68] sm:$0xff] }
 0x246   :  { %v10046_v57 = vld [vmem:[#allocation12 + $0xa8] sm:$0xff] }
 0x247   :  { %3489 = vmatpush.bf16.msra.mxu0 %v8188_v3  ;;  %3515 = vmatpush.bf16.msra.mxu2 %v8196_v20  ;;  %v8036_v3 = vor.u32 %v9984_v13, %v8035_v10  ;;  %v7995_v20 = vld [vmem:[#allocation10 + $0x50] sm:$0xf]  ;;  %v10042_v10 = vld [vmem:[#allocation12 + $0x88] sm:$0xff] }
 0x248   :  { %3482 = vmatpush.bf16.msrb.mxu3 %v7992_v53  ;;  %3457 = vmatpush.bf16.msrb.mxu1 %v7952_v8  ;;  %v8067_v53 = vld [vmem:[#allocation10 + $0xd8] sm:$0xf]  ;;  %v8028_v8 = vor.u32 %v9983_v19, %v8027_v5  ;;  %v7996_v2 = vor.u32 %v9975_v21, %v7995_v20  ;;  %v10027_v5 = vld [vmem:[#allocation12 + $0x10] sm:$0xff]  ;;  %v10050_v13 = vld [vmem:[#allocation12 + $0xc8] sm:$0xff] }
 0x249   :  { %v8068_v0 = vor.u32 %v9992_v62, %v8067_v53  ;;  %v10045_v53 = vld [vmem:[#allocation12 + $0xa0] sm:$0xff]  ;;  %v10043_v19 = vld [vmem:[#allocation12 + $0x90] sm:$0xff] }
 0x24a   :  { %v10053_v62 = vld [vmem:[#allocation12 + $0xe0] sm:$0xff] }
 0x24b   :  { %3490 = vmatpush.bf16.msra.mxu0 %v8156_v29  ;;  %3516 = vmatpush.bf16.msra.mxu2 %v8164_v31  ;;  %v8004_v29 = vor.u32 %v9976_v27, %v8003_v26  ;;  %v9967_v31 = vld [vmem:[#allocation10 + $0x2c] sm:$0xf0]  ;;  %v10025_v20 = vld [vmem:[#allocation12] sm:$0xff] }
 0x24c   :  { %3483 = vmatpush.bf16.msrb.mxu3 %v7960_v15  ;;  %3502 = vmatpush.bf16.msra.mxu1 %v8192_v17  ;;  %v9980_v15 = vld [vmem:[#allocation10 + $0x9c] sm:$0xf]  ;;  %v10033_v21 = vld [vmem:[#allocation12 + $0x40] sm:$0xff] }
 0x24d   :  { %v8037_v17 = vld [vmem:[#allocation10 + $0xb8] sm:$0xf0]  ;;  %v10309_v26 = vld [vmem:[#allocation13 + $0x7dc] sm:$0xf0] }
 0x24e   :  { %v8040_v22 = vor.u32 %v9980_v15, %v8037_v17  ;;  %v10117_v15 = vld [vmem:[#allocation13 + $0x1dc] sm:$0xf0] }
 0x24f   :  { %3491 = vmatpush.bf16.msra.mxu0 %v8124_v35  ;;  %3517 = vmatpush.bf16.msra.mxu2 %v8132_v16  ;;  %v9968_v35 = vld [vmem:[#allocation10 + $0x34] sm:$0xf0]  ;;  %v10181_v17 = vld [vmem:[#allocation13 + $0x3dc] sm:$0xf0] }
 0x250   :  { %3528 = vmatpush.bf16.msra.mxu3 %v8200_v25  ;;  %3503 = vmatpush.bf16.msra.mxu1 %v8160_v30  ;;  %v7997_v25 = vld [vmem:[#allocation10 + $0x70] sm:$0xf0]  ;;  %v7963_v30 = vld [vmem:[#allocation10 + $0x10] sm:$0xf]  ;;  %v7972_v16 = vor.u32 %v9968_v35, %v7971_v34  ;;  %v10237_v34 = vld [vmem:[#allocation13 + $0x59c] sm:$0xf0] }
 0x251   :  { %v8000_v48 = vor.u32 %v9971_v23, %v7997_v25  ;;  %v7964_v38 = vor.u32 %v9967_v31, %v7963_v30  ;;  %v10245_v23 = vld [vmem:[#allocation13 + $0x5dc] sm:$0xf0] }
 0x252   :  { %v9323_v25 = vld [vmem:[#allocation13 + $0x7c0] sm:$0xf] }
 0x253   :  { %3492 = vmatpush.bf16.msra.mxu0 %v8092_v44  ;;  %3518 = vmatpush.bf16.msra.mxu2 %v8100_v51  ;;  %v10041_v30 = vld [vmem:[#allocation12 + $0x80] sm:$0xff] }
 0x254   :  { %3529 = vmatpush.bf16.msra.mxu3 %v8168_v32  ;;  %3504 = vmatpush.bf16.msra.mxu1 %v8128_v39  ;;  %v9963_v32 = vld [vmem:[#allocation10 + $0x14] sm:$0xf]  ;;  %v10049_v31 = vld [vmem:[#allocation12 + $0xc0] sm:$0xff] }
 0x255   :  { %v7968_v39 = vor.u32 %v9963_v32, %v7965_v54  ;;  %v9035_v54 = vld [vmem:[#allocation13 + $0x580] sm:$0xf] }
 0x256   :  { %v9291_v35 = vld [vmem:[#allocation13 + $0x780] sm:$0xf] }
 0x257   :  { %3493 = vmatpush.bf16.msra.mxu0 %v8060_v58  ;;  %3519 = vmatpush.bf16.msra.mxu2 %v8068_v0  ;;  %v10029_v58 = vld [vmem:[#allocation12 + $0x20] sm:$0xff]  ;;  %v10036_v0 = vld [vmem:[#allocation12 + $0x58] sm:$0xff] }
 0x258   :  { %3530 = vmatpush.bf16.msra.mxu3 %v8136_v50  ;;  %3505 = vmatpush.bf16.msra.mxu1 %v8096_v47  ;;  %v10056_v47 = vld [vmem:[#allocation12 + $0xf8] sm:$0xff] }
 0x25b   :  { %3494 = vmatpush.bf16.msra.mxu0 %v8028_v8  ;;  %3520 = vmatpush.bf16.msra.mxu2 %v8036_v3  ;;  %v10034_v8 = vld [vmem:[#allocation12 + $0x48] sm:$0xff]  ;;  %v8811_v3 = vld [vmem:[#allocation13 + $0x3c0] sm:$0xf] }
 0x25c   :  { %3531 = vmatpush.bf16.msra.mxu3 %v8104_v1  ;;  %3506 = vmatpush.bf16.msra.mxu1 %v8064_v63  ;;  %v10030_v1 = vld [vmem:[#allocation12 + $0x28] sm:$0xff]  ;;  %v10028_v63 = vld [vmem:[#allocation12 + $0x18] sm:$0xff]  ;;  %v8812_v27 = vor.u32 %v10181_v17, %v8811_v3  ;;  %v9195_v3 = vld [vmem:[#allocation13 + $0x6c0] sm:$0xf] }
 0x25f   :  { %3495 = vmatpush.bf16.msra.mxu0 %v7996_v2  ;;  %3521 = vmatpush.bf16.msra.mxu2 %v8004_v29  ;;  %v10173_v29 = vld [vmem:[#allocation13 + $0x39c] sm:$0xf0] }
 0x260   :  { %3532 = vmatpush.bf16.msra.mxu3 %v8072_v6  ;;  %3507 = vmatpush.bf16.msra.mxu1 %v8032_v24  ;;  %v10035_v6 = vld [vmem:[#allocation12 + $0x50] sm:$0xff]  ;;  %v8555_v24 = vld [vmem:[#allocation13 + $0x1c0] sm:$0xf] }
 0x261   :  { %v8556_v2 = vor.u32 %v10117_v15, %v8555_v24  ;;  %v10213_v15 = vld [vmem:[#allocation13 + $0x4dc] sm:$0xf0] }
 0x263   :  { %3496 = vmatpush.bf16.msra.mxu0 %v7964_v38  ;;  %3522 = vmatpush.bf16.msra.mxu2 %v7972_v16  ;;  %v10101_v16 = vld [vmem:[#allocation13 + $0x15c] sm:$0xf0] }
 0x264   :  { %3533 = vmatpush.bf16.msra.mxu3 %v8040_v22  ;;  %3508 = vmatpush.bf16.msra.mxu1 %v8000_v48  ;;  %v9067_v22 = vld [vmem:[#allocation13 + $0x5c0] sm:$0xf] }
 0x265   :  { %v8779_v48 = vld [vmem:[#allocation13 + $0x380] sm:$0xf]  ;;  %v9068_v32 = vor.u32 %v10245_v23, %v9067_v22 }
 0x266   :  { %v8780_v38 = vor.u32 %v10173_v29, %v8779_v48  ;;  %v8363_v22 = vld [vmem:[#allocation13 + $0x40] sm:$0xf] }
 0x267   :  { %v10069_v23 = vld [vmem:[#allocation13 + $0x5c] sm:$0xf0] }
 0x268   :  { %3509 = vmatpush.bf16.msra.mxu1 %v7968_v39  ;;  %v8491_v39 = vld [vmem:[#allocation13 + $0x140] sm:$0xf] }
 0x269   :  { %v9163_v48 = vld [vmem:[#allocation13 + $0x680] sm:$0xf] }
 0x26f   :  { %v10899_v56 = vpop.f32.mrf.mxu2 }
 0x270   :  { %v3015_v41 = vadd.f32 %v10899_v56, %v10897_v11  ;;  %v10047_v11 = vld [vmem:[#allocation12 + $0xb0] sm:$0xff] }
 0x271   :  { %v10055_v56 = vld [vmem:[#allocation12 + $0xf0] sm:$0xff] }
 0x277   :  { %v3016_v28 = vpop.f32.mrf.mxu2 }
 0x278   :  { %v9972_v28 = vld [vmem:[#allocation10 + $0x5c] sm:$0xf] }
 0x279   :  { %v8008_v33 = vor.u32 %v9972_v28, %v8005_v46  ;;  %v8523_v28 = vld [vmem:[#allocation13 + $0x180] sm:$0xf] }
 0x27a   :  { %v10109_v46 = vld [vmem:[#allocation13 + $0x19c] sm:$0xf0] }
 0x27b   :  { %3534 = vmatpush.bf16.msra.mxu3 %v8008_v33  ;;  %v9324_v33 = vor.u32 %v10309_v26, %v9323_v25  ;;  %v8524_v37 = vor.u32 %v10109_v46, %v8523_v28  ;;  %v8619_v25 = vld [vmem:[#allocation13 + $0x240] sm:$0xf]  ;;  %v8364_v26 = vor.u32 %v10069_v23, %v8363_v22  ;;  %v9325_v22 = vld [vmem:[#allocation13 + $0x7e0] sm:$0xf0] }
 0x27c   :  { %v8907_v28 = vld [vmem:[#allocation13 + $0x480] sm:$0xf]  ;;  %v10097_v23 = vld [vmem:[#allocation13 + $0x144] sm:$0xf] }
 0x27d   :  { %v10205_v46 = vld [vmem:[#allocation13 + $0x49c] sm:$0xf0] }
 0x27e   :  { %v8908_v29 = vor.u32 %v10205_v46, %v8907_v28  ;;  %v8749_v28 = vld [vmem:[#allocation13 + $0x360] sm:$0xf0] }
 0x27f   :  { %3535 = vmatpush.bf16.msra.mxu3 %v7976_v40  ;;  %v8747_v40 = vld [vmem:[#allocation13 + $0x340] sm:$0xf] }
 0x2af   :  { %v3027_v50 = vpop.f32.mrf.mxu3 }
 0x2b0   :  { %v3028_v42 = vadd.f32 %v3027_v50, %v3015_v41  ;;  %v10165_v41 = vld [vmem:[#allocation13 + $0x35c] sm:$0xf0]  ;;  %v9036_v50 = vor.u32 %v10237_v34, %v9035_v54 }
 0x2b1   :  { %v8587_v54 = vld [vmem:[#allocation13 + $0x200] sm:$0xf] }
 0x2b2   :  { %vm3031_vm12 = vcmp.gt.f32.partialorder %v3028_v42, 0.0  ;;  %v3032_v43 = vmul.f32 0.01, %v3028_v42 }
 0x2b4   :  { %v3033_v61 = vsel %vm3031_vm12, %v3028_v42, %v3032_v43  ;;  %v9292_v42 = vor.u32 %v10301_v36, %v9291_v35  ;;  %v9003_v43 = vld [vmem:[#allocation13 + $0x540] sm:$0xf] }
 0x2b5   :  { %v3034_v44 = vpack.c.bf16 %v3033_v61, %v3033_v61  ;;  %v10229_v61 = vld [vmem:[#allocation13 + $0x55c] sm:$0xf0] }
 0x2b6   :  { %v10125_v35 = vld [vmem:[#allocation13 + $0x21c] sm:$0xf0] }
 0x2b7   :  { %v3029_v51 = vpop.f32.mrf.mxu3  ;;  %3445 = vmatmul.bf16.vlgmr.msrb.gmra.mxu0 %v3034_v44  ;;  %3458 = vmatmul.bf16.vlgmr.msrb.gmra.mxu1 %v3034_v44  ;;  %v8588_v36 = vor.u32 %v10125_v35, %v8587_v54  ;;  %v10233_v35 = vld [vmem:[#allocation13 + $0x584] sm:$0xf] }
 0x2b8   :  { %3471 = vmatmul.bf16.vlgmr.msrb.gmra.mxu2 %v3034_v44  ;;  %3484 = vmatmul.bf16.vlgmr.msrb.gmra.mxu3 %v3034_v44  ;;  %v10093_v51 = vld [vmem:[#allocation13 + $0x11c] sm:$0xf0] }
 0x2b9   :  { %3829 = vmatpush.bf16.msrb.mxu0 %v10032_v12  ;;  %3842 = vmatpush.bf16.msrb.mxu1 %v10040_v45  ;;  %v10293_v12 = vld [vmem:[#allocation13 + $0x75c] sm:$0xf0]  ;;  %v8492_v45 = vor.u32 %v10101_v16, %v8491_v39 }
 0x2ba   :  { %3855 = vmatpush.bf16.msrb.mxu2 %v10048_v18  ;;  %3868 = vmatpush.bf16.msrb.mxu3 %v10056_v47  ;;  %v8748_v18 = vor.u32 %v10165_v41, %v8747_v40  ;;  %v8459_v47 = vld [vmem:[#allocation13 + $0x100] sm:$0xf] }
 0x2bb   :  { %v9131_v39 = vld [vmem:[#allocation13 + $0x640] sm:$0xf] }
 0x2bc   :  { %v10261_v40 = vld [vmem:[#allocation13 + $0x65c] sm:$0xf0] }
 0x2bd   :  { %3830 = vmatpush.bf16.msrb.mxu0 %v10031_v52  ;;  %3843 = vmatpush.bf16.msrb.mxu1 %v10039_v55  ;;  %v8715_v52 = vld [vmem:[#allocation13 + $0x300] sm:$0xf]  ;;  %v9132_v41 = vor.u32 %v10261_v40, %v9131_v39  ;;  %v9293_v40 = vld [vmem:[#allocation13 + $0x7a0] sm:$0xf0] }
 0x2be   :  { %3856 = vmatpush.bf16.msrb.mxu2 %v10047_v11  ;;  %3869 = vmatpush.bf16.msrb.mxu3 %v10055_v56  ;;  %v10157_v55 = vld [vmem:[#allocation13 + $0x31c] sm:$0xf0]  ;;  %v9004_v11 = vor.u32 %v10229_v61, %v9003_v43 }
 0x2bf   :  { %v9099_v61 = vld [vmem:[#allocation13 + $0x600] sm:$0xf] }
 0x2c1   :  { %3831 = vmatpush.bf16.msrb.mxu0 %v10030_v1  ;;  %3844 = vmatpush.bf16.msrb.mxu1 %v10038_v9  ;;  %v8971_v1 = vld [vmem:[#allocation13 + $0x500] sm:$0xf] }
 0x2c2   :  { %3857 = vmatpush.bf16.msrb.mxu2 %v10046_v57  ;;  %3870 = vmatpush.bf16.msrb.mxu3 %v10054_v49  ;;  %v10221_v9 = vld [vmem:[#allocation13 + $0x51c] sm:$0xf0] }
 0x2c3   :  { %v9227_v57 = vld [vmem:[#allocation13 + $0x700] sm:$0xf] }
 0x2c4   :  { %v10285_v49 = vld [vmem:[#allocation13 + $0x71c] sm:$0xf0] }
 0x2c5   :  { %3832 = vmatpush.bf16.msrb.mxu0 %v10029_v58  ;;  %3845 = vmatpush.bf16.msrb.mxu1 %v10037_v60  ;;  %v8460_v58 = vor.u32 %v10093_v51, %v8459_v47  ;;  %v8716_v60 = vor.u32 %v10157_v55, %v8715_v52 }
 0x2c6   :  { %3858 = vmatpush.bf16.msrb.mxu2 %v10045_v53  ;;  %3871 = vmatpush.bf16.msrb.mxu3 %v10053_v62  ;;  %v8427_v53 = vld [vmem:[#allocation13 + $0xc0] sm:$0xf] }
 0x2c7   :  { %3497 = vmatmul.bf16.vlgmr.msra.gmra.mxu0 %v3034_v44  ;;  %3510 = vmatmul.bf16.vlgmr.msra.gmra.mxu1 %v3034_v44  ;;  %v10085_v62 = vld [vmem:[#allocation13 + $0xdc] sm:$0xf0] }
 0x2c8   :  { %3523 = vmatmul.bf16.vlgmr.msra.gmra.mxu2 %v3034_v44  ;;  %3536 = vmatmul.bf16.vlgmr.msra.gmra.mxu3 %v3034_v44  ;;  %v9259_v44 = vld [vmem:[#allocation13 + $0x740] sm:$0xf] }
 0x2c9   :  { %3833 = vmatpush.bf16.msrb.mxu0 %v10028_v63  ;;  %3846 = vmatpush.bf16.msrb.mxu1 %v10036_v0  ;;  %v9260_v56 = vor.u32 %v10293_v12, %v9259_v44  ;;  %v8683_v63 = vld [vmem:[#allocation13 + $0x2c0] sm:$0xf] }
 0x2ca   :  { %3859 = vmatpush.bf16.msrb.mxu2 %v10044_v4  ;;  %3872 = vmatpush.bf16.msrb.mxu3 %v10052_v14  ;;  %v10149_v0 = vld [vmem:[#allocation13 + $0x2dc] sm:$0xf0]  ;;  %v8972_v4 = vor.u32 %v10221_v9, %v8971_v1  ;;  %v9228_v14 = vor.u32 %v10285_v49, %v9227_v57  ;;  %v8557_v1 = vld [vmem:[#allocation13 + $0x1e0] sm:$0xf0] }
 0x2cb   :  { %v10253_v44 = vld [vmem:[#allocation13 + $0x61c] sm:$0xf0]  ;;  %v10177_v9 = vld [vmem:[#allocation13 + $0x3c4] sm:$0xf] }
 0x2cc   :  { %v9100_v12 = vor.u32 %v10253_v44, %v9099_v61  ;;  %v8813_v57 = vld [vmem:[#allocation13 + $0x3e0] sm:$0xf0] }
 0x2cd   :  { %3834 = vmatpush.bf16.msrb.mxu0 %v10027_v5  ;;  %3847 = vmatpush.bf16.msrb.mxu1 %v10035_v6  ;;  %v8428_v5 = vor.u32 %v10085_v62, %v8427_v53  ;;  %v8684_v6 = vor.u32 %v10149_v0, %v8683_v63 }
 0x2ce   :  { %3860 = vmatpush.bf16.msrb.mxu2 %v10043_v19  ;;  %3873 = vmatpush.bf16.msrb.mxu3 %v10051_v59  ;;  %v8395_v19 = vld [vmem:[#allocation13 + $0x80] sm:$0xf] }
 0x2cf   :  { %v10077_v59 = vld [vmem:[#allocation13 + $0x9c] sm:$0xf0] }
 0x2d0   :  { %v8396_v24 = vor.u32 %v10077_v59, %v8395_v19  ;;  %v8525_v19 = vld [vmem:[#allocation13 + $0x1a0] sm:$0xf0] }
 0x2d1   :  { %3835 = vmatpush.bf16.msrb.mxu0 %v10026_v7  ;;  %3848 = vmatpush.bf16.msrb.mxu1 %v10034_v8  ;;  %v8651_v7 = vld [vmem:[#allocation13 + $0x280] sm:$0xf]  ;;  %v10169_v59 = vld [vmem:[#allocation13 + $0x384] sm:$0xf] }
 0x2d2   :  { %3861 = vmatpush.bf16.msrb.mxu2 %v10042_v10  ;;  %3874 = vmatpush.bf16.msrb.mxu3 %v10050_v13  ;;  %v10141_v8 = vld [vmem:[#allocation13 + $0x29c] sm:$0xf0] }
 0x2d3   :  { %v8652_v10 = vor.u32 %v10141_v8, %v8651_v7  ;;  %v8939_v13 = vld [vmem:[#allocation13 + $0x4c0] sm:$0xf]  ;;  %v8781_v7 = vld [vmem:[#allocation13 + $0x3a0] sm:$0xf0] }
 0x2d4   :  { %v8940_v17 = vor.u32 %v10213_v15, %v8939_v13  ;;  %v9069_v13 = vld [vmem:[#allocation13 + $0x5e0] sm:$0xf0] }
 0x2d5   :  { %3836 = vmatpush.bf16.msrb.mxu0 %v10025_v20  ;;  %3849 = vmatpush.bf16.msrb.mxu1 %v10033_v21  ;;  %v10277_v20 = vld [vmem:[#allocation13 + $0x6dc] sm:$0xf0] }
 0x2d6   :  { %3862 = vmatpush.bf16.msrb.mxu2 %v10041_v30  ;;  %3875 = vmatpush.bf16.msrb.mxu3 %v10049_v31  ;;  %v9196_v21 = vor.u32 %v10277_v20, %v9195_v3  ;;  %v10269_v30 = vld [vmem:[#allocation13 + $0x69c] sm:$0xf0] }
 0x2d7   :  { %v9164_v31 = vor.u32 %v10269_v30, %v9163_v48 }
 0x2d9   :  { %5454 = vmatpush.bf16.msra.mxu0 %v8556_v2  ;;  %5467 = vmatpush.bf16.msra.mxu1 %v8812_v27  ;;  %v10133_v2 = vld [vmem:[#allocation13 + $0x25c] sm:$0xf0] }
 0x2da   :  { %5480 = vmatpush.bf16.msra.mxu2 %v9068_v32  ;;  %5493 = vmatpush.bf16.msra.mxu3 %v9324_v33  ;;  %v8620_v27 = vor.u32 %v10133_v2, %v8619_v25  ;;  %v8331_v32 = vld [vmem:[#allocation13] sm:$0xf]  ;;  %v8493_v2 = vld [vmem:[#allocation13 + $0x160] sm:$0xf0] }
 0x2db   :  { %v10061_v33 = vld [vmem:[#allocation13 + $0x1c] sm:$0xf0] }
 0x2dc   :  { %v8332_v34 = vor.u32 %v10061_v33, %v8331_v32 }
 0x2dd   :  { %5455 = vmatpush.bf16.msra.mxu0 %v8524_v37  ;;  %5468 = vmatpush.bf16.msra.mxu1 %v8780_v38  ;;  %v8875_v37 = vld [vmem:[#allocation13 + $0x440] sm:$0xf] }
 0x2de   :  { %5481 = vmatpush.bf16.msra.mxu2 %v9036_v50  ;;  %5494 = vmatpush.bf16.msra.mxu3 %v9292_v42  ;;  %v10197_v38 = vld [vmem:[#allocation13 + $0x45c] sm:$0xf0] }
 0x2df   :  { %v8876_v16 = vor.u32 %v10197_v38, %v8875_v37  ;;  %v8843_v50 = vld [vmem:[#allocation13 + $0x400] sm:$0xf]  ;;  %v10297_v37 = vld [vmem:[#allocation13 + $0x784] sm:$0xf] }
 0x2e0   :  { %v10189_v42 = vld [vmem:[#allocation13 + $0x41c] sm:$0xf0] }
 0x2e1   :  { %5456 = vmatpush.bf16.msra.mxu0 %v8492_v45  ;;  %5469 = vmatpush.bf16.msra.mxu1 %v8748_v18  ;;  %v8844_v43 = vor.u32 %v10189_v42, %v8843_v50  ;;  %v10906_v45 = vld [vmem:[%s11023_s8] sm:$0xff]  ;;  %v8461_v50 = vld [vmem:[#allocation13 + $0x120] sm:$0xf0] }
 0x2e2   :  { %5482 = vmatpush.bf16.msra.mxu2 %v9004_v11  ;;  %5495 = vmatpush.bf16.msra.mxu3 %v9260_v56  ;;  %v3101_v18 = vperm.slane %v10906_v45, 0  ;;  %v3102_v47 = vperm.slane %v10906_v45, 1  ;;  %v10113_v56 = vld [vmem:[#allocation13 + $0x1c4] sm:$0xf]  ;;  %v3104_v53 = vperm.slane %v10906_v45, 3  ;;  %v3105_v30 = vperm.slane %v10906_v45, 4 }
 0x2e3   :  { %v8560_v0 = vor.u32 %v10113_v56, %v8557_v1  ;;  %v10153_v42 = vld [vmem:[#allocation13 + $0x304] sm:$0xf] }
 0x2e5   :  { %5457 = vmatpush.bf16.msra.mxu0 %v8460_v58  ;;  %5470 = vmatpush.bf16.msra.mxu1 %v8716_v60  ;;  %v3103_v60 = vperm.slane %v10906_v45, 2 }
 0x2e6   :  { %5483 = vmatpush.bf16.msra.mxu2 %v8972_v4  ;;  %5496 = vmatpush.bf16.msra.mxu3 %v9228_v14  ;;  %v8816_v4 = vor.u32 %v10177_v9, %v8813_v57  ;;  %v10105_v14 = vld [vmem:[#allocation13 + $0x184] sm:$0xf] }
 0x2e7   :  { %v8528_v25 = vor.u32 %v10105_v14, %v8525_v19  ;;  %v10289_v57 = vld [vmem:[#allocation13 + $0x744] sm:$0xf]  ;;  %v3108_v14 = vperm.slane %v10906_v45, 7 }
 0x2e8   :  { %v10217_v19 = vld [vmem:[#allocation13 + $0x504] sm:$0xf] }
 0x2e9   :  { %5458 = vmatpush.bf16.msra.mxu0 %v8428_v5  ;;  %5471 = vmatpush.bf16.msra.mxu1 %v8684_v6 }
 0x2ea   :  { %5484 = vmatpush.bf16.msra.mxu2 %v8940_v17  ;;  %5497 = vmatpush.bf16.msra.mxu3 %v9196_v21  ;;  %v10305_v21 = vld [vmem:[#allocation13 + $0x7c4] sm:$0xf] }
 0x2eb   :  { %v9328_v54 = vor.u32 %v10305_v21, %v9325_v22  ;;  %v8397_v21 = vld [vmem:[#allocation13 + $0xa0] sm:$0xf0] }
 0x2ec   :  { %v10137_v22 = vld [vmem:[#allocation13 + $0x284] sm:$0xf] }
 0x2ed   :  { %5459 = vmatpush.bf16.msra.mxu0 %v8396_v24  ;;  %5472 = vmatpush.bf16.msra.mxu1 %v8652_v10  ;;  %v10241_v10 = vld [vmem:[#allocation13 + $0x5c4] sm:$0xf] }
 0x2ee   :  { %5485 = vmatpush.bf16.msra.mxu2 %v8908_v29  ;;  %5498 = vmatpush.bf16.msra.mxu3 %v9164_v31  ;;  %v9072_v29 = vor.u32 %v10241_v10, %v9069_v13  ;;  %v3106_v31 = vperm.slane %v10906_v45, 5  ;;  %v9229_v10 = vld [vmem:[#allocation13 + $0x720] sm:$0xf0] }
 0x2ef   :  { %v10073_v13 = vld [vmem:[#allocation13 + $0x84] sm:$0xf] }
 0x2f1   :  { %5460 = vmatpush.bf16.msra.mxu0 %v8364_v26  ;;  %5473 = vmatpush.bf16.msra.mxu1 %v8620_v27  ;;  %v8784_v26 = vor.u32 %v10169_v59, %v8781_v7  ;;  %v10161_v27 = vld [vmem:[#allocation13 + $0x344] sm:$0xf] }
 0x2f2   :  { %5486 = vmatpush.bf16.msra.mxu2 %v8876_v16  ;;  %5499 = vmatpush.bf16.msra.mxu3 %v9132_v41  ;;  %v8752_v16 = vor.u32 %v10161_v27, %v8749_v28  ;;  %v10089_v41 = vld [vmem:[#allocation13 + $0x104] sm:$0xf] }
 0x2f3   :  { %v8973_v59 = vld [vmem:[#allocation13 + $0x520] sm:$0xf0] }
 0x2f5   :  { %5461 = vmatpush.bf16.msra.mxu0 %v8332_v34  ;;  %5474 = vmatpush.bf16.msra.mxu1 %v8588_v36  ;;  %v8496_v34 = vor.u32 %v10097_v23, %v8493_v2  ;;  %v9037_v36 = vld [vmem:[#allocation13 + $0x5a0] sm:$0xf0] }
 0x2f6   :  { %5487 = vmatpush.bf16.msra.mxu2 %v8844_v43  ;;  %5500 = vmatpush.bf16.msra.mxu3 %v9100_v12  ;;  %v8717_v43 = vld [vmem:[#allocation13 + $0x320] sm:$0xf0] }
 0x2f7   :  { %v8720_v9 = vor.u32 %v10153_v42, %v8717_v43  ;;  %v10201_v42 = vld [vmem:[#allocation13 + $0x484] sm:$0xf] }
 0x334   :  { %v3446_v51 = vpop.f32.mrf.mxu0  ;;  %v3459_v52 = vpop.f32.mrf.mxu1 }
 0x335   :  { %v3447_v55 = vadd.f32 %v3446_v51, %v3101_v18  ;;  %v3460_v11 = vadd.f32 %v3459_v52, %v3102_v47  ;;  %v9040_v47 = vor.u32 %v10233_v35, %v9037_v36  ;;  %v9296_v51 = vor.u32 %v10297_v37, %v9293_v40 }
 0x336   :  { %v8464_v52 = vor.u32 %v10089_v41, %v8461_v50 }
 0x337   :  { %vm3541_vm13 = vcmp.gt.f32.partialorder %v3447_v55, 0.0  ;;  %v3549_v49 = vmul.f32 0.01, %v3447_v55  ;;  %vm3542_vm14 = vcmp.gt.f32.partialorder %v3460_v11, 0.0  ;;  %v3550_v58 = vmul.f32 0.01, %v3460_v11 }
 0x339   :  { %v3557_v62 = vsel %vm3541_vm13, %v3447_v55, %v3549_v49  ;;  %v3558_v63 = vsel %vm3542_vm14, %v3460_v11, %v3550_v58  ;;  %v10225_v55 = vld [vmem:[#allocation13 + $0x544] sm:$0xf] }
 0x33a   :  { %v3565_v5 = vpack.c.bf16 %v3557_v62, %v3557_v62  ;;  %v3566_v6 = vpack.c.bf16 %v3558_v63, %v3558_v63  ;;  %v9005_v11 = vld [vmem:[#allocation13 + $0x560] sm:$0xf0] }
 0x33b   :  { %v3472_v8 = vpop.f32.mrf.mxu2  ;;  %v3485_v24 = vpop.f32.mrf.mxu3  ;;  %v9261_v49 = vld [vmem:[#allocation13 + $0x760] sm:$0xf0] }
 0x33c   :  { %v3473_v15 = vadd.f32 %v3472_v8, %v3103_v60  ;;  %v3486_v3 = vadd.f32 %v3485_v24, %v3104_v53  ;;  %v3448_v17 = vpop.f32.mrf.mxu0  ;;  %v3461_v20 = vpop.f32.mrf.mxu1  ;;  %3837 = vmatmul.bf16.vlgmr.msrb.gmra.mxu0 %v3565_v5  ;;  %3850 = vmatmul.bf16.vlgmr.msrb.gmra.mxu1 %v3566_v6  ;;  %v10081_v58 = vld [vmem:[#allocation13 + $0xc4] sm:$0xf]  ;;  %v9008_v5 = vor.u32 %v10225_v55, %v9005_v11 }
 0x33d   :  { %5506 = vmatpush.bf16.msrb.mxu0 %v8560_v0  ;;  %5519 = vmatpush.bf16.msrb.mxu1 %v8816_v4  ;;  %v8429_v60 = vld [vmem:[#allocation13 + $0xe0] sm:$0xf0]  ;;  %v3107_v4 = vperm.slane %v10906_v45, 6  ;;  %v9264_v6 = vor.u32 %v10289_v57, %v9261_v49  ;;  %v8563_v57 = vld [vmem:[#allocation13 + $0x1c8] sm:$0xf] }
 0x33e   :  { %vm3543_vm15 = vcmp.gt.f32.partialorder %v3473_v15, 0.0  ;;  %v3551_v46 = vmul.f32 0.01, %v3473_v15  ;;  %vm3544_vm0 = vcmp.gt.f32.partialorder %v3486_v3, 0.0  ;;  %v3552_v48 = vmul.f32 0.01, %v3486_v3 }
 0x33f   :  { %v10145_v53 = vld [vmem:[#allocation13 + $0x2c4] sm:$0xf]  ;;  %v8432_v17 = vor.u32 %v10081_v58, %v8429_v60  ;;  %v10118_v49 = vld [vmem:[#allocation13 + $0x1e4] sm:$0xf0] }
 0x340   :  { %v3559_v32 = vsel %vm3543_vm15, %v3473_v15, %v3551_v46  ;;  %v3560_v33 = vsel %vm3544_vm0, %v3486_v3, %v3552_v48  ;;  %v8685_v62 = vld [vmem:[#allocation13 + $0x2e0] sm:$0xf0] }
 0x341   :  { %v3567_v38 = vpack.c.bf16 %v3559_v32, %v3559_v32  ;;  %v3568_v39 = vpack.c.bf16 %v3560_v33, %v3560_v33  ;;  %5507 = vmatpush.bf16.msrb.mxu0 %v8528_v25  ;;  %5520 = vmatpush.bf16.msrb.mxu1 %v8784_v26  ;;  %v10281_v24 = vld [vmem:[#allocation13 + $0x704] sm:$0xf]  ;;  %v8688_v20 = vor.u32 %v10145_v53, %v8685_v62  ;;  %v8819_v53 = vld [vmem:[#allocation13 + $0x3c8] sm:$0xf] }
 0x342   :  { %v8653_v45 = vld [vmem:[#allocation13 + $0x2a0] sm:$0xf0]  ;;  %v8976_v26 = vor.u32 %v10217_v19, %v8973_v59  ;;  %v9232_v48 = vor.u32 %v10281_v24, %v9229_v10  ;;  %v10182_v62 = vld [vmem:[#allocation13 + $0x3e4] sm:$0xf0]  ;;  %v8564_v19 = vor.u32 %v10118_v49, %v8563_v57 }
 0x343   :  { %v3474_v61 = vpop.f32.mrf.mxu2  ;;  %v3487_v44 = vpop.f32.mrf.mxu3  ;;  %3863 = vmatmul.bf16.vlgmr.msrb.gmra.mxu2 %v3567_v38  ;;  %3876 = vmatmul.bf16.vlgmr.msrb.gmra.mxu3 %v3568_v39  ;;  %v8656_v32 = vor.u32 %v10137_v22, %v8653_v45  ;;  %v10273_v33 = vld [vmem:[#allocation13 + $0x6c4] sm:$0xf]  ;;  %v8820_v59 = vor.u32 %v10182_v62, %v8819_v53  ;;  %v8787_v24 = vld [vmem:[#allocation13 + $0x388] sm:$0xf] }
 0x344   :  { %5532 = vmatpush.bf16.msrb.mxu2 %v9072_v29  ;;  %5545 = vmatpush.bf16.msrb.mxu3 %v9328_v54  ;;  %v3498_v12 = vpop.f32.mrf.mxu0  ;;  %v3511_v18 = vpop.f32.mrf.mxu1  ;;  %v10209_v29 = vld [vmem:[#allocation13 + $0x4c4] sm:$0xf]  ;;  %v9235_v53 = vld [vmem:[#allocation13 + $0x708] sm:$0xf] }
 0x345   :  { %v3499_v56 = vadd.f32 %v3498_v12, %v3105_v30  ;;  %v3512_v1 = vadd.f32 %v3511_v18, %v3106_v31  ;;  %5508 = vmatpush.bf16.msrb.mxu0 %v8496_v34  ;;  %5521 = vmatpush.bf16.msrb.mxu1 %v8752_v16  ;;  %v8941_v30 = vld [vmem:[#allocation13 + $0x4e0] sm:$0xf0]  ;;  %v8400_v31 = vor.u32 %v10073_v13, %v8397_v21  ;;  %v10286_v62 = vld [vmem:[#allocation13 + $0x724] sm:$0xf0] }
 0x346   :  { %v9197_v54 = vld [vmem:[#allocation13 + $0x6e0] sm:$0xf0]  ;;  %v8944_v37 = vor.u32 %v10209_v29, %v8941_v30  ;;  %v10102_v30 = vld [vmem:[#allocation13 + $0x164] sm:$0xf0] }
 0x347   :  { %vm3545_vm1 = vcmp.gt.f32.partialorder %v3499_v56, 0.0  ;;  %v3553_v63 = vmul.f32 0.01, %v3499_v56  ;;  %vm3546_vm2 = vcmp.gt.f32.partialorder %v3512_v1, 0.0  ;;  %v3554_v0 = vmul.f32 0.01, %v3512_v1 }
 0x348   :  { %5533 = vmatpush.bf16.msrb.mxu2 %v9040_v47  ;;  %5546 = vmatpush.bf16.msrb.mxu3 %v9296_v51  ;;  %v10065_v34 = vld [vmem:[#allocation13 + $0x44] sm:$0xf]  ;;  %v9200_v50 = vor.u32 %v10273_v33, %v9197_v54 }
 0x349   :  { %v3561_v7 = vsel %vm3545_vm1, %v3499_v56, %v3553_v63  ;;  %v3562_v8 = vsel %vm3546_vm2, %v3512_v1, %v3554_v0  ;;  %5509 = vmatpush.bf16.msrb.mxu0 %v8464_v52  ;;  %5522 = vmatpush.bf16.msrb.mxu1 %v8720_v9  ;;  %v8365_v38 = vld [vmem:[#allocation13 + $0x60] sm:$0xf0] }
 0x34a   :  { %v10916_v15 = vpack.c.bf16 %v3561_v7, %v3561_v7  ;;  %v10918_v3 = vpack.c.bf16 %v3562_v8, %v3562_v8  ;;  %v10129_v39 = vld [vmem:[#allocation13 + $0x244] sm:$0xf]  ;;  %v8368_v47 = vor.u32 %v10065_v34, %v8365_v38  ;;  %v8531_v7 = vld [vmem:[#allocation13 + $0x188] sm:$0xf] }
 0x34b   :  { %v3524_v23 = vpop.f32.mrf.mxu2  ;;  %v3537_v25 = vpop.f32.mrf.mxu3  ;;  %v8621_v16 = vld [vmem:[#allocation13 + $0x260] sm:$0xf0]  ;;  %v10110_v8 = vld [vmem:[#allocation13 + $0x1a4] sm:$0xf0] }
 0x34c   :  { %v3525_v2 = vadd.f32 %v3524_v23, %v3107_v4  ;;  %v3538_v27 = vadd.f32 %v3537_v25, %v3108_v14  ;;  %5534 = vmatpush.bf16.msrb.mxu2 %v9008_v5  ;;  %5547 = vmatpush.bf16.msrb.mxu3 %v9264_v6  ;;  %v3500_v28 = vpop.f32.mrf.mxu0  ;;  %v3513_v46 = vpop.f32.mrf.mxu1  ;;  %v8909_v44 = vld [vmem:[#allocation13 + $0x4a0] sm:$0xf0]  ;;  %v8624_v51 = vor.u32 %v10129_v39, %v8621_v16  ;;  %v9075_v23 = vld [vmem:[#allocation13 + $0x5c8] sm:$0xf] }
 0x34d   :  { %5462 = vmatmul.bf16.vlgmr.msra.gmra.mxu0 %v10916_v15  ;;  %5475 = vmatmul.bf16.vlgmr.msra.gmra.mxu1 %v10918_v3  ;;  %v10265_v12 = vld [vmem:[#allocation13 + $0x684] sm:$0xf]  ;;  %v8912_v58 = vor.u32 %v10201_v42, %v8909_v44  ;;  %v10246_v25 = vld [vmem:[#allocation13 + $0x5e4] sm:$0xf0] }
 0x34e   :  { %vm3547_vm3 = vcmp.gt.f32.partialorder %v3525_v2, 0.0  ;;  %v3555_v35 = vmul.f32 0.01, %v3525_v2  ;;  %vm3548_vm4 = vcmp.gt.f32.partialorder %v3538_v27, 0.0  ;;  %v3556_v36 = vmul.f32 0.01, %v3538_v27  ;;  %5510 = vmatpush.bf16.msrb.mxu0 %v8432_v17  ;;  %5523 = vmatpush.bf16.msrb.mxu1 %v8688_v20 }
 0x34f   :  { %v9165_v18 = vld [vmem:[#allocation13 + $0x6a0] sm:$0xf0]  ;;  %v10174_v17 = vld [vmem:[#allocation13 + $0x3a4] sm:$0xf0]  ;;  %v9076_v33 = vor.u32 %v10246_v25, %v9075_v23 }
 0x350   :  { %v3563_v40 = vsel %vm3547_vm3, %v3525_v2, %v3555_v35  ;;  %v3564_v41 = vsel %vm3548_vm4, %v3538_v27, %v3556_v36  ;;  %5535 = vmatpush.bf16.msrb.mxu2 %v8976_v26  ;;  %5548 = vmatpush.bf16.msrb.mxu3 %v9232_v48  ;;  %v10057_v52 = vld [vmem:[#allocation13 + $0x4] sm:$0xf]  ;;  %v9168_v60 = vor.u32 %v10265_v12, %v9165_v18  ;;  %v9331_v26 = vld [vmem:[#allocation13 + $0x7c8] sm:$0xf] }
 0x351   :  { %v10922_v43 = vpack.c.bf16 %v3563_v40, %v3563_v40  ;;  %v10924_v61 = vpack.c.bf16 %v3564_v41, %v3564_v41  ;;  %v8333_v55 = vld [vmem:[#allocation13 + $0x20] sm:$0xf0]  ;;  %v10310_v2 = vld [vmem:[#allocation13 + $0x7e4] sm:$0xf0]  ;;  %v8532_v27 = vor.u32 %v10110_v8, %v8531_v7  ;;  %v8788_v28 = vor.u32 %v10174_v17, %v8787_v24 }
 0x352   :  { %5511 = vmatpush.bf16.msrb.mxu0 %v8400_v31  ;;  %5524 = vmatpush.bf16.msrb.mxu1 %v8656_v32  ;;  %v10121_v11 = vld [vmem:[#allocation13 + $0x204] sm:$0xf]  ;;  %v8336_v5 = vor.u32 %v10057_v52, %v8333_v55  ;;  %v8499_v46 = vld [vmem:[#allocation13 + $0x148] sm:$0xf]  ;;  %v9332_v54 = vor.u32 %v10310_v2, %v9331_v26 }
 0x353   :  { %v3526_v56 = vpop.f32.mrf.mxu2  ;;  %v3539_v1 = vpop.f32.mrf.mxu3  ;;  %5488 = vmatmul.bf16.vlgmr.msra.gmra.mxu2 %v10922_v43  ;;  %5501 = vmatmul.bf16.vlgmr.msra.gmra.mxu3 %v10924_v61  ;;  %v8589_v9 = vld [vmem:[#allocation13 + $0x220] sm:$0xf0]  ;;  %v8755_v31 = vld [vmem:[#allocation13 + $0x348] sm:$0xf]  ;;  %v8500_v38 = vor.u32 %v10102_v30, %v8499_v46 }
 0x354   :  { %5536 = vmatpush.bf16.msrb.mxu2 %v8944_v37  ;;  %5549 = vmatpush.bf16.msrb.mxu3 %v9200_v50  ;;  %v10193_v63 = vld [vmem:[#allocation13 + $0x444] sm:$0xf]  ;;  %v8592_v6 = vor.u32 %v10121_v11, %v8589_v9  ;;  %v10166_v32 = vld [vmem:[#allocation13 + $0x364] sm:$0xf0] }
 0x355   :  { %v8877_v0 = vld [vmem:[#allocation13 + $0x460] sm:$0xf0]  ;;  %v9043_v34 = vld [vmem:[#allocation13 + $0x588] sm:$0xf]  ;;  %v8756_v39 = vor.u32 %v10166_v32, %v8755_v31 }
 0x356   :  { %v10257_v4 = vld [vmem:[#allocation13 + $0x644] sm:$0xf]  ;;  %5512 = vmatpush.bf16.msrb.mxu0 %v8368_v47  ;;  %5525 = vmatpush.bf16.msrb.mxu1 %v8624_v51  ;;  %v8880_v10 = vor.u32 %v10193_v63, %v8877_v0  ;;  %v10238_v35 = vld [vmem:[#allocation13 + $0x5a4] sm:$0xf0] }
 0x357   :  { %v9133_v14 = vld [vmem:[#allocation13 + $0x660] sm:$0xf0]  ;;  %v9299_v36 = vld [vmem:[#allocation13 + $0x788] sm:$0xf]  ;;  %v9044_v42 = vor.u32 %v10238_v35, %v9043_v34 }
 0x358   :  { %5537 = vmatpush.bf16.msrb.mxu2 %v8912_v58  ;;  %5550 = vmatpush.bf16.msrb.mxu3 %v9168_v60  ;;  %v9136_v13 = vor.u32 %v10257_v4, %v9133_v14  ;;  %v10185_v20 = vld [vmem:[#allocation13 + $0x404] sm:$0xf]  ;;  %v10302_v37 = vld [vmem:[#allocation13 + $0x7a4] sm:$0xf0] }
 0x359   :  { %v8845_v21 = vld [vmem:[#allocation13 + $0x420] sm:$0xf0]  ;;  %v8467_v16 = vld [vmem:[#allocation13 + $0x108] sm:$0xf]  ;;  %v9300_v44 = vor.u32 %v10302_v37, %v9299_v36  ;;  %v10178_v36 = vld [vmem:[#allocation13 + $0x3cc] sm:$0xf] }
 0x35a   :  { %v10249_v22 = vld [vmem:[#allocation13 + $0x604] sm:$0xf]  ;;  %5513 = vmatpush.bf16.msrb.mxu0 %v8336_v5  ;;  %5526 = vmatpush.bf16.msrb.mxu1 %v8592_v6  ;;  %v8848_v48 = vor.u32 %v10185_v20, %v8845_v21  ;;  %v10094_v40 = vld [vmem:[#allocation13 + $0x124] sm:$0xf0]  ;;  %v8821_v37 = vld [vmem:[#allocation13 + $0x3e8] sm:$0xf0] }
 0x35b   :  { %v9101_v45 = vld [vmem:[#allocation13 + $0x620] sm:$0xf0]  ;;  %v8723_v41 = vld [vmem:[#allocation13 + $0x308] sm:$0xf]  ;;  %v8468_v52 = vor.u32 %v10094_v40, %v8467_v16 }
 0x35c   :  { %5538 = vmatpush.bf16.msrb.mxu2 %v8880_v10  ;;  %5551 = vmatpush.bf16.msrb.mxu3 %v9136_v13  ;;  %v9104_v29 = vor.u32 %v10249_v22, %v9101_v45  ;;  %v10158_v50 = vld [vmem:[#allocation13 + $0x324] sm:$0xf0] }
 0x35d   :  { %5514 = vmatmul.bf16.vlgmr.msrb.gmra.mxu0 %v10916_v15  ;;  %5527 = vmatmul.bf16.vlgmr.msrb.gmra.mxu1 %v10918_v3  ;;  %v9011_v12 = vld [vmem:[#allocation13 + $0x548] sm:$0xf]  ;;  %v8724_v55 = vor.u32 %v10158_v50, %v8723_v41 }
 0x35e   :  { %5558 = vmatpush.bf16.msra.mxu0 %v8564_v19  ;;  %5571 = vmatpush.bf16.msra.mxu1 %v8820_v59  ;;  %v10230_v18 = vld [vmem:[#allocation13 + $0x564] sm:$0xf0]  ;;  %v9236_v59 = vor.u32 %v10286_v62, %v9235_v53 }
 0x35f   :  { %v9267_v47 = vld [vmem:[#allocation13 + $0x748] sm:$0xf]  ;;  %v9012_v57 = vor.u32 %v10230_v18, %v9011_v12  ;;  %v10106_v12 = vld [vmem:[#allocation13 + $0x18c] sm:$0xf] }
 0x360   :  { %5539 = vmatpush.bf16.msrb.mxu2 %v8848_v48  ;;  %5552 = vmatpush.bf16.msrb.mxu3 %v9104_v29  ;;  %v10294_v51 = vld [vmem:[#allocation13 + $0x764] sm:$0xf0]  ;;  %v8533_v18 = vld [vmem:[#allocation13 + $0x1a8] sm:$0xf0] }
 0x361   :  { %v8435_v11 = vld [vmem:[#allocation13 + $0xc8] sm:$0xf]  ;;  %v9268_v49 = vor.u32 %v10294_v51, %v9267_v47  ;;  %v10170_v47 = vld [vmem:[#allocation13 + $0x38c] sm:$0xf]  ;;  %v8536_v53 = vor.u32 %v10106_v12, %v8533_v18 }
 0x362   :  { %5559 = vmatpush.bf16.msra.mxu0 %v8532_v27  ;;  %5572 = vmatpush.bf16.msra.mxu1 %v8788_v28  ;;  %v10086_v56 = vld [vmem:[#allocation13 + $0xe4] sm:$0xf0]  ;;  %v10210_v12 = vld [vmem:[#allocation13 + $0x4cc] sm:$0xf] }
 0x363   :  { %5540 = vmatmul.bf16.vlgmr.msrb.gmra.mxu2 %v10922_v43  ;;  %5553 = vmatmul.bf16.vlgmr.msrb.gmra.mxu3 %v10924_v61  ;;  %v8691_v1 = vld [vmem:[#allocation13 + $0x2c8] sm:$0xf]  ;;  %v8436_v63 = vor.u32 %v10086_v56, %v8435_v11  ;;  %v8949_v18 = vld [vmem:[#allocation13 + $0x4e8] sm:$0xf0] }
 0x364   :  { %5584 = vmatpush.bf16.msra.mxu2 %v9076_v33  ;;  %5597 = vmatpush.bf16.msra.mxu3 %v9332_v54  ;;  %v10150_v9 = vld [vmem:[#allocation13 + $0x2e4] sm:$0xf0]  ;;  %v10114_v33 = vld [vmem:[#allocation13 + $0x1cc] sm:$0xf] }
 0x365   :  { %v8979_v58 = vld [vmem:[#allocation13 + $0x508] sm:$0xf]  ;;  %v8692_v0 = vor.u32 %v10150_v9, %v8691_v1  ;;  %v8565_v54 = vld [vmem:[#allocation13 + $0x1e8] sm:$0xf0] }
 0x366   :  { %5560 = vmatpush.bf16.msra.mxu0 %v8500_v38  ;;  %5573 = vmatpush.bf16.msra.mxu1 %v8756_v39  ;;  %v10222_v60 = vld [vmem:[#allocation13 + $0x524] sm:$0xf0] }
 0x367   :  { %v8403_v4 = vld [vmem:[#allocation13 + $0x88] sm:$0xf]  ;;  %v8980_v19 = vor.u32 %v10222_v60, %v8979_v58  ;;  %v10306_v58 = vld [vmem:[#allocation13 + $0x7cc] sm:$0xf] }
 0x368   :  { %5585 = vmatpush.bf16.msra.mxu2 %v9044_v42  ;;  %5598 = vmatpush.bf16.msra.mxu3 %v9300_v44  ;;  %v10078_v14 = vld [vmem:[#allocation13 + $0xa4] sm:$0xf0]  ;;  %v8568_v42 = vor.u32 %v10114_v33, %v8565_v54  ;;  %v8824_v44 = vor.u32 %v10178_v36, %v8821_v37  ;;  %v9333_v60 = vld [vmem:[#allocation13 + $0x7e8] sm:$0xf0] }
 0x369   :  { %v8659_v5 = vld [vmem:[#allocation13 + $0x288] sm:$0xf]  ;;  %v8404_v13 = vor.u32 %v10078_v14, %v8403_v4  ;;  %v10098_v4 = vld [vmem:[#allocation13 + $0x14c] sm:$0xf] }
 0x36a   :  { %5561 = vmatpush.bf16.msra.mxu0 %v8468_v52  ;;  %5574 = vmatpush.bf16.msra.mxu1 %v8724_v55  ;;  %v10142_v6 = vld [vmem:[#allocation13 + $0x2a4] sm:$0xf0]  ;;  %v8789_v55 = vld [vmem:[#allocation13 + $0x3a8] sm:$0xf0] }
 0x36b   :  { %v8947_v7 = vld [vmem:[#allocation13 + $0x4c8] sm:$0xf]  ;;  %v8660_v17 = vor.u32 %v10142_v6, %v8659_v5  ;;  %v8792_v62 = vor.u32 %v10170_v47, %v8789_v55  ;;  %v8501_v14 = vld [vmem:[#allocation13 + $0x168] sm:$0xf0]  ;;  %v9336_v6 = vor.u32 %v10306_v58, %v9333_v60 }
 0x36c   :  { %5586 = vmatpush.bf16.msra.mxu2 %v9012_v57  ;;  %5599 = vmatpush.bf16.msra.mxu3 %v9268_v49  ;;  %v10214_v8 = vld [vmem:[#allocation13 + $0x4e4] sm:$0xf0]  ;;  %v10242_v57 = vld [vmem:[#allocation13 + $0x5cc] sm:$0xf] }
 0x36d   :  { %v9203_v24 = vld [vmem:[#allocation13 + $0x6c8] sm:$0xf]  ;;  %v8948_v23 = vor.u32 %v10214_v8, %v8947_v7  ;;  %v9077_v49 = vld [vmem:[#allocation13 + $0x5e8] sm:$0xf0] }
 0x36e   :  { %v10278_v10 = vld [vmem:[#allocation13 + $0x6e4] sm:$0xf0]  ;;  %5562 = vmatpush.bf16.msra.mxu0 %v8436_v63  ;;  %5575 = vmatpush.bf16.msra.mxu1 %v8692_v0  ;;  %v9080_v5 = vor.u32 %v10242_v57, %v9077_v49  ;;  %v10234_v7 = vld [vmem:[#allocation13 + $0x58c] sm:$0xf] }
 0x36f   :  { %v8371_v20 = vld [vmem:[#allocation13 + $0x48] sm:$0xf]  ;;  %v9204_v25 = vor.u32 %v10278_v10, %v9203_v24  ;;  %v9045_v8 = vld [vmem:[#allocation13 + $0x5a8] sm:$0xf0] }
 0x370   :  { %v10070_v21 = vld [vmem:[#allocation13 + $0x64] sm:$0xf0]  ;;  %5587 = vmatpush.bf16.msra.mxu2 %v8980_v19  ;;  %5600 = vmatpush.bf16.msra.mxu3 %v9236_v59  ;;  %v10162_v19 = vld [vmem:[#allocation13 + $0x34c] sm:$0xf] }
 0x371   :  { %v8627_v22 = vld [vmem:[#allocation13 + $0x248] sm:$0xf]  ;;  %v8372_v46 = vor.u32 %v10070_v21, %v8371_v20  ;;  %v8757_v59 = vld [vmem:[#allocation13 + $0x368] sm:$0xf0] }
 0x372   :  { %v10134_v45 = vld [vmem:[#allocation13 + $0x264] sm:$0xf0]  ;;  %5563 = vmatpush.bf16.msra.mxu0 %v8404_v13  ;;  %5576 = vmatpush.bf16.msra.mxu1 %v8660_v17  ;;  %v10298_v24 = vld [vmem:[#allocation13 + $0x78c] sm:$0xf]  ;;  %v8504_v13 = vor.u32 %v10098_v4, %v8501_v14  ;;  %v8760_v17 = vor.u32 %v10162_v19, %v8757_v59 }
 0x373   :  { %v8915_v26 = vld [vmem:[#allocation13 + $0x488] sm:$0xf]  ;;  %v8628_v48 = vor.u32 %v10134_v45, %v8627_v22  ;;  %v9301_v10 = vld [vmem:[#allocation13 + $0x7a8] sm:$0xf0]  ;;  %v9048_v22 = vor.u32 %v10234_v7, %v9045_v8  ;;  %v8571_v7 = vld [vmem:[#allocation13 + $0x1d0] sm:$0xf] }
 0x374   :  { %v10206_v2 = vld [vmem:[#allocation13 + $0x4a4] sm:$0xf0]  ;;  %5588 = vmatpush.bf16.msra.mxu2 %v8948_v23  ;;  %5601 = vmatpush.bf16.msra.mxu3 %v9204_v25  ;;  %v10090_v20 = vld [vmem:[#allocation13 + $0x10c] sm:$0xf]  ;;  %v9304_v45 = vor.u32 %v10298_v24, %v9301_v10  ;;  %v10119_v8 = vld [vmem:[#allocation13 + $0x1ec] sm:$0xf0] }
 0x375   :  { %v9171_v27 = vld [vmem:[#allocation13 + $0x688] sm:$0xf]  ;;  %v8916_v34 = vor.u32 %v10206_v2, %v8915_v26  ;;  %v8469_v21 = vld [vmem:[#allocation13 + $0x128] sm:$0xf0]  ;;  %v8827_v24 = vld [vmem:[#allocation13 + $0x3d0] sm:$0xf] }
 0x376   :  { %v10270_v28 = vld [vmem:[#allocation13 + $0x6a4] sm:$0xf0]  ;;  %5564 = vmatpush.bf16.msra.mxu0 %v8372_v46  ;;  %5577 = vmatpush.bf16.msra.mxu1 %v8628_v48  ;;  %v10154_v23 = vld [vmem:[#allocation13 + $0x30c] sm:$0xf]  ;;  %v8472_v46 = vor.u32 %v10090_v20, %v8469_v21  ;;  %v10183_v10 = vld [vmem:[#allocation13 + $0x3ec] sm:$0xf0] }
 0x377   :  { %v8339_v29 = vld [vmem:[#allocation13 + $0x8] sm:$0xf]  ;;  %v9172_v35 = vor.u32 %v10270_v28, %v9171_v27  ;;  %v8725_v25 = vld [vmem:[#allocation13 + $0x328] sm:$0xf0] }
 0x378   :  { %v10062_v30 = vld [vmem:[#allocation13 + $0x24] sm:$0xf0]  ;;  %5589 = vmatpush.bf16.msra.mxu2 %v8916_v34  ;;  %v10226_v26 = vld [vmem:[#allocation13 + $0x54c] sm:$0xf]  ;;  %v8728_v48 = vor.u32 %v10154_v23, %v8725_v25  ;;  %v8572_v23 = vor.u32 %v10119_v8, %v8571_v7  ;;  %v8828_v25 = vor.u32 %v10183_v10, %v8827_v24  ;;  %v8987_v7 = vld [vmem:[#allocation13 + $0x510] sm:$0xf] }
 0x379   :  { %v8595_v31 = vld [vmem:[#allocation13 + $0x208] sm:$0xf]  ;;  %v8340_v41 = vor.u32 %v10062_v30, %v8339_v29  ;;  %5602 = vmatpush.bf16.msra.mxu3 %v9172_v35  ;;  %v9013_v2 = vld [vmem:[#allocation13 + $0x568] sm:$0xf0]  ;;  %v10223_v8 = vld [vmem:[#allocation13 + $0x52c] sm:$0xf0] }
 0x37a   :  { %v10126_v32 = vld [vmem:[#allocation13 + $0x224] sm:$0xf0]  ;;  %v10290_v27 = vld [vmem:[#allocation13 + $0x74c] sm:$0xf]  ;;  %v9243_v24 = vld [vmem:[#allocation13 + $0x710] sm:$0xf] }
 0x37b   :  { %v8883_v38 = vld [vmem:[#allocation13 + $0x448] sm:$0xf]  ;;  %v8596_v50 = vor.u32 %v10126_v32, %v8595_v31  ;;  %5565 = vmatpush.bf16.msra.mxu0 %v8340_v41  ;;  %v9269_v28 = vld [vmem:[#allocation13 + $0x768] sm:$0xf0]  ;;  %v9016_v31 = vor.u32 %v10226_v26, %v9013_v2  ;;  %v8539_v26 = vld [vmem:[#allocation13 + $0x190] sm:$0xf] }
 0x37c   :  { %v10198_v39 = vld [vmem:[#allocation13 + $0x464] sm:$0xf0]  ;;  %v10082_v29 = vld [vmem:[#allocation13 + $0xcc] sm:$0xf]  ;;  %v9272_v32 = vor.u32 %v10290_v27, %v9269_v28  ;;  %v10111_v2 = vld [vmem:[#allocation13 + $0x1ac] sm:$0xf0] }
 0x37d   :  { %v9139_v16 = vld [vmem:[#allocation13 + $0x648] sm:$0xf]  ;;  %v8884_v51 = vor.u32 %v10198_v39, %v8883_v38  ;;  %5578 = vmatpush.bf16.msra.mxu1 %v8596_v50  ;;  %v8437_v30 = vld [vmem:[#allocation13 + $0xe8] sm:$0xf0]  ;;  %v8795_v27 = vld [vmem:[#allocation13 + $0x390] sm:$0xf] }
 0x37e   :  { %v10262_v40 = vld [vmem:[#allocation13 + $0x664] sm:$0xf0]  ;;  %5566 = vmatmul.bf16.vlgmr.msra.gmra.mxu0 %v10916_v15  ;;  %v10146_v33 = vld [vmem:[#allocation13 + $0x2cc] sm:$0xf]  ;;  %v8440_v38 = vor.u32 %v10082_v29, %v8437_v30  ;;  %v10287_v10 = vld [vmem:[#allocation13 + $0x72c] sm:$0xf0] }
 0x37f   :  { %v9140_v52 = vor.u32 %v10262_v40, %v9139_v16  ;;  %v8851_v11 = vld [vmem:[#allocation13 + $0x408] sm:$0xf]  ;;  %5610 = vmatpush.bf16.msrb.mxu0 %v8568_v42  ;;  %5590 = vmatpush.bf16.msra.mxu2 %v8884_v51  ;;  %v8693_v54 = vld [vmem:[#allocation13 + $0x2e8] sm:$0xf0] }
 0x380   :  { %v10190_v56 = vld [vmem:[#allocation13 + $0x424] sm:$0xf0]  ;;  %5579 = vmatmul.bf16.vlgmr.msra.gmra.mxu1 %v10918_v3  ;;  %v10218_v34 = vld [vmem:[#allocation13 + $0x50c] sm:$0xf]  ;;  %v8696_v39 = vor.u32 %v10146_v33, %v8693_v54  ;;  %v9083_v33 = vld [vmem:[#allocation13 + $0x5d0] sm:$0xf] }
 0x381   :  { %v9107_v1 = vld [vmem:[#allocation13 + $0x608] sm:$0xf]  ;;  %5623 = vmatpush.bf16.msrb.mxu1 %v8824_v44  ;;  %5603 = vmatpush.bf16.msra.mxu3 %v9140_v52  ;;  %v8852_v63 = vor.u32 %v10190_v56, %v8851_v11  ;;  %v8981_v35 = vld [vmem:[#allocation13 + $0x528] sm:$0xf0]  ;;  %v10247_v54 = vld [vmem:[#allocation13 + $0x5ec] sm:$0xf0] }
 0x382   :  { %v10254_v9 = vld [vmem:[#allocation13 + $0x624] sm:$0xf0]  ;;  %v10282_v36 = vld [vmem:[#allocation13 + $0x70c] sm:$0xf]  ;;  %v8984_v41 = vor.u32 %v10218_v34, %v8981_v35  ;;  %v9339_v34 = vld [vmem:[#allocation13 + $0x7d0] sm:$0xf] }
 0x383   :  { %v9108_v0 = vor.u32 %v10254_v9, %v9107_v1  ;;  %5611 = vmatpush.bf16.msrb.mxu0 %v8536_v53  ;;  %5591 = vmatpush.bf16.msra.mxu2 %v8852_v63  ;;  %v9237_v37 = vld [vmem:[#allocation13 + $0x728] sm:$0xf0]  ;;  %v8952_v1 = vor.u32 %v10210_v12, %v8949_v18  ;;  %v10311_v35 = vld [vmem:[#allocation13 + $0x7ec] sm:$0xf0] }
 0x384   :  { %v10074_v16 = vld [vmem:[#allocation13 + $0x8c] sm:$0xf]  ;;  %v9240_v50 = vor.u32 %v10282_v36, %v9237_v37  ;;  %v8540_v36 = vor.u32 %v10111_v2, %v8539_v26  ;;  %v9051_v12 = vld [vmem:[#allocation13 + $0x590] sm:$0xf] }
 0x385   :  { %5624 = vmatpush.bf16.msrb.mxu1 %v8792_v62  ;;  %5604 = vmatpush.bf16.msra.mxu3 %v9108_v0  ;;  %v8405_v40 = vld [vmem:[#allocation13 + $0xa8] sm:$0xf0]  ;;  %v10239_v18 = vld [vmem:[#allocation13 + $0x5ac] sm:$0xf0] }
 0x386   :  { %5592 = vmatmul.bf16.vlgmr.msra.gmra.mxu2 %v10922_v43  ;;  %v10138_v42 = vld [vmem:[#allocation13 + $0x28c] sm:$0xf]  ;;  %v8408_v52 = vor.u32 %v10074_v16, %v8405_v40  ;;  %v8507_v16 = vld [vmem:[#allocation13 + $0x150] sm:$0xf] }
 0x387   :  { %5636 = vmatpush.bf16.msrb.mxu2 %v9080_v5  ;;  %5612 = vmatpush.bf16.msrb.mxu0 %v8504_v13  ;;  %v8661_v44 = vld [vmem:[#allocation13 + $0x2a8] sm:$0xf0]  ;;  %v10103_v40 = vld [vmem:[#allocation13 + $0x16c] sm:$0xf0] }
 0x388   :  { %5605 = vmatmul.bf16.vlgmr.msra.gmra.mxu3 %v10924_v61  ;;  %v10274_v47 = vld [vmem:[#allocation13 + $0x6cc] sm:$0xf]  ;;  %v8664_v55 = vor.u32 %v10138_v42, %v8661_v44  ;;  %v8763_v42 = vld [vmem:[#allocation13 + $0x350] sm:$0xf] }
 0x389   :  { %5649 = vmatpush.bf16.msrb.mxu3 %v9336_v6  ;;  %5625 = vmatpush.bf16.msrb.mxu1 %v8760_v17  ;;  %v9205_v51 = vld [vmem:[#allocation13 + $0x6e8] sm:$0xf0]  ;;  %v10167_v44 = vld [vmem:[#allocation13 + $0x36c] sm:$0xf0] }
 0x38a   :  { %v10066_v11 = vld [vmem:[#allocation13 + $0x4c] sm:$0xf]  ;;  %v9208_v9 = vor.u32 %v10274_v47, %v9205_v51  ;;  %v9307_v47 = vld [vmem:[#allocation13 + $0x790] sm:$0xf] }
 0x38b   :  { %5637 = vmatpush.bf16.msrb.mxu2 %v9048_v22  ;;  %5613 = vmatpush.bf16.msrb.mxu0 %v8472_v46  ;;  %v8373_v56 = vld [vmem:[#allocation13 + $0x68] sm:$0xf0]  ;;  %v10303_v51 = vld [vmem:[#allocation13 + $0x7ac] sm:$0xf0] }
 0x38c   :  { %v10130_v57 = vld [vmem:[#allocation13 + $0x24c] sm:$0xf]  ;;  %v8376_v63 = vor.u32 %v10066_v11, %v8373_v56  ;;  %v8475_v11 = vld [vmem:[#allocation13 + $0x110] sm:$0xf] }
 0x38d   :  { %5650 = vmatpush.bf16.msrb.mxu3 %v9304_v45  ;;  %5626 = vmatpush.bf16.msrb.mxu1 %v8728_v48  ;;  %v8629_v49 = vld [vmem:[#allocation13 + $0x268] sm:$0xf0]  ;;  %v10175_v48 = vld [vmem:[#allocation13 + $0x3ac] sm:$0xf0] }
 0x38e   :  { %v10202_v58 = vld [vmem:[#allocation13 + $0x48c] sm:$0xf]  ;;  %v8632_v0 = vor.u32 %v10130_v57, %v8629_v49  ;;  %v8796_v37 = vor.u32 %v10175_v48, %v8795_v27  ;;  %v10095_v56 = vld [vmem:[#allocation13 + $0x12c] sm:$0xf0] }
 0x38f   :  { %5638 = vmatpush.bf16.msrb.mxu2 %v9016_v31  ;;  %5614 = vmatpush.bf16.msrb.mxu0 %v8440_v38  ;;  %v8917_v60 = vld [vmem:[#allocation13 + $0x4a8] sm:$0xf0]  ;;  %v8731_v57 = vld [vmem:[#allocation13 + $0x310] sm:$0xf] }
 0x390   :  { %v10266_v53 = vld [vmem:[#allocation13 + $0x68c] sm:$0xf]  ;;  %v8920_v6 = vor.u32 %v10202_v58, %v8917_v60  ;;  %v10159_v49 = vld [vmem:[#allocation13 + $0x32c] sm:$0xf0] }
 0x391   :  { %5651 = vmatpush.bf16.msrb.mxu3 %v9272_v32  ;;  %5627 = vmatpush.bf16.msrb.mxu1 %v8696_v39  ;;  %v9173_v62 = vld [vmem:[#allocation13 + $0x6a8] sm:$0xf0]  ;;  %v9019_v58 = vld [vmem:[#allocation13 + $0x550] sm:$0xf] }
 0x392   :  { %v10058_v4 = vld [vmem:[#allocation13 + $0xc] sm:$0xf]  ;;  %v9176_v19 = vor.u32 %v10266_v53, %v9173_v62  ;;  %v10231_v60 = vld [vmem:[#allocation13 + $0x56c] sm:$0xf0] }
 0x393   :  { %5639 = vmatpush.bf16.msrb.mxu2 %v8984_v41  ;;  %5615 = vmatpush.bf16.msrb.mxu0 %v8408_v52  ;;  %v8341_v14 = vld [vmem:[#allocation13 + $0x28] sm:$0xf0]  ;;  %v9084_v41 = vor.u32 %v10247_v54, %v9083_v33  ;;  %v8508_v52 = vor.u32 %v10103_v40, %v8507_v16  ;;  %v9275_v53 = vld [vmem:[#allocation13 + $0x750] sm:$0xf] }
 0x394   :  { %v10122_v5 = vld [vmem:[#allocation13 + $0x20c] sm:$0xf]  ;;  %v8344_v22 = vor.u32 %v10058_v4, %v8341_v14  ;;  %v10295_v62 = vld [vmem:[#allocation13 + $0x76c] sm:$0xf0] }
 0x395   :  { %5652 = vmatpush.bf16.msrb.mxu3 %v9240_v50  ;;  %5628 = vmatpush.bf16.msrb.mxu1 %v8664_v55  ;;  %v8597_v59 = vld [vmem:[#allocation13 + $0x228] sm:$0xf0]  ;;  %v9340_v50 = vor.u32 %v10311_v35, %v9339_v34  ;;  %v8764_v55 = vor.u32 %v10167_v44, %v8763_v42  ;;  %v8443_v4 = vld [vmem:[#allocation13 + $0xd0] sm:$0xf] }
 0x396   :  { %v10194_v13 = vld [vmem:[#allocation13 + $0x44c] sm:$0xf]  ;;  %v8600_v45 = vor.u32 %v10122_v5, %v8597_v59  ;;  %v10087_v14 = vld [vmem:[#allocation13 + $0xec] sm:$0xf0]  ;;  %v9020_v5 = vor.u32 %v10231_v60, %v9019_v58  ;;  %v10107_v58 = vld [vmem:[#allocation13 + $0x194] sm:$0xf] }
 0x397   :  { %5640 = vmatpush.bf16.msrb.mxu2 %v8952_v1  ;;  %v8885_v17 = vld [vmem:[#allocation13 + $0x468] sm:$0xf0]  ;;  %5616 = vmatpush.bf16.msrb.mxu0 %v8376_v63  ;;  %v9052_v1 = vor.u32 %v10239_v18, %v9051_v12  ;;  %v8476_v63 = vor.u32 %v10095_v56, %v8475_v11  ;;  %v10151_v59 = vld [vmem:[#allocation13 + $0x2ec] sm:$0xf0]  ;;  %v10115_v12 = vld [vmem:[#allocation13 + $0x1d4] sm:$0xf] }
 0x398   :  { %v10258_v20 = vld [vmem:[#allocation13 + $0x64c] sm:$0xf]  ;;  %v8888_v28 = vor.u32 %v10194_v13, %v8885_v17  ;;  %v8444_v13 = vor.u32 %v10087_v14, %v8443_v4  ;;  %v8955_v26 = vld [vmem:[#allocation13 + $0x4d0] sm:$0xf]  ;;  %v8573_v18 = vld [vmem:[#allocation13 + $0x1f0] sm:$0xf0] }
 0x399   :  { %5653 = vmatpush.bf16.msrb.mxu3 %v9208_v9  ;;  %v9141_v21 = vld [vmem:[#allocation13 + $0x668] sm:$0xf0]  ;;  %5629 = vmatpush.bf16.msrb.mxu1 %v8632_v0  ;;  %v9308_v9 = vor.u32 %v10303_v51, %v9307_v47  ;;  %v8732_v0 = vor.u32 %v10159_v49, %v8731_v57  ;;  %v10215_v2 = vld [vmem:[#allocation13 + $0x4ec] sm:$0xf0]  ;;  %v10179_v47 = vld [vmem:[#allocation13 + $0x3d4] sm:$0xf]  ;;  %v8576_v57 = vor.u32 %v10115_v12, %v8573_v18 }
 0x39a   :  { %v9144_v46 = vor.u32 %v10258_v20, %v9141_v21  ;;  %v10186_v29 = vld [vmem:[#allocation13 + $0x40c] sm:$0xf]  ;;  %v8411_v20 = vld [vmem:[#allocation13 + $0x90] sm:$0xf]  ;;  %v8829_v51 = vld [vmem:[#allocation13 + $0x3f0] sm:$0xf0] }
 0x39b   :  { %5641 = vmatpush.bf16.msrb.mxu2 %v8920_v6  ;;  %v8853_v30 = vld [vmem:[#allocation13 + $0x428] sm:$0xf0]  ;;  %5617 = vmatpush.bf16.msrb.mxu0 %v8344_v22  ;;  %v9276_v6 = vor.u32 %v10295_v62, %v9275_v53  ;;  %v10079_v21 = vld [vmem:[#allocation13 + $0xac] sm:$0xf0]  ;;  %v8988_v22 = vor.u32 %v10223_v8, %v8987_v7  ;;  %v8832_v49 = vor.u32 %v10179_v47, %v8829_v51  ;;  %v8541_v60 = vld [vmem:[#allocation13 + $0x1b0] sm:$0xf0] }
 0x39c   :  { %v10250_v31 = vld [vmem:[#allocation13 + $0x60c] sm:$0xf]  ;;  %v8856_v38 = vor.u32 %v10186_v29, %v8853_v30  ;;  %v9211_v27 = vld [vmem:[#allocation13 + $0x6d0] sm:$0xf]  ;;  %v10171_v53 = vld [vmem:[#allocation13 + $0x394] sm:$0xf] }
 0x39d   :  { %5654 = vmatpush.bf16.msrb.mxu3 %v9176_v19  ;;  %v9109_v32 = vld [vmem:[#allocation13 + $0x628] sm:$0xf0]  ;;  %5630 = vmatpush.bf16.msrb.mxu1 %v8600_v45  ;;  %v8699_v19 = vld [vmem:[#allocation13 + $0x2d0] sm:$0xf]  ;;  %v9244_v45 = vor.u32 %v10287_v10, %v9243_v24  ;;  %v10307_v7 = vld [vmem:[#allocation13 + $0x7d4] sm:$0xf]  ;;  %v8544_v24 = vor.u32 %v10107_v58, %v8541_v60 }
 0x39e   :  { %v9112_v39 = vor.u32 %v10250_v31, %v9109_v32  ;;  %5618 = vmatmul.bf16.vlgmr.msrb.gmra.mxu0 %v10916_v15  ;;  %v8700_v17 = vor.u32 %v10151_v59, %v8699_v19  ;;  %v8379_v29 = vld [vmem:[#allocation13 + $0x50] sm:$0xf]  ;;  %v8956_v31 = vor.u32 %v10215_v2, %v8955_v26  ;;  %v10243_v19 = vld [vmem:[#allocation13 + $0x5d4] sm:$0xf] }
 0x39f   :  { %5662 = vmatpush.bf16.msra.mxu0 %v8572_v23  ;;  %5642 = vmatpush.bf16.msrb.mxu2 %v8888_v28  ;;  %v8667_v23 = vld [vmem:[#allocation13 + $0x290] sm:$0xf]  ;;  %v9085_v59 = vld [vmem:[#allocation13 + $0x5f0] sm:$0xf0] }
 0x3a0   :  { %5631 = vmatmul.bf16.vlgmr.msrb.gmra.mxu1 %v10918_v3  ;;  %v10279_v28 = vld [vmem:[#allocation13 + $0x6ec] sm:$0xf0]  ;;  %v9341_v8 = vld [vmem:[#allocation13 + $0x7f0] sm:$0xf0] }
 0x3a1   :  { %5675 = vmatpush.bf16.msra.mxu1 %v8828_v25  ;;  %5655 = vmatpush.bf16.msrb.mxu3 %v9144_v46  ;;  %v10143_v25 = vld [vmem:[#allocation13 + $0x2ac] sm:$0xf0]  ;;  %v8412_v46 = vor.u32 %v10079_v21, %v8411_v20  ;;  %v9212_v32 = vor.u32 %v10279_v28, %v9211_v27  ;;  %v10099_v20 = vld [vmem:[#allocation13 + $0x154] sm:$0xf] }
 0x3a2   :  { %v8668_v48 = vor.u32 %v10143_v25, %v8667_v23  ;;  %v10071_v30 = vld [vmem:[#allocation13 + $0x6c] sm:$0xf0]  ;;  %v8509_v21 = vld [vmem:[#allocation13 + $0x170] sm:$0xf0] }
 0x3a3   :  { %5663 = vmatpush.bf16.msra.mxu0 %v8540_v36  ;;  %5643 = vmatpush.bf16.msrb.mxu2 %v8856_v38  ;;  %v8635_v33 = vld [vmem:[#allocation13 + $0x250] sm:$0xf]  ;;  %v8380_v38 = vor.u32 %v10071_v30, %v8379_v29  ;;  %v10163_v23 = vld [vmem:[#allocation13 + $0x354] sm:$0xf] }
 0x3a4   :  { %v10135_v54 = vld [vmem:[#allocation13 + $0x26c] sm:$0xf0]  ;;  %v8765_v25 = vld [vmem:[#allocation13 + $0x370] sm:$0xf0] }
 0x3a5   :  { %5676 = vmatpush.bf16.msra.mxu1 %v8796_v37  ;;  %5656 = vmatpush.bf16.msrb.mxu3 %v9112_v39  ;;  %v8923_v34 = vld [vmem:[#allocation13 + $0x490] sm:$0xf]  ;;  %v8636_v39 = vor.u32 %v10135_v54, %v8635_v33  ;;  %v10235_v26 = vld [vmem:[#allocation13 + $0x594] sm:$0xf] }
 0x3a6   :  { %5644 = vmatmul.bf16.vlgmr.msrb.gmra.mxu2 %v10922_v43  ;;  %v10207_v35 = vld [vmem:[#allocation13 + $0x4ac] sm:$0xf0]  ;;  %v9053_v2 = vld [vmem:[#allocation13 + $0x5b0] sm:$0xf0] }
 0x3a7   :  { %5688 = vmatpush.bf16.msra.mxu2 %v9084_v41  ;;  %5664 = vmatpush.bf16.msra.mxu0 %v8508_v52  ;;  %v9179_v36 = vld [vmem:[#allocation13 + $0x690] sm:$0xf]  ;;  %v10299_v27 = vld [vmem:[#allocation13 + $0x794] sm:$0xf]  ;;  %v9056_v33 = vor.u32 %v10235_v26, %v9053_v2 }
 0x3a8   :  { %5657 = vmatmul.bf16.vlgmr.msrb.gmra.mxu3 %v10924_v61  ;;  %v10271_v37 = vld [vmem:[#allocation13 + $0x6ac] sm:$0xf0]  ;;  %v9309_v28 = vld [vmem:[#allocation13 + $0x7b0] sm:$0xf0] }
 0x3a9   :  { %5701 = vmatpush.bf16.msra.mxu3 %v9340_v50  ;;  %5677 = vmatpush.bf16.msra.mxu1 %v8764_v55  ;;  %v8347_v16 = vld [vmem:[#allocation13 + $0x10] sm:$0xf]  ;;  %v8924_v50 = vor.u32 %v10207_v35, %v8923_v34  ;;  %v9180_v42 = vor.u32 %v10271_v37, %v9179_v36  ;;  %v9312_v54 = vor.u32 %v10299_v27, %v9309_v28  ;;  %v10155_v34 = vld [vmem:[#allocation13 + $0x314] sm:$0xf] }
 0x3aa   :  { %v10063_v40 = vld [vmem:[#allocation13 + $0x2c] sm:$0xf0]  ;;  %v8733_v35 = vld [vmem:[#allocation13 + $0x330] sm:$0xf0] }
 0x3ab   :  { %5689 = vmatpush.bf16.msra.mxu2 %v9052_v1  ;;  %5665 = vmatpush.bf16.msra.mxu0 %v8476_v63  ;;  %v8603_v41 = vld [vmem:[#allocation13 + $0x210] sm:$0xf]  ;;  %v8348_v1 = vor.u32 %v10063_v40, %v8347_v16  ;;  %v10227_v36 = vld [vmem:[#allocation13 + $0x554] sm:$0xf]  ;;  %v10394_v16 = vld [vmem:[%s11025_s10] ss:$0 sm:$0xff] }
 0x3ac   :  { %v10127_v44 = vld [vmem:[#allocation13 + $0x22c] sm:$0xf0]  ;;  %v9021_v37 = vld [vmem:[#allocation13 + $0x570] sm:$0xf0] }
 0x3ad   :  { %5702 = vmatpush.bf16.msra.mxu3 %v9308_v9  ;;  %5678 = vmatpush.bf16.msra.mxu1 %v8732_v0  ;;  %v8891_v52 = vld [vmem:[#allocation13 + $0x450] sm:$0xf]  ;;  %v8604_v9 = vor.u32 %v10127_v44, %v8603_v41  ;;  %v8797_v0 = vld [vmem:[#allocation13 + $0x3b0] sm:$0xf0]  ;;  %v8736_v41 = vor.u32 %v10155_v34, %v8733_v35  ;;  %v9024_v44 = vor.u32 %v10227_v36, %v9021_v37 }
 0x3ae   :  { %v10199_v55 = vld [vmem:[#allocation13 + $0x46c] sm:$0xf0]  ;;  %v8800_v10 = vor.u32 %v10171_v53, %v8797_v0  ;;  %v10147_v18 = vld [vmem:[#allocation13 + $0x2d4] sm:$0xf] }
 0x3af   :  { %5690 = vmatpush.bf16.msra.mxu2 %v9020_v5  ;;  %5666 = vmatpush.bf16.msra.mxu0 %v8444_v13  ;;  %v9147_v11 = vld [vmem:[#allocation13 + $0x650] sm:$0xf]  ;;  %v8892_v62 = vor.u32 %v10199_v55, %v8891_v52  ;;  %v8701_v47 = vld [vmem:[#allocation13 + $0x2f0] sm:$0xf0] }
 0x3b0   :  { %v10263_v56 = vld [vmem:[#allocation13 + $0x66c] sm:$0xf0]  ;;  %v10219_v51 = vld [vmem:[#allocation13 + $0x514] sm:$0xf] }
 0x3b1   :  { %5703 = vmatpush.bf16.msra.mxu3 %v9276_v6  ;;  %5679 = vmatpush.bf16.msra.mxu1 %v8700_v17  ;;  %v9148_v63 = vor.u32 %v10263_v56, %v9147_v11  ;;  %v8859_v4 = vld [vmem:[#allocation13 + $0x410] sm:$0xf]  ;;  %v8989_v52 = vld [vmem:[#allocation13 + $0x530] sm:$0xf0]  ;;  %v3881_v56 = vlaneseq }
 0x3b2   :  { %v10191_v14 = vld [vmem:[#allocation13 + $0x42c] sm:$0xf0]  ;;  %v10283_v55 = vld [vmem:[#allocation13 + $0x714] sm:$0xf] }
 0x3b3   :  { %5691 = vmatpush.bf16.msra.mxu2 %v8988_v22  ;;  %5667 = vmatpush.bf16.msra.mxu0 %v8412_v46  ;;  %v9115_v5 = vld [vmem:[#allocation13 + $0x610] sm:$0xf]  ;;  %v8860_v13 = vor.u32 %v10191_v14, %v8859_v4  ;;  %v9088_v22 = vor.u32 %v10243_v19, %v9085_v59  ;;  %v8512_v46 = vor.u32 %v10099_v20, %v8509_v21  ;;  %v9245_v11 = vld [vmem:[#allocation13 + $0x730] sm:$0xf0]  ;;  %v10947_v59 = vld [vmem:[#allocation15] sm:$0xff] }
 0x3b4   :  { %v10255_v6 = vld [vmem:[#allocation13 + $0x62c] sm:$0xf0]  ;;  %v10075_v60 = vld [vmem:[#allocation13 + $0x94] sm:$0xf]  ;;  %v4158_v28 = vperm.slane %v10947_v59, 0 }
 0x3b5   :  { %5704 = vmatpush.bf16.msra.mxu3 %v9244_v45  ;;  %5680 = vmatpush.bf16.msra.mxu1 %v8668_v48  ;;  %v9116_v17 = vor.u32 %v10255_v6, %v9115_v5  ;;  %v9344_v45 = vor.u32 %v10307_v7, %v9341_v8  ;;  %v8768_v48 = vor.u32 %v10163_v23, %v8765_v25  ;;  %v8413_v53 = vld [vmem:[#allocation13 + $0xb0] sm:$0xf0]  ;;  %v3882_v7 = vand.u32 127, %v3881_v56 }
 0x3b6   :  { %v10139_v0 = vld [vmem:[#allocation13 + $0x294] sm:$0xf] }
 0x3b7   :  { %5692 = vmatpush.bf16.msra.mxu2 %v8956_v31  ;;  %5668 = vmatpush.bf16.msra.mxu0 %v8380_v38  ;;  %v10091_v31 = vld [vmem:[#allocation13 + $0x114] sm:$0xf]  ;;  %vm3883_vm5 = vcmp.lt.s32.totalorder %v3882_v7, 8  ;;  %v10312_v7 = vld [vmem:[#allocation13 + $0x7f4] sm:$0xf0] }
 0x3b8   :  { %v10291_v38 = vld [vmem:[#allocation13 + $0x754] sm:$0xf] }
 0x3b9   :  { %5705 = vmatpush.bf16.msra.mxu3 %v9212_v32  ;;  %5681 = vmatpush.bf16.msra.mxu1 %v8636_v39  ;;  %v3838_v29 = vpop.f32.mrf.mxu0  ;;  %v3851_v30 = vpop.f32.mrf.mxu1  ;;  %v8477_v32 = vld [vmem:[#allocation13 + $0x130] sm:$0xf0] }
 0x3ba   :  { %v9277_v39 = vld [vmem:[#allocation13 + $0x770] sm:$0xf0]  ;;  %v8480_v40 = vor.u32 %v10091_v31, %v8477_v32 }
 0x3bb   :  { %5693 = vmatpush.bf16.msra.mxu2 %v8924_v50  ;;  %5669 = vmatpush.bf16.msra.mxu0 %v8348_v1  ;;  %v10083_v50 = vld [vmem:[#allocation13 + $0xd4] sm:$0xf]  ;;  %v9280_v12 = vor.u32 %v10291_v38, %v9277_v39  ;;  %v3839_v1 = vadd.f32 %v10394_v16, %v3838_v29  ;;  %v8579_v39 = vld [vmem:[#allocation13 + $0x1d8] sm:$0xf] }
 0x3bc   :  { %v8669_v4 = vld [vmem:[#allocation13 + $0x2b0] sm:$0xf0]  ;;  %v10120_v16 = vld [vmem:[#allocation13 + $0x1f4] sm:$0xf0] }
 0x3bd   :  { %5706 = vmatpush.bf16.msra.mxu3 %v9180_v42  ;;  %5682 = vmatpush.bf16.msra.mxu1 %v8604_v9  ;;  %v8445_v42 = vld [vmem:[#allocation13 + $0xf0] sm:$0xf0]  ;;  %v3852_v8 = vadd.f32 %v3851_v30, %v3839_v1  ;;  %v8580_v1 = vor.u32 %v10120_v16, %v8579_v39  ;;  %v9027_v39 = vld [vmem:[#allocation13 + $0x558] sm:$0xf] }
 0x3be   :  { %5670 = vmatmul.bf16.vlgmr.msra.gmra.mxu0 %v10916_v15  ;;  %v8448_v9 = vor.u32 %v10083_v50, %v8445_v42  ;;  %v10211_v14 = vld [vmem:[#allocation13 + $0x4d4] sm:$0xf]  ;;  %v10184_v42 = vld [vmem:[#allocation13 + $0x3f4] sm:$0xf0] }
 0x3bf   :  { %5714 = vmatpush.bf16.msrb.mxu0 %v8576_v57  ;;  %5694 = vmatpush.bf16.msra.mxu2 %v8892_v62  ;;  %v8704_v57 = vor.u32 %v10147_v18, %v8701_v47  ;;  %v8992_v62 = vor.u32 %v10219_v51, %v8989_v52  ;;  %v8957_v5 = vld [vmem:[#allocation13 + $0x4f0] sm:$0xf0] }
 0x3c0   :  { %5683 = vmatmul.bf16.vlgmr.msra.gmra.mxu1 %v10918_v3  ;;  %v10275_v6 = vld [vmem:[#allocation13 + $0x6d4] sm:$0xf] }
 0x3c1   :  { %5727 = vmatpush.bf16.msrb.mxu1 %v8832_v49  ;;  %5707 = vmatpush.bf16.msra.mxu3 %v9148_v63  ;;  %v3840_v49 = vpop.f32.mrf.mxu0  ;;  %v3853_v58 = vpop.f32.mrf.mxu1  ;;  %v9248_v63 = vor.u32 %v10283_v55, %v9245_v11  ;;  %v9213_v19 = vld [vmem:[#allocation13 + $0x6f0] sm:$0xf0] }
 0x3c2   :  { %v10131_v20 = vld [vmem:[#allocation13 + $0x254] sm:$0xf]  ;;  %v9216_v23 = vor.u32 %v10275_v6, %v9213_v19  ;;  %v10112_v49 = vld [vmem:[#allocation13 + $0x1b4] sm:$0xf0] }
 0x3c3   :  { %5715 = vmatpush.bf16.msrb.mxu0 %v8544_v24  ;;  %5695 = vmatpush.bf16.msra.mxu2 %v8860_v13  ;;  %v8416_v24 = vor.u32 %v10075_v60, %v8413_v53  ;;  %v10067_v13 = vld [vmem:[#allocation13 + $0x54] sm:$0xf]  ;;  %v8803_v58 = vld [vmem:[#allocation13 + $0x398] sm:$0xf] }
 0x3c4   :  { %v8637_v25 = vld [vmem:[#allocation13 + $0x270] sm:$0xf0]  ;;  %v10248_v6 = vld [vmem:[#allocation13 + $0x5f4] sm:$0xf0] }
 0x3c5   :  { %5728 = vmatpush.bf16.msrb.mxu1 %v8800_v10  ;;  %5708 = vmatpush.bf16.msra.mxu3 %v9116_v17  ;;  %v8672_v10 = vor.u32 %v10139_v0, %v8669_v4  ;;  %v8381_v17 = vld [vmem:[#allocation13 + $0x70] sm:$0xf0]  ;;  %v8640_v32 = vor.u32 %v10131_v20, %v8637_v25  ;;  %v9347_v19 = vld [vmem:[#allocation13 + $0x7d8] sm:$0xf] }
 0x3c6   :  { %5696 = vmatmul.bf16.vlgmr.msra.gmra.mxu2 %v10922_v43  ;;  %v3864_v21 = vpop.f32.mrf.mxu2  ;;  %v10203_v26 = vld [vmem:[#allocation13 + $0x494] sm:$0xf]  ;;  %v8384_v31 = vor.u32 %v10067_v13, %v8381_v17  ;;  %v8771_v25 = vld [vmem:[#allocation13 + $0x358] sm:$0xf] }
 0x3c7   :  { %5740 = vmatpush.bf16.msrb.mxu2 %v9088_v22  ;;  %5716 = vmatpush.bf16.msrb.mxu0 %v8512_v46  ;;  %v3877_v22 = vpop.f32.mrf.mxu3  ;;  %v8925_v2 = vld [vmem:[#allocation13 + $0x4b0] sm:$0xf0]  ;;  %v3865_v27 = vadd.f32 %v3864_v21, %v3852_v8  ;;  %v8515_v21 = vld [vmem:[#allocation13 + $0x158] sm:$0xf] }
 0x3c8   :  { %5709 = vmatmul.bf16.vlgmr.msra.gmra.mxu3 %v10924_v61  ;;  %v10267_v46 = vld [vmem:[#allocation13 + $0x694] sm:$0xf]  ;;  %v8928_v37 = vor.u32 %v10203_v26, %v8925_v2  ;;  %v10168_v26 = vld [vmem:[#allocation13 + $0x374] sm:$0xf0] }
 0x3c9   :  { %5753 = vmatpush.bf16.msrb.mxu3 %v9344_v45  ;;  %5729 = vmatpush.bf16.msrb.mxu1 %v8768_v48  ;;  %v8960_v45 = vor.u32 %v10211_v14, %v8957_v5  ;;  %v9181_v48 = vld [vmem:[#allocation13 + $0x6b0] sm:$0xf0]  ;;  %v3878_v30 = vadd.f32 %v3877_v22, %v3865_v27  ;;  %v9091_v5 = vld [vmem:[#allocation13 + $0x5d8] sm:$0xf] }
 0x3ca   :  { %v10059_v29 = vld [vmem:[#allocation13 + $0x14] sm:$0xf]  ;;  %v5463_v35 = vpop.f32.mrf.mxu0  ;;  %v5476_v36 = vpop.f32.mrf.mxu1  ;;  %v9184_v38 = vor.u32 %v10267_v46, %v9181_v48  ;;  %v10104_v22 = vld [vmem:[#allocation13 + $0x174] sm:$0xf0] }
 0x3cb   :  { %5741 = vmatpush.bf16.msrb.mxu2 %v9056_v33  ;;  %5717 = vmatpush.bf16.msrb.mxu0 %v8480_v40  ;;  %v8349_v33 = vld [vmem:[#allocation13 + $0x30] sm:$0xf0]  ;;  %v8835_v40 = vld [vmem:[#allocation13 + $0x3d8] sm:$0xf]  ;;  %v10951_v50 = vsel %vm3883_vm5, %v3878_v30, -1e+30 }
 0x3cc   :  { %v8605_v34 = vld [vmem:[#allocation13 + $0x230] sm:$0xf0]  ;;  %3885 = vmax.xlane.f32.xlu0 %v10951_v50  ;;  %v8352_v52 = vor.u32 %v10059_v29, %v8349_v33  ;;  %v9059_v2 = vld [vmem:[#allocation13 + $0x598] sm:$0xf]  ;;  %v4159_v33 = vperm.slane %v10947_v59, 1 }
 0x3cd   :  { %5754 = vmatpush.bf16.msrb.mxu3 %v9312_v54  ;;  %5730 = vmatpush.bf16.msrb.mxu1 %v8736_v41  ;;  %v10123_v54 = vld [vmem:[#allocation13 + $0x214] sm:$0xf]  ;;  %v5464_v41 = vadd.f32 %v5463_v35, %v4158_v28  ;;  %v10240_v27 = vld [vmem:[#allocation13 + $0x5b4] sm:$0xf0] }
 0x3ce   :  { %v10259_v18 = vld [vmem:[#allocation13 + $0x654] sm:$0xf]  ;;  %v8608_v55 = vor.u32 %v10123_v54, %v8605_v34  ;;  %v3866_v11 = vpop.f32.mrf.mxu2  ;;  %v9315_v28 = vld [vmem:[#allocation13 + $0x798] sm:$0xf]  ;;  %v9060_v35 = vor.u32 %v10240_v27, %v9059_v2 }
 0x3cf   :  { %5742 = vmatpush.bf16.msrb.mxu2 %v9024_v44  ;;  %5718 = vmatpush.bf16.msrb.mxu0 %v8448_v9  ;;  %v10195_v44 = vld [vmem:[#allocation13 + $0x454] sm:$0xf]  ;;  %v5477_v51 = vadd.f32 %v5476_v36, %v5464_v41  ;;  %v3879_v56 = vpop.f32.mrf.mxu3  ;;  %v8836_v9 = vor.u32 %v10184_v42, %v8835_v40  ;;  %v10304_v46 = vld [vmem:[#allocation13 + $0x7b4] sm:$0xf0] }
 0x3d0   :  { %v9149_v47 = vld [vmem:[#allocation13 + $0x670] sm:$0xf0]  ;;  %v8483_v54 = vld [vmem:[#allocation13 + $0x118] sm:$0xf]  ;;  %v9316_v36 = vor.u32 %v10304_v46, %v9315_v28 }
 0x3d1   :  { %5755 = vmatpush.bf16.msrb.mxu3 %v9280_v12  ;;  %5731 = vmatpush.bf16.msrb.mxu1 %v8704_v57  ;;  %v8893_v12 = vld [vmem:[#allocation13 + $0x470] sm:$0xf0]  ;;  %v8547_v57 = vld [vmem:[#allocation13 + $0x198] sm:$0xf]  ;;  %v9152_v53 = vor.u32 %v10259_v18, %v9149_v47 }
 0x3d2   :  { %v8896_v60 = vor.u32 %v10195_v44, %v8893_v12  ;;  %v8861_v0 = vld [vmem:[#allocation13 + $0x430] sm:$0xf0]  ;;  %v5465_v8 = vpop.f32.mrf.mxu0  ;;  %v10096_v34 = vld [vmem:[#allocation13 + $0x134] sm:$0xf0] }
 0x3d3   :  { %5743 = vmatpush.bf16.msrb.mxu2 %v8992_v62  ;;  %5719 = vmatpush.bf16.msrb.mxu0 %v8416_v24  ;;  %v10176_v62 = vld [vmem:[#allocation13 + $0x3b4] sm:$0xf0]  ;;  %v10251_v4 = vld [vmem:[#allocation13 + $0x614] sm:$0xf]  ;;  %v5478_v24 = vpop.f32.mrf.mxu1  ;;  %v8484_v47 = vor.u32 %v10096_v34, %v8483_v54 }
 0x3d4   :  { %v9117_v14 = vld [vmem:[#allocation13 + $0x630] sm:$0xf0]  ;;  %v8804_v13 = vor.u32 %v10176_v62, %v8803_v58  ;;  %v10232_v40 = vld [vmem:[#allocation13 + $0x574] sm:$0xf0] }
 0x3d5   :  { %5756 = vmatpush.bf16.msrb.mxu3 %v9248_v63  ;;  %5732 = vmatpush.bf16.msrb.mxu1 %v8672_v10  ;;  %v10187_v63 = vld [vmem:[#allocation13 + $0x414] sm:$0xf]  ;;  %v8548_v10 = vor.u32 %v10112_v49, %v8547_v57  ;;  %v9120_v20 = vor.u32 %v10251_v4, %v9117_v14  ;;  %v9283_v41 = vld [vmem:[#allocation13 + $0x758] sm:$0xf]  ;;  %v9028_v11 = vor.u32 %v10232_v40, %v9027_v39  ;;  %v10116_v40 = vld [vmem:[#allocation13 + $0x1dc] sm:$0xf] }
 0x3d6   :  { %v8864_v17 = vor.u32 %v10187_v63, %v8861_v0  ;;  %v5489_v48 = vpop.f32.mrf.mxu2  ;;  %v10296_v42 = vld [vmem:[#allocation13 + $0x774] sm:$0xf0] }
 0x3d7   :  { %5744 = vmatpush.bf16.msrb.mxu2 %v8960_v45  ;;  %5720 = vmatpush.bf16.msrb.mxu0 %v8384_v31  ;;  %v9092_v45 = vor.u32 %v10248_v6, %v9091_v5  ;;  %v5502_v29 = vpop.f32.mrf.mxu3  ;;  %v5490_v30 = vadd.f32 %v5489_v48, %v5477_v51  ;;  %v8516_v31 = vor.u32 %v10104_v22, %v8515_v21  ;;  %v8995_v57 = vld [vmem:[#allocation13 + $0x518] sm:$0xf] }
 0x3d8   :  { %v9284_v56 = vor.u32 %v10296_v42, %v9283_v41  ;;  %v10224_v58 = vld [vmem:[#allocation13 + $0x534] sm:$0xf0]  ;;  %v8581_v41 = vld [vmem:[#allocation13 + $0x1f8] sm:$0xf0] }
 0x3d9   :  { %5757 = vmatpush.bf16.msrb.mxu3 %v9216_v23  ;;  %5733 = vmatpush.bf16.msrb.mxu1 %v8640_v32  ;;  %v9348_v23 = vor.u32 %v10312_v7, %v9347_v19  ;;  %v8772_v32 = vor.u32 %v10168_v26, %v8771_v25  ;;  %v10957_v16 = vadd.f32 %v5502_v29, %v5490_v30  ;;  %v8419_v14 = vld [vmem:[#allocation13 + $0x98] sm:$0xf]  ;;  %v10180_v42 = vld [vmem:[#allocation13 + $0x3dc] sm:$0xf] }
 0x3da   :  { %v5515_v44 = vpop.f32.mrf.mxu0  ;;  %v10080_v5 = vld [vmem:[#allocation13 + $0xb4] sm:$0xf0]  ;;  %v8996_v6 = vor.u32 %v10224_v58, %v8995_v57  ;;  %v10172_v57 = vld [vmem:[#allocation13 + $0x39c] sm:$0xf] }
 0x3db   :  { %5745 = vmatpush.bf16.msrb.mxu2 %v8928_v37  ;;  %5721 = vmatpush.bf16.msrb.mxu0 %v8352_v52  ;;  %v8739_v37 = vld [vmem:[#allocation13 + $0x318] sm:$0xf]  ;;  %v5528_v12 = vpop.f32.mrf.mxu1  ;;  %v5516_v18 = vadd.f32 %v5515_v44, %v4159_v33  ;;  %v8420_v22 = vor.u32 %v10080_v5, %v8419_v14  ;;  %v8837_v44 = vld [vmem:[#allocation13 + $0x3f8] sm:$0xf0]  ;;  %vm5870_vm6 = vcmp.gt.f32.partialorder %v10957_v16, 0.0 }
 0x3dc   :  { %v8451_v52 = vld [vmem:[#allocation13 + $0xd8] sm:$0xf]  ;;  %v10244_v14 = vld [vmem:[#allocation13 + $0x5dc] sm:$0xf] }
 0x3dd   :  { %5758 = vmatpush.bf16.msrb.mxu3 %v9184_v38  ;;  %5734 = vmatpush.bf16.msrb.mxu1 %v8608_v55  ;;  %v10160_v38 = vld [vmem:[#allocation13 + $0x334] sm:$0xf0]  ;;  %v10961_v49 = vadd.f32 %v5528_v12, %v5516_v18 }
 0x3de   :  { %5722 = vmatmul.bf16.vlgmr.msrb.gmra.mxu0 %v10916_v15  ;;  %v8740_v51 = vor.u32 %v10160_v38, %v8739_v37  ;;  %v10088_v55 = vld [vmem:[#allocation13 + $0xf4] sm:$0xf0]  ;;  %v5491_v62 = vpop.f32.mrf.mxu2 }
 0x3df   :  { %5766 = vmatpush.bf16.msra.mxu0 %v8580_v1  ;;  %5746 = vmatpush.bf16.msrb.mxu2 %v8896_v60  ;;  %v8707_v1 = vld [vmem:[#allocation13 + $0x2d8] sm:$0xf]  ;;  %v5504_v63 = vpop.f32.mrf.mxu3  ;;  %v8452_v0 = vor.u32 %v10088_v55, %v8451_v52 }
 0x3e0   :  { %5735 = vmatmul.bf16.vlgmr.msrb.gmra.mxu1 %v10918_v3  ;;  %v9251_v60 = vld [vmem:[#allocation13 + $0x718] sm:$0xf] }
 0x3e1   :  { %5779 = vmatpush.bf16.msra.mxu1 %v8836_v9  ;;  %5759 = vmatpush.bf16.msrb.mxu3 %v9152_v53  ;;  %v10152_v9 = vld [vmem:[#allocation13 + $0x2f4] sm:$0xf0] }
 0x3e2   :  { %v10288_v53 = vld [vmem:[#allocation13 + $0x734] sm:$0xf0]  ;;  %v8708_v4 = vor.u32 %v10152_v9, %v8707_v1  ;;  %v10108_v1 = vld [vmem:[#allocation13 + $0x19c] sm:$0xf] }
 0x3e3   :  { %5767 = vmatpush.bf16.msra.mxu0 %v8548_v10  ;;  %5747 = vmatpush.bf16.msrb.mxu2 %v8864_v17  ;;  %v9252_v19 = vor.u32 %v10288_v53, %v9251_v60  ;;  %v8675_v7 = vld [vmem:[#allocation13 + $0x298] sm:$0xf]  ;;  %v5530_v21 = vpop.f32.mrf.mxu1  ;;  %v8549_v9 = vld [vmem:[#allocation13 + $0x1b8] sm:$0xf0] }
 0x3e4   :  { %v10144_v8 = vld [vmem:[#allocation13 + $0x2b4] sm:$0xf0]  ;;  %v8805_v53 = vld [vmem:[#allocation13 + $0x3b8] sm:$0xf0] }
 0x3e5   :  { %5780 = vmatpush.bf16.msra.mxu1 %v8804_v13  ;;  %5760 = vmatpush.bf16.msrb.mxu3 %v9120_v20  ;;  %v8963_v24 = vld [vmem:[#allocation13 + $0x4d8] sm:$0xf]  ;;  %v5517_v20 = vpop.f32.mrf.mxu0  ;;  %v8517_v21 = vld [vmem:[#allocation13 + $0x178] sm:$0xf0] }
 0x3e6   :  { %5748 = vmatmul.bf16.vlgmr.msrb.gmra.mxu2 %v10922_v43  ;;  %v10216_v10 = vld [vmem:[#allocation13 + $0x4f4] sm:$0xf0]  ;;  %v10100_v20 = vld [vmem:[#allocation13 + $0x15c] sm:$0xf] }
 0x3e7   :  { %5792 = vmatpush.bf16.msra.mxu2 %v9092_v45  ;;  %5768 = vmatpush.bf16.msra.mxu0 %v8516_v31  ;;  %v9219_v13 = vld [vmem:[#allocation13 + $0x6d8] sm:$0xf]  ;;  %v8676_v45 = vor.u32 %v10144_v8, %v8675_v7  ;;  %v8964_v26 = vor.u32 %v10216_v10, %v8963_v24  ;;  %v10963_v31 = vpop.f32.mrf.mxu2  ;;  %v10308_v7 = vld [vmem:[#allocation13 + $0x7dc] sm:$0xf]  ;;  %v8552_v24 = vor.u32 %v10108_v1, %v8549_v9 }
 0x3e8   :  { %5761 = vmatmul.bf16.vlgmr.msrb.gmra.mxu3 %v10924_v61  ;;  %v10280_v17 = vld [vmem:[#allocation13 + $0x6f4] sm:$0xf0]  ;;  %v9349_v8 = vld [vmem:[#allocation13 + $0x7f8] sm:$0xf0]  ;;  %v8808_v10 = vor.u32 %v10172_v57, %v8805_v53 }
 0x3e9   :  { %5805 = vmatpush.bf16.msra.mxu3 %v9348_v23  ;;  %5781 = vmatpush.bf16.msra.mxu1 %v8772_v32  ;;  %v8387_v23 = vld [vmem:[#allocation13 + $0x58] sm:$0xf]  ;;  %v9220_v2 = vor.u32 %v10280_v17, %v9219_v13  ;;  %v10965_v32 = vpop.f32.mrf.mxu3  ;;  %v10284_v1 = vld [vmem:[#allocation13 + $0x71c] sm:$0xf] }
 0x3ea   :  { %v10072_v25 = vld [vmem:[#allocation13 + $0x74] sm:$0xf0]  ;;  %v9253_v9 = vld [vmem:[#allocation13 + $0x738] sm:$0xf0] }
 0x3eb   :  { %5793 = vmatpush.bf16.msra.mxu2 %v9060_v35  ;;  %5769 = vmatpush.bf16.msra.mxu0 %v8484_v47  ;;  %v8643_v27 = vld [vmem:[#allocation13 + $0x258] sm:$0xf]  ;;  %v8388_v33 = vor.u32 %v10072_v25, %v8387_v23  ;;  %v10164_v23 = vld [vmem:[#allocation13 + $0x35c] sm:$0xf] }
 0x3ec   :  { %v10136_v28 = vld [vmem:[#allocation13 + $0x274] sm:$0xf0]  ;;  %v8773_v25 = vld [vmem:[#allocation13 + $0x378] sm:$0xf0] }
 0x3ed   :  { %5806 = vmatpush.bf16.msra.mxu3 %v9316_v36  ;;  %5782 = vmatpush.bf16.msra.mxu1 %v8740_v51  ;;  %v8931_v46 = vld [vmem:[#allocation13 + $0x498] sm:$0xf]  ;;  %v8644_v54 = vor.u32 %v10136_v28, %v8643_v27  ;;  %v10300_v27 = vld [vmem:[#allocation13 + $0x79c] sm:$0xf] }
 0x3ee   :  { %v10208_v48 = vld [vmem:[#allocation13 + $0x4b4] sm:$0xf0]  ;;  %v9317_v28 = vld [vmem:[#allocation13 + $0x7b8] sm:$0xf0] }
 0x3ef   :  { %5794 = vmatpush.bf16.msra.mxu2 %v9028_v11  ;;  %5770 = vmatpush.bf16.msra.mxu0 %v8452_v0  ;;  %v9187_v29 = vld [vmem:[#allocation13 + $0x698] sm:$0xf]  ;;  %v8932_v37 = vor.u32 %v10208_v48, %v8931_v46  ;;  %v8584_v11 = vor.u32 %v10116_v40, %v8581_v41  ;;  %v5543_v5 = vpop.f32.mrf.mxu2  ;;  %v8520_v46 = vor.u32 %v10100_v20, %v8517_v21  ;;  %v10292_v40 = vld [vmem:[#allocation13 + $0x75c] sm:$0xf] }
 0x3f0   :  { %v10272_v30 = vld [vmem:[#allocation13 + $0x6b4] sm:$0xf0]  ;;  %v8776_v48 = vor.u32 %v10164_v23, %v8773_v25  ;;  %v9285_v41 = vld [vmem:[#allocation13 + $0x778] sm:$0xf0] }
 0x3f1   :  { %5807 = vmatpush.bf16.msra.mxu3 %v9284_v56  ;;  %5783 = vmatpush.bf16.msra.mxu1 %v8708_v4  ;;  %v8355_v34 = vld [vmem:[#allocation13 + $0x18] sm:$0xf]  ;;  %v9188_v38 = vor.u32 %v10272_v30, %v9187_v29  ;;  %v8840_v56 = vor.u32 %v10180_v42, %v8837_v44  ;;  %v10092_v29 = vld [vmem:[#allocation13 + $0x11c] sm:$0xf] }
 0x3f2   :  { %v10064_v35 = vld [vmem:[#allocation13 + $0x34] sm:$0xf0]  ;;  %v8485_v30 = vld [vmem:[#allocation13 + $0x138] sm:$0xf0] }
 0x3f3   :  { %5795 = vmatpush.bf16.msra.mxu2 %v8996_v6  ;;  %5771 = vmatpush.bf16.msra.mxu0 %v8420_v22  ;;  %v8611_v36 = vld [vmem:[#allocation13 + $0x218] sm:$0xf]  ;;  %v8356_v52 = vor.u32 %v10064_v35, %v8355_v34  ;;  %v5556_v6 = vpop.f32.mrf.mxu3  ;;  %v10156_v34 = vld [vmem:[#allocation13 + $0x31c] sm:$0xf]  ;;  %v8488_v42 = vor.u32 %v10092_v29, %v8485_v30 }
 0x3f4   :  { %v10128_v39 = vld [vmem:[#allocation13 + $0x234] sm:$0xf0]  ;;  %v8741_v35 = vld [vmem:[#allocation13 + $0x338] sm:$0xf0] }
 0x3f5   :  { %5808 = vmatpush.bf16.msra.mxu3 %v9252_v19  ;;  %5784 = vmatpush.bf16.msra.mxu1 %v8676_v45  ;;  %v8899_v12 = vld [vmem:[#allocation13 + $0x458] sm:$0xf]  ;;  %v8612_v55 = vor.u32 %v10128_v39, %v8611_v36  ;;  %v9093_v19 = vld [vmem:[#allocation13 + $0x5f8] sm:$0xf0]  ;;  %v9352_v45 = vor.u32 %v10308_v7, %v9349_v8  ;;  %v8744_v44 = vor.u32 %v10156_v34, %v8741_v35 }
 0x3f6   :  { %v10200_v18 = vld [vmem:[#allocation13 + $0x474] sm:$0xf0]  ;;  %v9096_v22 = vor.u32 %v10244_v14, %v9093_v19  ;;  %v10228_v36 = vld [vmem:[#allocation13 + $0x55c] sm:$0xf] }
 0x3f7   :  { %5796 = vmatpush.bf16.msra.mxu2 %v8964_v26  ;;  %v9155_v47 = vld [vmem:[#allocation13 + $0x658] sm:$0xf]  ;;  %5772 = vmatpush.bf16.msra.mxu0 %v8388_v33  ;;  %v8900_v58 = vor.u32 %v10200_v18, %v8899_v12  ;;  %v10236_v26 = vld [vmem:[#allocation13 + $0x59c] sm:$0xf] }
 0x3f8   :  { %v10264_v51 = vld [vmem:[#allocation13 + $0x674] sm:$0xf0]  ;;  %v9029_v39 = vld [vmem:[#allocation13 + $0x578] sm:$0xf0] }
 0x3f9   :  { %5809 = vmatpush.bf16.msra.mxu3 %v9220_v2  ;;  %5785 = vmatpush.bf16.msra.mxu1 %v8644_v54  ;;  %v9156_v60 = vor.u32 %v10264_v51, %v9155_v47  ;;  %v8867_v62 = vld [vmem:[#allocation13 + $0x418] sm:$0xf]  ;;  %v9061_v2 = vld [vmem:[#allocation13 + $0x5b8] sm:$0xf0]  ;;  %v9320_v54 = vor.u32 %v10300_v27, %v9317_v28  ;;  %v9032_v47 = vor.u32 %v10228_v36, %v9029_v39 }
 0x3fa   :  { %v10192_v63 = vld [vmem:[#allocation13 + $0x434] sm:$0xf0]  ;;  %v9064_v33 = vor.u32 %v10236_v26, %v9061_v2  ;;  %v10084_v12 = vld [vmem:[#allocation13 + $0xdc] sm:$0xf]  ;;  %v9288_v51 = vor.u32 %v10292_v40, %v9285_v41 }
 0x3fb   :  { %5797 = vmatpush.bf16.msra.mxu2 %v8932_v37  ;;  %v9123_v0 = vld [vmem:[#allocation13 + $0x618] sm:$0xf]  ;;  %5773 = vmatpush.bf16.msra.mxu0 %v8356_v52  ;;  %v8868_v13 = vor.u32 %v10192_v63, %v8867_v62  ;;  %v10969_v37 = vpop.f32.mrf.mxu0  ;;  %v8453_v18 = vld [vmem:[#allocation13 + $0xf8] sm:$0xf0]  ;;  %v9256_v63 = vor.u32 %v10284_v1, %v9253_v9 }
 0x3fc   :  { %v10256_v4 = vld [vmem:[#allocation13 + $0x634] sm:$0xf0]  ;;  %v10148_v52 = vld [vmem:[#allocation13 + $0x2dc] sm:$0xf]  ;;  %v8456_v57 = vor.u32 %v10084_v12, %v8453_v18  ;;  %v10320_v12 = vld [vmem:[#allocation16 + $0x38] sm:$0xff] }
 0x3fd   :  { %5810 = vmatpush.bf16.msra.mxu3 %v9188_v38  ;;  %5786 = vmatpush.bf16.msra.mxu1 %v8612_v55  ;;  %v9124_v17 = vor.u32 %v10256_v4, %v9123_v0  ;;  %v10971_v38 = vpop.f32.mrf.mxu1  ;;  %v8709_v55 = vld [vmem:[#allocation13 + $0x2f8] sm:$0xf0]  ;;  %v10328_v18 = vld [vmem:[#allocation16 + $0x78] sm:$0xff] }
 0x3fe   :  { %5774 = vmatmul.bf16.vlgmr.msra.gmra.mxu0 %v10916_v15  ;;  %v8421_v53 = vld [vmem:[#allocation13 + $0xb8] sm:$0xf0] }
 0x3ff   :  { %5818 = vmatpush.bf16.msrb.mxu0 %v8584_v11  ;;  %5798 = vmatpush.bf16.msra.mxu2 %v8900_v58  ;;  %v10220_v11 = vld [vmem:[#allocation13 + $0x51c] sm:$0xf]  ;;  %v8712_v58 = vor.u32 %v10148_v52, %v8709_v55 }
 0x400   :  { %5787 = vmatmul.bf16.vlgmr.msra.gmra.mxu1 %v10918_v3  ;;  %v10140_v0 = vld [vmem:[#allocation13 + $0x29c] sm:$0xf] }
 0x401   :  { %5831 = vmatpush.bf16.msrb.mxu1 %v8840_v56  ;;  %5811 = vmatpush.bf16.msra.mxu3 %v9156_v60  ;;  %v8997_v56 = vld [vmem:[#allocation13 + $0x538] sm:$0xf0] }
 0x402   :  { %v10076_v60 = vld [vmem:[#allocation13 + $0x9c] sm:$0xf]  ;;  %v9000_v62 = vor.u32 %v10220_v11, %v8997_v56 }
 0x403   :  { %5819 = vmatpush.bf16.msrb.mxu0 %v8552_v24  ;;  %5799 = vmatpush.bf16.msra.mxu2 %v8868_v13  ;;  %v8677_v4 = vld [vmem:[#allocation13 + $0x2b8] sm:$0xf0]  ;;  %v5569_v5 = vpop.f32.mrf.mxu0  ;;  %v8424_v24 = vor.u32 %v10076_v60, %v8421_v53 }
 0x404   :  { %v10212_v14 = vld [vmem:[#allocation13 + $0x4dc] sm:$0xf] }
 0x405   :  { %5832 = vmatpush.bf16.msrb.mxu1 %v8808_v10  ;;  %5812 = vmatpush.bf16.msra.mxu3 %v9124_v17  ;;  %v5582_v6 = vpop.f32.mrf.mxu1  ;;  %v8965_v19 = vld [vmem:[#allocation13 + $0x4f8] sm:$0xf0]  ;;  %v8680_v10 = vor.u32 %v10140_v0, %v8677_v4  ;;  %v10318_v0 = vld [vmem:[#allocation16 + $0x28] sm:$0xff] }
 0x406   :  { %5800 = vmatmul.bf16.vlgmr.msra.gmra.mxu2 %v10922_v43  ;;  %v10276_v7 = vld [vmem:[#allocation13 + $0x6dc] sm:$0xf]  ;;  %v8968_v20 = vor.u32 %v10212_v14, %v8965_v19  ;;  %v10326_v4 = vld [vmem:[#allocation16 + $0x68] sm:$0xff] }
 0x407   :  { %5844 = vmatpush.bf16.msrb.mxu2 %v9096_v22  ;;  %5820 = vmatpush.bf16.msrb.mxu0 %v8520_v46  ;;  %v9221_v8 = vld [vmem:[#allocation13 + $0x6f8] sm:$0xf0] }
 0x408   :  { %5813 = vmatmul.bf16.vlgmr.msra.gmra.mxu3 %v10924_v61  ;;  %v10068_v13 = vld [vmem:[#allocation13 + $0x5c] sm:$0xf]  ;;  %v9224_v21 = vor.u32 %v10276_v7, %v9221_v8  ;;  %v4160_v7 = vperm.slane %v10947_v59, 2  ;;  %v4161_v8 = vperm.slane %v10947_v59, 3 }
 0x409   :  { %5857 = vmatpush.bf16.msrb.mxu3 %v9352_v45  ;;  %5833 = vmatpush.bf16.msrb.mxu1 %v8776_v48  ;;  %v8389_v17 = vld [vmem:[#allocation13 + $0x78] sm:$0xf0]  ;;  %v10975_v25 = vpop.f32.mrf.mxu2 }
 0x40a   :  { %v10132_v22 = vld [vmem:[#allocation13 + $0x25c] sm:$0xf]  ;;  %v8392_v46 = vor.u32 %v10068_v13, %v8389_v17  ;;  %v10316_v13 = vld [vmem:[#allocation16 + $0x18] sm:$0xff] }
 0x40b   :  { %5845 = vmatpush.bf16.msrb.mxu2 %v9064_v33  ;;  %5821 = vmatpush.bf16.msrb.mxu0 %v8488_v42  ;;  %v8645_v45 = vld [vmem:[#allocation13 + $0x278] sm:$0xf0]  ;;  %v10977_v26 = vpop.f32.mrf.mxu3  ;;  %v10324_v17 = vld [vmem:[#allocation16 + $0x58] sm:$0xff] }
 0x40c   :  { %v10204_v23 = vld [vmem:[#allocation13 + $0x49c] sm:$0xf]  ;;  %v8648_v48 = vor.u32 %v10132_v22, %v8645_v45  ;;  %v5542_v22 = vadd.f32 %v10963_v31, %v10961_v49  ;;  %v10314_v31 = vld [vmem:[#allocation16 + $0x8] sm:$0xff] }
 0x40d   :  { %5858 = vmatpush.bf16.msrb.mxu3 %v9320_v54  ;;  %5834 = vmatpush.bf16.msrb.mxu1 %v8744_v44  ;;  %v8933_v2 = vld [vmem:[#allocation13 + $0x4b8] sm:$0xf0] }
 0x40e   :  { %v10268_v27 = vld [vmem:[#allocation13 + $0x69c] sm:$0xf]  ;;  %v8936_v30 = vor.u32 %v10204_v23, %v8933_v2 }
 0x40f   :  { %5846 = vmatpush.bf16.msrb.mxu2 %v9032_v47  ;;  %5822 = vmatpush.bf16.msrb.mxu0 %v8456_v57  ;;  %v9189_v28 = vld [vmem:[#allocation13 + $0x6b8] sm:$0xf0] }
 0x410   :  { %v10060_v29 = vld [vmem:[#allocation13 + $0x1c] sm:$0xf]  ;;  %v9192_v33 = vor.u32 %v10268_v27, %v9189_v28 }
 0x411   :  { %5859 = vmatpush.bf16.msrb.mxu3 %v9288_v51  ;;  %5835 = vmatpush.bf16.msrb.mxu1 %v8712_v58  ;;  %v8357_v54 = vld [vmem:[#allocation13 + $0x38] sm:$0xf0]  ;;  %v5595_v52 = vpop.f32.mrf.mxu2 }
 0x412   :  { %v10124_v34 = vld [vmem:[#allocation13 + $0x21c] sm:$0xf]  ;;  %v8360_v42 = vor.u32 %v10060_v29, %v8357_v54  ;;  %v5555_v29 = vadd.f32 %v10965_v32, %v5542_v22  ;;  %v10352_v52 = vld [vmem:[#allocation16 + $0x138] sm:$0xff] }
 0x413   :  { %5847 = vmatpush.bf16.msrb.mxu2 %v9000_v62  ;;  %5823 = vmatpush.bf16.msrb.mxu0 %v8424_v24  ;;  %v8613_v35 = vld [vmem:[#allocation13 + $0x238] sm:$0xf0]  ;;  %v5608_v55 = vpop.f32.mrf.mxu3  ;;  %v10336_v62 = vld [vmem:[#allocation16 + $0xb8] sm:$0xff]  ;;  %v10334_v24 = vld [vmem:[#allocation16 + $0xa8] sm:$0xff] }
 0x414   :  { %v10196_v36 = vld [vmem:[#allocation13 + $0x45c] sm:$0xf]  ;;  %v8616_v44 = vor.u32 %v10124_v34, %v8613_v35  ;;  %v10322_v34 = vld [vmem:[#allocation16 + $0x48] sm:$0xff]  ;;  %vm5871_vm7 = vcmp.gt.f32.partialorder %v5555_v29, 0.0  ;;  %v10360_v55 = vld [vmem:[#allocation16 + $0x178] sm:$0xff] }
 0x415   :  { %5860 = vmatpush.bf16.msrb.mxu3 %v9256_v63  ;;  %5836 = vmatpush.bf16.msrb.mxu1 %v8680_v10  ;;  %v8901_v39 = vld [vmem:[#allocation13 + $0x478] sm:$0xf0]  ;;  %v10344_v63 = vld [vmem:[#allocation16 + $0xf8] sm:$0xff]  ;;  %v10342_v10 = vld [vmem:[#allocation16 + $0xe8] sm:$0xff] }
 0x416   :  { %v10260_v40 = vld [vmem:[#allocation13 + $0x65c] sm:$0xf]  ;;  %v8904_v47 = vor.u32 %v10196_v36, %v8901_v39  ;;  %v5878_v36 = vmul.f32 0.01, %v10957_v16  ;;  %v5879_v39 = vmul.f32 0.01, %v5555_v29 }
 0x417   :  { %5848 = vmatpush.bf16.msrb.mxu2 %v8968_v20  ;;  %v9157_v41 = vld [vmem:[#allocation13 + $0x678] sm:$0xf0]  ;;  %5824 = vmatpush.bf16.msrb.mxu0 %v8392_v46 }
 0x418   :  { %v9160_v51 = vor.u32 %v10260_v40, %v9157_v41  ;;  %v10188_v11 = vld [vmem:[#allocation13 + $0x41c] sm:$0xf]  ;;  %v10321_v41 = vld [vmem:[#allocation16 + $0x40] sm:$0xff] }
 0x419   :  { %5861 = vmatpush.bf16.msrb.mxu3 %v9224_v21  ;;  %5837 = vmatpush.bf16.msrb.mxu1 %v8648_v48  ;;  %v8869_v56 = vld [vmem:[#allocation13 + $0x438] sm:$0xf0]  ;;  %v10341_v21 = vld [vmem:[#allocation16 + $0xe0] sm:$0xff]  ;;  %v10340_v48 = vld [vmem:[#allocation16 + $0xd8] sm:$0xff] }
 0x41a   :  { %v10252_v1 = vld [vmem:[#allocation13 + $0x61c] sm:$0xf]  ;;  %v8872_v60 = vor.u32 %v10188_v11, %v8869_v56 }
 0x41b   :  { %5849 = vmatpush.bf16.msrb.mxu2 %v8936_v30  ;;  %v9125_v9 = vld [vmem:[#allocation13 + $0x638] sm:$0xf0]  ;;  %5825 = vmatpush.bf16.msrb.mxu0 %v8360_v42  ;;  %v5619_v6 = vpop.f32.mrf.mxu0  ;;  %v10330_v42 = vld [vmem:[#allocation16 + $0x88] sm:$0xff] }
 0x41c   :  { %v10319_v57 = vld [vmem:[#allocation16 + $0x30] sm:$0xff]  ;;  %v9128_v53 = vor.u32 %v10252_v1, %v9125_v9  ;;  %v5620_v20 = vadd.f32 %v5619_v6, %v4161_v8  ;;  %v10329_v9 = vld [vmem:[#allocation16 + $0x80] sm:$0xff] }
 0x41d   :  { %5862 = vmatpush.bf16.msrb.mxu3 %v9192_v33  ;;  %5838 = vmatpush.bf16.msrb.mxu1 %v8616_v44  ;;  %v10327_v58 = vld [vmem:[#allocation16 + $0x70] sm:$0xff]  ;;  %v5632_v19 = vpop.f32.mrf.mxu1  ;;  %v10338_v44 = vld [vmem:[#allocation16 + $0xc8] sm:$0xff]  ;;  %v10349_v6 = vld [vmem:[#allocation16 + $0x120] sm:$0xff] }
 0x41e   :  { %5826 = vmatmul.bf16.vlgmr.msrb.gmra.mxu0 %v10916_v15  ;;  %v10335_v14 = vld [vmem:[#allocation16 + $0xb0] sm:$0xff]  ;;  %v10317_v15 = vld [vmem:[#allocation16 + $0x20] sm:$0xff]  ;;  %v5633_v46 = vadd.f32 %v5632_v19, %v5620_v20 }
 0x41f   :  { %6418 = vmatpush.bf16.msra.mxu0 %v10320_v12  ;;  %5850 = vmatpush.bf16.msrb.mxu2 %v8904_v47  ;;  %v10343_v5 = vld [vmem:[#allocation16 + $0xf0] sm:$0xff]  ;;  %v5886_v12 = vsel %vm5870_vm6, %v10957_v16, %v5878_v36  ;;  %v10357_v19 = vld [vmem:[#allocation16 + $0x160] sm:$0xff]  ;;  %v11000_v36 = vld [vmem:[#allocation15] sm:$0xff] }
 0x420   :  { %5839 = vmatmul.bf16.vlgmr.msrb.gmra.mxu1 %v10918_v3  ;;  %v10325_v3 = vld [vmem:[#allocation16 + $0x60] sm:$0xff]  ;;  %v10315_v2 = vld [vmem:[#allocation16 + $0x10] sm:$0xff] }
 0x421   :  { %6431 = vmatpush.bf16.msra.mxu1 %v10328_v18  ;;  %5863 = vmatpush.bf16.msrb.mxu3 %v9160_v51  ;;  %v10323_v27 = vld [vmem:[#allocation16 + $0x50] sm:$0xff]  ;;  %v5887_v18 = vsel %vm5871_vm7, %v5555_v29, %v5879_v39  ;;  %v4163_v39 = vperm.slane %v11000_v36, 5 }
 0x422   :  { %v10331_v35 = vld [vmem:[#allocation16 + $0x90] sm:$0xff]  ;;  %v5895_v1 = vpack.c.bf16 %v5887_v18, %v5887_v18 }
 0x423   :  { %6419 = vmatpush.bf16.msra.mxu0 %v10319_v57  ;;  %5851 = vmatpush.bf16.msrb.mxu2 %v8872_v60  ;;  %v5621_v45 = vpop.f32.mrf.mxu0  ;;  %v10337_v57 = vld [vmem:[#allocation16 + $0xc0] sm:$0xff]  ;;  %v10359_v16 = vld [vmem:[#allocation16 + $0x170] sm:$0xff] }
 0x424   :  { %v10346_v45 = vld [vmem:[#allocation16 + $0x108] sm:$0xff] }
 0x425   :  { %6432 = vmatpush.bf16.msra.mxu1 %v10327_v58  ;;  %5864 = vmatpush.bf16.msrb.mxu3 %v9128_v53  ;;  %v5634_v23 = vpop.f32.mrf.mxu1  ;;  %v10351_v58 = vld [vmem:[#allocation16 + $0x130] sm:$0xff] }
 0x426   :  { %5852 = vmatmul.bf16.vlgmr.msrb.gmra.mxu2 %v10922_v43  ;;  %v5568_v43 = vadd.f32 %v10969_v37, %v4160_v7  ;;  %v10332_v37 = vld [vmem:[#allocation16 + $0x98] sm:$0xff]  ;;  %v10354_v23 = vld [vmem:[#allocation16 + $0x148] sm:$0xff] }
 0x427   :  { %6444 = vmatpush.bf16.msra.mxu2 %v10336_v62  ;;  %6420 = vmatpush.bf16.msra.mxu0 %v10318_v0  ;;  %v10350_v0 = vld [vmem:[#allocation16 + $0x128] sm:$0xff]  ;;  %v10356_v7 = vld [vmem:[#allocation16 + $0x158] sm:$0xff] }
 0x428   :  { %5865 = vmatmul.bf16.vlgmr.msrb.gmra.mxu3 %v10924_v61  ;;  %v10333_v61 = vld [vmem:[#allocation16 + $0xa0] sm:$0xff]  ;;  %v5581_v28 = vadd.f32 %v10971_v38, %v5568_v43  ;;  %v10339_v38 = vld [vmem:[#allocation16 + $0xd0] sm:$0xff] }
 0x429   :  { %6457 = vmatpush.bf16.msra.mxu3 %v10344_v63  ;;  %6433 = vmatpush.bf16.msra.mxu1 %v10326_v4  ;;  %v5645_v30 = vpop.f32.mrf.mxu2  ;;  %v10358_v4 = vld [vmem:[#allocation16 + $0x168] sm:$0xff] }
 0x42a   :  { %v5594_v54 = vadd.f32 %v10975_v25, %v5581_v28  ;;  %v5646_v49 = vadd.f32 %v5645_v30, %v5633_v46  ;;  %v10313_v25 = vld [vmem:[#allocation16] sm:$0xff] }
 0x42b   :  { %6445 = vmatpush.bf16.msra.mxu2 %v10335_v14  ;;  %6421 = vmatpush.bf16.msra.mxu0 %v10317_v15  ;;  %v5658_v33 = vpop.f32.mrf.mxu3  ;;  %v4162_v15 = vperm.slane %v10947_v59, 4  ;;  %v10345_v46 = vld [vmem:[#allocation16 + $0x100] sm:$0xff] }
 0x42c   :  { %v5607_v32 = vadd.f32 %v10977_v26, %v5594_v54  ;;  %v5659_v40 = vadd.f32 %v5658_v33, %v5646_v49  ;;  %v5894_v26 = vpack.c.bf16 %v5886_v12, %v5886_v12  ;;  %v10367_v54 = vld [vmem:[#allocation16 + $0x1b0] sm:$0xff] }
 0x42d   :  { %6458 = vmatpush.bf16.msra.mxu3 %v10343_v5  ;;  %6434 = vmatpush.bf16.msra.mxu1 %v10325_v3  ;;  %v10348_v3 = vld [vmem:[#allocation16 + $0x118] sm:$0xff] }
 0x42e   :  { %v5880_v11 = vmul.f32 0.01, %v5607_v32  ;;  %v5881_v56 = vmul.f32 0.01, %v5659_v40  ;;  %vm5872_vm8 = vcmp.gt.f32.partialorder %v5607_v32, 0.0  ;;  %vm5873_vm9 = vcmp.gt.f32.partialorder %v5659_v40, 0.0 }
 0x42f   :  { %6446 = vmatpush.bf16.msra.mxu2 %v10334_v24  ;;  %6422 = vmatpush.bf16.msra.mxu0 %v10316_v13  ;;  %v10347_v13 = vld [vmem:[#allocation16 + $0x110] sm:$0xff] }
 0x430   :  { %v5888_v60 = vsel %vm5872_vm8, %v5607_v32, %v5880_v11  ;;  %v5889_v53 = vsel %vm5873_vm9, %v5659_v40, %v5881_v56  ;;  %v10364_v32 = vld [vmem:[#allocation16 + $0x198] sm:$0xff]  ;;  %v10361_v11 = vld [vmem:[#allocation16 + $0x180] sm:$0xff] }
 0x431   :  { %6459 = vmatpush.bf16.msra.mxu3 %v10342_v10  ;;  %6435 = vmatpush.bf16.msra.mxu1 %v10324_v17  ;;  %v5647_v47 = vpop.f32.mrf.mxu2  ;;  %v5896_v62 = vpack.c.bf16 %v5888_v60, %v5888_v60  ;;  %v5897_v63 = vpack.c.bf16 %v5889_v53, %v5889_v53  ;;  %v10355_v17 = vld [vmem:[#allocation16 + $0x150] sm:$0xff]  ;;  %v10376_v56 = vld [vmem:[#allocation16 + $0x1f8] sm:$0xff] }
 0x433   :  { %6447 = vmatpush.bf16.msra.mxu2 %v10333_v61  ;;  %6423 = vmatpush.bf16.msra.mxu0 %v10315_v2  ;;  %v5660_v51 = vpop.f32.mrf.mxu3 }
 0x434   :  { %v10362_v51 = vld [vmem:[#allocation16 + $0x188] sm:$0xff] }
 0x435   :  { %6460 = vmatpush.bf16.msra.mxu3 %v10341_v21  ;;  %6436 = vmatpush.bf16.msra.mxu1 %v10323_v27 }
 0x437   :  { %6448 = vmatpush.bf16.msra.mxu2 %v10332_v37  ;;  %6424 = vmatpush.bf16.msra.mxu0 %v10314_v31  ;;  %v10353_v37 = vld [vmem:[#allocation16 + $0x140] sm:$0xff]  ;;  %v10366_v31 = vld [vmem:[#allocation16 + $0x1a8] sm:$0xff] }
 0x439   :  { %6461 = vmatpush.bf16.msra.mxu3 %v10340_v48  ;;  %6437 = vmatpush.bf16.msra.mxu1 %v10322_v34  ;;  %v10368_v48 = vld [vmem:[#allocation16 + $0x1b8] sm:$0xff] }
 0x43b   :  { %6449 = vmatpush.bf16.msra.mxu2 %v10331_v35  ;;  %6425 = vmatpush.bf16.msra.mxu0 %v10313_v25  ;;  %v5671_v14 = vpop.f32.mrf.mxu0  ;;  %v10363_v25 = vld [vmem:[#allocation16 + $0x190] sm:$0xff] }
 0x43c   :  { %v5672_v8 = vadd.f32 %v5671_v14, %v4162_v15 }
 0x43d   :  { %6462 = vmatpush.bf16.msra.mxu3 %v10339_v38  ;;  %6438 = vmatpush.bf16.msra.mxu1 %v10321_v41  ;;  %v5684_v5 = vpop.f32.mrf.mxu1  ;;  %v10365_v38 = vld [vmem:[#allocation16 + $0x1a0] sm:$0xff] }
 0x43e   :  { %6426 = vmatmul.bf16.vlgmr.msra.gmra.mxu0 %v5894_v26  ;;  %v5685_v43 = vadd.f32 %v5684_v5, %v5672_v8 }
 0x43f   :  { %6450 = vmatpush.bf16.msra.mxu2 %v10330_v42  ;;  %6470 = vmatpush.bf16.msrb.mxu0 %v10352_v52  ;;  %v3886_v22 = vpop.xlane.xlu0 %3885 }
 0x440   :  { %6439 = vmatmul.bf16.vlgmr.msra.gmra.mxu1 %v5895_v1  ;;  %v10997_v59 = vsub.f32 %v10951_v50, %v3886_v22 }
 0x441   :  { %6463 = vmatpush.bf16.msra.mxu3 %v10338_v44  ;;  %6483 = vmatpush.bf16.msrb.mxu1 %v10360_v55 }
 0x442   :  { %v3888_v27 = vmul.f32 1.442695, %v10997_v59 }
 0x443   :  { %6451 = vmatpush.bf16.msra.mxu2 %v10329_v9  ;;  %6471 = vmatpush.bf16.msrb.mxu0 %v10351_v58  ;;  %v5673_v24 = vpop.f32.mrf.mxu0  ;;  %v10375_v58 = vld [vmem:[#allocation16 + $0x1f0] sm:$0xff] }
 0x444   :  { %10396 = vpow2.f32 %v3888_v27 }
 0x445   :  { %6464 = vmatpush.bf16.msra.mxu3 %v10337_v57  ;;  %6484 = vmatpush.bf16.msrb.mxu1 %v10359_v16  ;;  %v5686_v10 = vpop.f32.mrf.mxu1  ;;  %v10374_v16 = vld [vmem:[#allocation16 + $0x1e8] sm:$0xff] }
 0x446   :  { %6452 = vmatmul.bf16.vlgmr.msra.gmra.mxu2 %v5896_v62  ;;  %v10373_v62 = vld [vmem:[#allocation16 + $0x1e0] sm:$0xff] }
 0x447   :  { %6472 = vmatpush.bf16.msrb.mxu0 %v10350_v0  ;;  %6496 = vmatpush.bf16.msrb.mxu2 %v10368_v48  ;;  %v4164_v0 = vperm.slane %v11000_v36, 6  ;;  %v10369_v10 = vld [vmem:[#allocation16 + $0x1c0] sm:$0xff] }
 0x448   :  { %6465 = vmatmul.bf16.vlgmr.msra.gmra.mxu3 %v5897_v63  ;;  %v10372_v63 = vld [vmem:[#allocation16 + $0x1d8] sm:$0xff] }
 0x449   :  { %6485 = vmatpush.bf16.msrb.mxu1 %v10358_v4  ;;  %v5697_v20 = vpop.f32.mrf.mxu2  ;;  %6509 = vmatpush.bf16.msrb.mxu3 %v10376_v56  ;;  %v10371_v4 = vld [vmem:[#allocation16 + $0x1d0] sm:$0xff] }
 0x44a   :  { %v5698_v21 = vadd.f32 %v5697_v20, %v5685_v43  ;;  %v10397_v49 = vpop.eup %10396 }
 0x44b   :  { %6473 = vmatpush.bf16.msrb.mxu0 %v10349_v6  ;;  %v5710_v61 = vpop.f32.mrf.mxu3  ;;  %6497 = vmatpush.bf16.msrb.mxu2 %v10367_v54 }
 0x44c   :  { %v5711_v2 = vadd.f32 %v5710_v61, %v5698_v21  ;;  %3890 = vadd.xlane.f32.xlu0 %v10397_v49 }
 0x44d   :  { %6486 = vmatpush.bf16.msrb.mxu1 %v10357_v19  ;;  %6510 = vmatpush.bf16.msrb.mxu3 %v10375_v58 }
 0x44e   :  { %vm5874_vm10 = vcmp.gt.f32.partialorder %v5711_v2, 0.0  ;;  %v5882_v28 = vmul.f32 0.01, %v5711_v2 }
 0x44f   :  { %6474 = vmatpush.bf16.msrb.mxu0 %v10348_v3  ;;  %6498 = vmatpush.bf16.msrb.mxu2 %v10366_v31  ;;  %v10395_v31 = vld [vmem:[%s11029_s14] ss:$0 sm:$0xff] }
 0x450   :  { %v5890_v29 = vsel %vm5874_vm10, %v5711_v2, %v5882_v28 }
 0x451   :  { %6487 = vmatpush.bf16.msrb.mxu1 %v10356_v7  ;;  %v5699_v30 = vpop.f32.mrf.mxu2  ;;  %v5898_v50 = vpack.c.bf16 %v5890_v29, %v5890_v29  ;;  %6511 = vmatpush.bf16.msrb.mxu3 %v10374_v16  ;;  %v10370_v7 = vld [vmem:[#allocation16 + $0x1c8] sm:$0xff] }
 0x453   :  { %6475 = vmatpush.bf16.msrb.mxu0 %v10347_v13  ;;  %v5712_v33 = vpop.f32.mrf.mxu3  ;;  %6499 = vmatpush.bf16.msrb.mxu2 %v10365_v38 }
 0x455   :  { %6488 = vmatpush.bf16.msrb.mxu1 %v10355_v17  ;;  %6512 = vmatpush.bf16.msrb.mxu3 %v10373_v62 }
 0x457   :  { %6476 = vmatpush.bf16.msrb.mxu0 %v10346_v45  ;;  %6500 = vmatpush.bf16.msrb.mxu2 %v10364_v32  ;;  %v4165_v45 = vperm.slane %v11000_v36, 7 }
 0x459   :  { %6489 = vmatpush.bf16.msrb.mxu1 %v10354_v23  ;;  %6513 = vmatpush.bf16.msrb.mxu3 %v10372_v63 }
 0x45b   :  { %6477 = vmatpush.bf16.msrb.mxu0 %v10345_v46  ;;  %v5723_v34 = vpop.f32.mrf.mxu0  ;;  %6501 = vmatpush.bf16.msrb.mxu2 %v10363_v25 }
 0x45c   :  { %v5724_v40 = vadd.f32 %v5723_v34, %v4163_v39 }
 0x45d   :  { %6490 = vmatpush.bf16.msrb.mxu1 %v10353_v37  ;;  %v5736_v35 = vpop.f32.mrf.mxu1  ;;  %6514 = vmatpush.bf16.msrb.mxu3 %v10371_v4 }
 0x45e   :  { %6478 = vmatmul.bf16.vlgmr.msrb.gmra.mxu0 %v5898_v50  ;;  %v5737_v44 = vadd.f32 %v5736_v35, %v5724_v40 }
 0x45f   :  { %6502 = vmatpush.bf16.msrb.mxu2 %v10362_v51 }
 0x461   :  { %6515 = vmatpush.bf16.msrb.mxu3 %v10370_v7 }
 0x463   :  { %v5725_v41 = vpop.f32.mrf.mxu0  ;;  %6503 = vmatpush.bf16.msrb.mxu2 %v10361_v11 }
 0x465   :  { %v5738_v42 = vpop.f32.mrf.mxu1  ;;  %6516 = vmatpush.bf16.msrb.mxu3 %v10369_v10 }
 0x469   :  { %v5749_v12 = vpop.f32.mrf.mxu2 }
 0x46a   :  { %v5750_v47 = vadd.f32 %v5749_v12, %v5737_v44 }
 0x46b   :  { %v5762_v18 = vpop.f32.mrf.mxu3 }
 0x46c   :  { %v5763_v52 = vadd.f32 %v5762_v18, %v5750_v47 }
 0x46e   :  { %vm5875_vm11 = vcmp.gt.f32.partialorder %v5763_v52, 0.0  ;;  %v5883_v55 = vmul.f32 0.01, %v5763_v52 }
 0x470   :  { %v5891_v26 = vsel %vm5875_vm11, %v5763_v52, %v5883_v55 }
 0x471   :  { %v5899_v1 = vpack.c.bf16 %v5891_v26, %v5891_v26  ;;  %v5751_v9 = vpop.f32.mrf.mxu2 }
 0x473   :  { %v5764_v57 = vpop.f32.mrf.mxu3  ;;  %6491 = vmatmul.bf16.vlgmr.msrb.gmra.mxu1 %v5899_v1 }
 0x47b   :  { %v5775_v60 = vpop.f32.mrf.mxu0 }
 0x47c   :  { %v5776_v14 = vadd.f32 %v5775_v60, %v4164_v0 }
 0x47d   :  { %v5788_v53 = vpop.f32.mrf.mxu1 }
 0x47e   :  { %v5789_v19 = vadd.f32 %v5788_v53, %v5776_v14 }
 0x483   :  { %v5777_v5 = vpop.f32.mrf.mxu0 }
 0x485   :  { %v5790_v6 = vpop.f32.mrf.mxu1 }
 0x489   :  { %v5801_v15 = vpop.f32.mrf.mxu2 }
 0x48a   :  { %v5802_v8 = vadd.f32 %v5801_v15, %v5789_v19 }
 0x48b   :  { %v5814_v3 = vpop.f32.mrf.mxu3 }
 0x48c   :  { %v5815_v24 = vadd.f32 %v5814_v3, %v5802_v8 }
 0x48e   :  { %vm5876_vm12 = vcmp.gt.f32.partialorder %v5815_v24, 0.0  ;;  %v5884_v13 = vmul.f32 0.01, %v5815_v24 }
 0x490   :  { %v5892_v17 = vsel %vm5876_vm12, %v5815_v24, %v5884_v13 }
 0x491   :  { %v5900_v43 = vpack.c.bf16 %v5892_v17, %v5892_v17  ;;  %v5803_v20 = vpop.f32.mrf.mxu2 }
 0x493   :  { %v5816_v61 = vpop.f32.mrf.mxu3  ;;  %6504 = vmatmul.bf16.vlgmr.msrb.gmra.mxu2 %v5900_v43 }
 0x49b   :  { %v5827_v21 = vpop.f32.mrf.mxu0 }
 0x49c   :  { %v5828_v23 = vadd.f32 %v5827_v21, %v4165_v45 }
 0x49d   :  { %v5840_v22 = vpop.f32.mrf.mxu1 }
 0x49e   :  { %v5841_v28 = vadd.f32 %v5840_v22, %v5828_v23 }
 0x4a3   :  { %v5829_v2 = vpop.f32.mrf.mxu0 }
 0x4a5   :  { %v5842_v27 = vpop.f32.mrf.mxu1 }
 0x4a9   :  { %v5853_v46 = vpop.f32.mrf.mxu2 }
 0x4aa   :  { %v5854_v48 = vadd.f32 %v5853_v46, %v5841_v28 }
 0x4ab   :  { %v5866_v37 = vpop.f32.mrf.mxu3 }
 0x4ac   :  { %v5867_v29 = vadd.f32 %v5866_v37, %v5854_v48 }
 0x4ae   :  { %vm5877_vm13 = vcmp.gt.f32.partialorder %v5867_v29, 0.0  ;;  %v5885_v30 = vmul.f32 0.01, %v5867_v29 }
 0x4b0   :  { %v5893_v33 = vsel %vm5877_vm13, %v5867_v29, %v5885_v30 }
 0x4b1   :  { %v5901_v54 = vpack.c.bf16 %v5893_v33, %v5893_v33  ;;  %v5855_v50 = vpop.f32.mrf.mxu2 }
 0x4b3   :  { %v5868_v49 = vpop.f32.mrf.mxu3  ;;  %6517 = vmatmul.bf16.vlgmr.msrb.gmra.mxu3 %v5901_v54 }
 0x4bb   :  { %v6427_v34 = vpop.f32.mrf.mxu0 }
 0x4bc   :  { %v6428_v38 = vadd.f32 %v10395_v31, %v6427_v34 }
 0x4bd   :  { %v6440_v35 = vpop.f32.mrf.mxu1 }
 0x4be   :  { %v6441_v36 = vadd.f32 %v6440_v35, %v6428_v38 }
 0x4bf   :  { %v3891_v18 = vpop.xlane.xlu0 %3890 }
 0x4c0   :  { %10398 = vlog2.f32 %v3891_v18 }
 0x4c3   :  { %v6429_v39 = vpop.f32.mrf.mxu0 }
 0x4c5   :  { %v6442_v32 = vpop.f32.mrf.mxu1 }
 0x4c6   :  { %v10399_v47 = vpop.eup %10398 }
 0x4c7   :  { %v3893_v51 = vmul.f32 0.6931472, %v10399_v47 }
 0x4c9   :  { %v6453_v40 = vpop.f32.mrf.mxu2  ;;  %v3894_v52 = vsub.f32 %v10997_v59, %v3893_v51 }
 0x4ca   :  { %v6454_v41 = vadd.f32 %v6453_v40, %v6441_v36 }
 0x4cb   :  { %v6466_v25 = vpop.f32.mrf.mxu3  ;;  %3895 = vst [vmem:[%s11030_s15] sm:$0xff] %v3894_v52 }
 0x4cc   :  { %v6467_v42 = vadd.f32 %v6466_v25, %v6454_v41 }
 0x4d1   :  { %v6455_v44 = vpop.f32.mrf.mxu2 }
 0x4d3   :  { %v6468_v12 = vpop.f32.mrf.mxu3 }
 0x4db   :  { %v6479_v55 = vpop.f32.mrf.mxu0 }
 0x4dc   :  { %v6480_v11 = vadd.f32 %v6479_v55, %v6467_v42 }
 0x4e3   :  { %v6481_v56 = vpop.f32.mrf.mxu0 }
 0x4f0   :  { %v6492_v26 = vpop.f32.mrf.mxu1 }
 0x4f1   :  { %v6493_v58 = vadd.f32 %v6492_v26, %v6480_v11 }
 0x4f8   :  { %v6494_v1 = vpop.f32.mrf.mxu1 }
 0x516   :  { %v6505_v9 = vpop.f32.mrf.mxu2 }
 0x517   :  { %v6506_v16 = vadd.f32 %v6505_v9, %v6493_v58 }
 0x51e   :  { %v6507_v57 = vpop.f32.mrf.mxu2 }
 0x536   :  { %v6518_v60 = vpop.f32.mrf.mxu3 }
 0x537   :  { %v6519_v53 = vadd.f32 %v6518_v60, %v6506_v16 }
 0x539   :  { %6522 = vst [vmem:[%s11031_s16] sm:$0xff] %v6519_v53 }
 0x53e   :  { %v6520_v59 = vpop.f32.mrf.mxu3 }
 0x53f   :  { %6531 = vsyncpa [#allocation3], 1 }
 0x540   :  { %6532 = vsyncpa [#allocation5], 1 }
 0x541   :  { %6533 = vsyncpa [#allocation8], 1 }
 0x542   :  { %6534 = vsyncpa [#allocation11], 1 }
 0x543   :  { %6535 = vsyncpa [#allocation14], 1 }
 0x544   :  { %6536 = vsyncpa [#allocation17], 1 }

</bundles_post_ra>
